<compile_context>
chip_gen: v6e
topology: v6e:2x2x1
jax: 0.10.0
libtpu: 0.0.40
codegen_flags: <defaults>
</compile_context>

<pallas_src>
import numpy as np
import jax
import jax.numpy as jnp
from jax import lax
from jax.experimental import pallas as pl
from jax.experimental.pallas import tpu as pltpu

LOGITS_SCALE = 4.6052     # self.logits_scale
TEMPERATURE = 0.07        # args.temperature (constant for this synthetic build)
NUM_HEADS = 8             # AttentionPool2d(4, out_dim, 8, clip_feature)


# --------------------------------------------------------------------------------------
# Bilinear interpolation matrices (align_corners=False, antialias=False)
# --------------------------------------------------------------------------------------
def _interp_weights(in_size, out_size):
    w = np.zeros((in_size, out_size), np.float32)
    if in_size == out_size:
        np.fill_diagonal(w, 1.0)
        return w
    scale = in_size / out_size
    coords = (np.arange(out_size) + 0.5) * scale - 0.5
    coords = np.clip(coords, 0.0, in_size - 1)
    lo = np.floor(coords).astype(np.int32)
    hi = np.minimum(lo + 1, in_size - 1)
    whi = (coords - lo).astype(np.float32)
    for j in range(out_size):
        w[lo[j], j] += 1.0 - whi[j]
        w[hi[j], j] += whi[j]
    return w


def _resize_matrix(H, W, out_res):
    """R[(h*W+w), (i*out_res+j)] such that x_flat @ R == bilinear_resize(x)."""
    wh = _interp_weights(H, out_res)                       # (H, out_res)
    ww = _interp_weights(W, out_res)                       # (W, out_res)
    R = np.einsum("hi,wj->hwij", wh, ww).reshape(H * W, out_res * out_res)
    return jnp.asarray(R, jnp.bfloat16)


# --------------------------------------------------------------------------------------
# Kernel 1: fused ADDModel (resize-commuted 1x1 convs + average), channel-major output
# --------------------------------------------------------------------------------------
def _fuse_add_kernel(xl_ref, xm_ref, xh_ref, xt_ref,        # (1, C_i, HW_i) f32
                     wl_ref, wm_ref, wh_ref, wt_ref,        # (Cout, C_i)    bf16
                     rm_ref, rh_ref, rt_ref,                # (HW_i, 16)     bf16
                     o_ref):                                # (1, Cout, 16)  f32

    def conv_of_resized(x_ref, w_ref, r_ref):
        x = x_ref[0].astype(jnp.bfloat16)                   # (C_i, HW_i)
        if r_ref is not None:
            x = jnp.dot(x, r_ref[...],                      # bilinear resize -> (C_i, 16)
                        preferred_element_type=jnp.float32).astype(jnp.bfloat16)
        return jnp.dot(w_ref[...], x,                       # 1x1 conv -> (Cout, 16)
                       preferred_element_type=jnp.float32)

    acc = conv_of_resized(xl_ref, wl_ref, None)             # low is already 4x4
    acc = acc + conv_of_resized(xm_ref, wm_ref, rm_ref)
    acc = acc + conv_of_resized(xh_ref, wh_ref, rh_ref)
    acc = acc + conv_of_resized(xt_ref, wt_ref, rt_ref)
    o_ref[0] = (acc * 0.25).astype(o_ref.dtype)


def fuse_add(out_list, conv_ws, out_res=4):
    low, mid, high, highest = out_list
    B = low.shape[0]
    Cout = conv_ws[0].shape[0]
    T = out_res * out_res
    assert low.shape[2] * low.shape[3] == T, "low_res must already be at out_res"

    def flat(x):                                            # free reshape of NCHW
        b, c, h, w = x.shape
        return x.reshape(b, c, h * w)

    xs = [flat(x) for x in (low, mid, high, highest)]
    ws = [w.astype(jnp.bfloat16) for w in conv_ws]
    rs = [_resize_matrix(x.shape[2], x.shape[3], out_res) for x in (mid, high, highest)]

    x_specs = [pl.BlockSpec((1, x.shape[1], x.shape[2]), lambda b: (b, 0, 0)) for x in xs]
    w_specs = [pl.BlockSpec(w.shape, lambda b: (0, 0)) for w in ws]
    r_specs = [pl.BlockSpec(r.shape, lambda b: (0, 0)) for r in rs]

    return pl.pallas_call(
        _fuse_add_kernel,
        out_shape=jax.ShapeDtypeStruct((B, Cout, T), jnp.float32),
        grid=(B,),
        in_specs=x_specs + w_specs + r_specs,
        out_specs=pl.BlockSpec((1, Cout, T), lambda b: (b, 0, 0)),
        compiler_params=pltpu.CompilerParams(dimension_semantics=("parallel",)),
    )(*xs, *ws, *rs)


# --------------------------------------------------------------------------------------
# Kernel 2: AttentionPool2d + F.normalize + logits + CrossEntropyLoss (whole batch)
# --------------------------------------------------------------------------------------
def _attn_pool_logits_ce_kernel(tok_ref, pos0_ref, posr_ref, w3t_ref, b3_ref,
                                g_ref, gt_ref, wct_ref, cb_ref, textt_ref,
                                labels_ref, logits_ref, loss_ref):
    B = tok_ref.shape[0]
    C = w3t_ref.shape[0]
    hd = C // NUM_HEADS
    scale = 1.0 / float(hd) ** 0.5
    inv_temp = 1.0 / TEMPERATURE

    loss_acc = jnp.zeros((1, 1), jnp.float32)
    for b in range(B):                                      # B is small; statically unrolled
        x16 = tok_ref[b]                                    # (16, C) spatial tokens
        t0 = jnp.mean(x16, axis=0, keepdims=True) + pos0_ref[...]   # mean/class token (1, C)
        tr = x16 + posr_ref[...]                                     # (16, C)

        # fused q/k/v projection
        qkv0 = jnp.dot(t0, w3t_ref[...], preferred_element_type=jnp.float32) + b3_ref[...]
        qkvr = jnp.dot(tr, w3t_ref[...], preferred_element_type=jnp.float32) + b3_ref[...]
        q0 = qkv0[:, 0:C] * scale                           # only the class token queries
        k0 = qkv0[:, C:2 * C]
        v0 = qkv0[:, 2 * C:3 * C]
        kr = qkvr[:, C:2 * C]
        vr = qkvr[:, 2 * C:3 * C]

        # per-head scores via head-grouping matmul (no per-head loop, no 17-row concat)
        s0 = jnp.dot(q0 * k0, g_ref[...], preferred_element_type=jnp.float32)   # (1, H)
        sr = jnp.dot(q0 * kr, g_ref[...], preferred_element_type=jnp.float32)   # (16, H)
        m = jnp.maximum(s0, jnp.max(sr, axis=0, keepdims=True))
        e0 = jnp.exp(s0 - m)
        er = jnp.exp(sr - m)
        inv_l = pl.reciprocal(e0 + jnp.sum(er, axis=0, keepdims=True), approx=True)
        p0 = e0 * inv_l                                                          # (1, H)
        pr = er * inv_l                                                          # (16, H)

        ctx = (jnp.dot(p0, gt_ref[...], preferred_element_type=jnp.float32) * v0
               + jnp.sum(jnp.dot(pr, gt_ref[...], preferred_element_type=jnp.float32) * vr,
                         axis=0, keepdims=True))                                 # (1, C)

        pooled = jnp.dot(ctx, wct_ref[...],
                         preferred_element_type=jnp.float32) + cb_ref[...]       # (1, D)

        # F.normalize(dim=-1) + text logits
        nrm = jnp.sqrt(jnp.sum(pooled * pooled, axis=-1, keepdims=True))
        fn = pooled * pl.reciprocal(jnp.maximum(nrm, 1e-12), approx=True)
        logits = jnp.dot(fn, textt_ref[...],
                         preferred_element_type=jnp.float32) * LOGITS_SCALE      # (1, NC)
        logits_ref[pl.ds(b, 1), :] = logits

        # CrossEntropyLoss(pre_logits / T, labels), reduction='mean'
        scaled = logits * inv_temp
        mx = jnp.max(scaled, axis=-1, keepdims=True)
        lse = jnp.log(jnp.sum(jnp.exp(scaled - mx), axis=-1, keepdims=True)) + mx
        onehot = lax.broadcasted_iota(jnp.int32, scaled.shape, 1) == labels_ref[b]
        picked = jnp.sum(jnp.where(onehot, scaled, 0.0), axis=-1, keepdims=True)
        loss_acc = loss_acc + (lse - picked)

    loss_ref[...] = loss_acc * (1.0 / B)


def attn_pool_logits_ce(tokens, p, text_features, labels):
    B, T, C = tokens.shape
    NC = text_features.shape[0]
    hd = C // NUM_HEADS

    # fused / pre-oriented parameters (tiny, transposed once in the wrapper)
    w3t = jnp.concatenate([jnp.transpose(p["qw"]), jnp.transpose(p["kw"]),
                           jnp.transpose(p["vw"])], axis=1)            # (C, 3C)
    b3 = jnp.concatenate([p["qb"], p["kb"], p["vb"]])[None, :]         # (1, 3C)
    pos0 = p["pos"][0:1]                                               # (1, C)
    posr = p["pos"][1:]                                                # (16, C)
    g = jnp.asarray((np.arange(C)[:, None] // hd
                     == np.arange(NUM_HEADS)[None, :]).astype(np.float32))  # (C, H)
    gt = jnp.transpose(g)                                              # (H, C)
    wct = jnp.transpose(p["cw"])                                       # (C, D)
    cb = p["cb"][None, :]                                              # (1, D)
    textt = jnp.transpose(text_features)                               # (D, NC)

    in_specs = ([pl.BlockSpec(memory_space=pltpu.MemorySpace.VMEM) for _ in range(10)]
                + [pl.BlockSpec(memory_space=pltpu.MemorySpace.SMEM)])
    out_specs = (pl.BlockSpec(memory_space=pltpu.MemorySpace.VMEM),
                 pl.BlockSpec(memory_space=pltpu.MemorySpace.VMEM))

    pre_logits, loss = pl.pallas_call(
        _attn_pool_logits_ce_kernel,
        out_shape=(jax.ShapeDtypeStruct((B, NC), jnp.float32),
                   jax.ShapeDtypeStruct((1, 1), jnp.float32)),
        in_specs=in_specs,
        out_specs=out_specs,
    )(tokens, pos0, posr, w3t, b3, g, gt, wct, cb, textt, labels.astype(jnp.int32))
    return pre_logits, loss[0, 0]


# --------------------------------------------------------------------------------------
# DiffusionSBIR.forward  (ADDModel fuse path: args.fuse_arch == 'add')
# --------------------------------------------------------------------------------------
def diffusion_sbir_forward(out_list, conv_ws, attn_params, text_features, labels,
                           out_res=4):
    fused_cm = fuse_add(out_list, conv_ws, out_res=out_res)    # (B, out_dim, 16) channel-major
    tokens = jnp.transpose(fused_cm, (0, 2, 1))                # tiny: (B, 16, out_dim)
    pre_logits, loss_ce = attn_pool_logits_ce(tokens, attn_params, text_features, labels)
    return pre_logits, {"ce": loss_ce, "total": loss_ce}


# --------------------------------------------------------------------------------------
if __name__ == "__main__":
    B = 2
    # small stand-ins for in_dims=[1280,1280,1280,960], out_dim=512, clip_feature=768
    in_dims = [128, 128, 128, 96]        # low, mid, high, highest
    out_dim = 128
    clip_feature = 128
    num_classes = 16
    spatial = [4, 8, 16, 32]             # low_res must already be at out_res=4
    out_res = 4

    key = jax.random.PRNGKey(0)
    keys = jax.random.split(key, 32)
    ki = iter(keys)

    # Synthetic multi-scale features standing in for LDMFeatureExtractor(inputs, prompt, ...)
    out_list = [
        jax.random.normal(next(ki), (B, c, s, s), jnp.float32)
        for c, s in zip(in_dims, spatial)
    ]

    # ADDModel 1x1 conv weights (Cout=out_dim, Cin=in_dim), bias=False
    conv_ws = [0.02 * jax.random.normal(next(ki), (out_dim, c), jnp.float32)
               for c in in_dims]

    # AttentionPool2d(spacial_dim=4, embed_dim=out_dim, num_heads=8, output_dim=clip_feature)
    attn_params = {
        "pos": (1.0 / out_dim ** 0.5)
               * jax.random.normal(next(ki), (out_res * out_res + 1, out_dim), jnp.float32),
        "qw": 0.02 * jax.random.normal(next(ki), (out_dim, out_dim), jnp.float32),
        "qb": 0.02 * jax.random.normal(next(ki), (out_dim,), jnp.float32),
        "kw": 0.02 * jax.random.normal(next(ki), (out_dim, out_dim), jnp.float32),
        "kb": 0.02 * jax.random.normal(next(ki), (out_dim,), jnp.float32),
        "vw": 0.02 * jax.random.normal(next(ki), (out_dim, out_dim), jnp.float32),
        "vb": 0.02 * jax.random.normal(next(ki), (out_dim,), jnp.float32),
        "cw": 0.02 * jax.random.normal(next(ki), (clip_feature, out_dim), jnp.float32),
        "cb": 0.02 * jax.random.normal(next(ki), (clip_feature,), jnp.float32),
    }

    # register_text_features: normalized text embeddings (synthetic)
    text_raw = jax.random.normal(next(ki), (num_classes, clip_feature), jnp.float32)
    text_features = text_raw / jnp.linalg.norm(text_raw, axis=-1, keepdims=True)

    labels = jax.random.randint(next(ki), (B,), 0, num_classes, dtype=jnp.int32)

    fwd = jax.jit(lambda ol, cw, ap, tf, lb:
                  diffusion_sbir_forward(ol, cw, ap, tf, lb, out_res=out_res))
    pre_logits, losses = fwd(out_list, conv_ws, attn_params, text_features, labels)
    jax.block_until_ready((pre_logits, losses))
    assert pre_logits.shape == (B, num_classes)
    assert losses["total"].shape == ()
    print("KERNEL_OK")
</pallas_src>

<mosaic_0001>
module attributes {stable_mosaic.version = 11 : i64} {
  func.func @_fuse_add_kernel(%arg0: i32, %arg1: memref<1x128x16xf32, #tpu.memory_space<vmem>>, %arg2: memref<1x128x64xf32, #tpu.memory_space<vmem>>, %arg3: memref<1x128x256xf32, #tpu.memory_space<vmem>>, %arg4: memref<1x96x1024xf32, #tpu.memory_space<vmem>>, %arg5: memref<128x128xbf16, #tpu.memory_space<vmem>>, %arg6: memref<128x128xbf16, #tpu.memory_space<vmem>>, %arg7: memref<128x128xbf16, #tpu.memory_space<vmem>>, %arg8: memref<128x96xbf16, #tpu.memory_space<vmem>>, %arg9: memref<64x16xbf16, #tpu.memory_space<vmem>>, %arg10: memref<256x16xbf16, #tpu.memory_space<vmem>>, %arg11: memref<1024x16xbf16, #tpu.memory_space<vmem>>, %arg12: memref<1x128x16xf32, #tpu.memory_space<vmem>>) attributes {dimension_semantics = [#tpu.dimension_semantics<parallel>], iteration_bounds = array<i64: 2>, scalar_prefetch = 0 : i64, scratch_operands = 0 : i64, tpu.core_type = #tpu.core_type<tc>, window_params = [{transform_indices = @transform_0, window_bounds = array<i64: 1, 128, 16>}, {transform_indices = @transform_1, window_bounds = array<i64: 1, 128, 64>}, {transform_indices = @transform_2, window_bounds = array<i64: 1, 128, 256>}, {transform_indices = @transform_3, window_bounds = array<i64: 1, 96, 1024>}, {pipeline_mode = #tpu.pipeline_mode<synchronous>, transform_indices = @transform_4, window_bounds = array<i64: 128, 128>}, {pipeline_mode = #tpu.pipeline_mode<synchronous>, transform_indices = @transform_5, window_bounds = array<i64: 128, 128>}, {pipeline_mode = #tpu.pipeline_mode<synchronous>, transform_indices = @transform_6, window_bounds = array<i64: 128, 128>}, {pipeline_mode = #tpu.pipeline_mode<synchronous>, transform_indices = @transform_7, window_bounds = array<i64: 128, 96>}, {pipeline_mode = #tpu.pipeline_mode<synchronous>, transform_indices = @transform_8, window_bounds = array<i64: 64, 16>}, {pipeline_mode = #tpu.pipeline_mode<synchronous>, transform_indices = @transform_9, window_bounds = array<i64: 256, 16>}, {pipeline_mode = #tpu.pipeline_mode<synchronous>, transform_indices = @transform_10, window_bounds = array<i64: 1024, 16>}, {transform_indices = @transform_11, window_bounds = array<i64: 1, 128, 16>}]} {
    %c0 = arith.constant 0 : index
    %c0_0 = arith.constant 0 : index
    %c0_1 = arith.constant 0 : index
    %0 = vector.load %arg1[%c0, %c0_0, %c0_1] : memref<1x128x16xf32, #tpu.memory_space<vmem>>, vector<1x128x16xf32>
    %1 = vector.shape_cast %0 : vector<1x128x16xf32> to vector<128x16xf32>
    %2 = arith.truncf %1 : vector<128x16xf32> to vector<128x16xbf16>
    %c0_2 = arith.constant 0 : index
    %c0_3 = arith.constant 0 : index
    %3 = vector.load %arg5[%c0_2, %c0_3] : memref<128x128xbf16, #tpu.memory_space<vmem>>, vector<128x128xbf16>
    %cst = arith.constant dense<0.000000e+00> : vector<128x16xf32>
    %4 = tpu.matmul %3, %2, %cst {dimension_numbers = #tpu.dot_dimension_numbers<[1], [0], [0], [1], [0, 0, 1, 1], [], []>} : vector<128x128xbf16>, vector<128x16xbf16>, vector<128x16xf32> -> vector<128x16xf32>
    %c0_4 = arith.constant 0 : index
    %c0_5 = arith.constant 0 : index
    %c0_6 = arith.constant 0 : index
    %5 = vector.load %arg2[%c0_4, %c0_5, %c0_6] : memref<1x128x64xf32, #tpu.memory_space<vmem>>, vector<1x128x64xf32>
    %6 = vector.shape_cast %5 : vector<1x128x64xf32> to vector<128x64xf32>
    %7 = arith.truncf %6 : vector<128x64xf32> to vector<128x64xbf16>
    %c0_7 = arith.constant 0 : index
    %c0_8 = arith.constant 0 : index
    %8 = vector.load %arg9[%c0_7, %c0_8] : memref<64x16xbf16, #tpu.memory_space<vmem>>, vector<64x16xbf16>
    %cst_9 = arith.constant dense<0.000000e+00> : vector<128x16xf32>
    %9 = tpu.matmul %7, %8, %cst_9 {dimension_numbers = #tpu.dot_dimension_numbers<[1], [0], [0], [1], [0, 0, 1, 1], [], []>} : vector<128x64xbf16>, vector<64x16xbf16>, vector<128x16xf32> -> vector<128x16xf32>
    %10 = arith.truncf %9 : vector<128x16xf32> to vector<128x16xbf16>
    %c0_10 = arith.constant 0 : index
    %c0_11 = arith.constant 0 : index
    %11 = vector.load %arg6[%c0_10, %c0_11] : memref<128x128xbf16, #tpu.memory_space<vmem>>, vector<128x128xbf16>
    %cst_12 = arith.constant dense<0.000000e+00> : vector<128x16xf32>
    %12 = tpu.matmul %11, %10, %cst_12 {dimension_numbers = #tpu.dot_dimension_numbers<[1], [0], [0], [1], [0, 0, 1, 1], [], []>} : vector<128x128xbf16>, vector<128x16xbf16>, vector<128x16xf32> -> vector<128x16xf32>
    %13 = arith.addf %4, %12 : vector<128x16xf32>
    %c0_13 = arith.constant 0 : index
    %c0_14 = arith.constant 0 : index
    %c0_15 = arith.constant 0 : index
    %14 = vector.load %arg3[%c0_13, %c0_14, %c0_15] : memref<1x128x256xf32, #tpu.memory_space<vmem>>, vector<1x128x256xf32>
    %15 = vector.shape_cast %14 : vector<1x128x256xf32> to vector<128x256xf32>
    %16 = arith.truncf %15 : vector<128x256xf32> to vector<128x256xbf16>
    %c0_16 = arith.constant 0 : index
    %c0_17 = arith.constant 0 : index
    %17 = vector.load %arg10[%c0_16, %c0_17] : memref<256x16xbf16, #tpu.memory_space<vmem>>, vector<256x16xbf16>
    %cst_18 = arith.constant dense<0.000000e+00> : vector<128x16xf32>
    %18 = tpu.matmul %16, %17, %cst_18 {dimension_numbers = #tpu.dot_dimension_numbers<[1], [0], [0], [1], [0, 0, 1, 1], [], []>} : vector<128x256xbf16>, vector<256x16xbf16>, vector<128x16xf32> -> vector<128x16xf32>
    %19 = arith.truncf %18 : vector<128x16xf32> to vector<128x16xbf16>
    %c0_19 = arith.constant 0 : index
    %c0_20 = arith.constant 0 : index
    %20 = vector.load %arg7[%c0_19, %c0_20] : memref<128x128xbf16, #tpu.memory_space<vmem>>, vector<128x128xbf16>
    %cst_21 = arith.constant dense<0.000000e+00> : vector<128x16xf32>
    %21 = tpu.matmul %20, %19, %cst_21 {dimension_numbers = #tpu.dot_dimension_numbers<[1], [0], [0], [1], [0, 0, 1, 1], [], []>} : vector<128x128xbf16>, vector<128x16xbf16>, vector<128x16xf32> -> vector<128x16xf32>
    %22 = arith.addf %13, %21 : vector<128x16xf32>
    %c0_22 = arith.constant 0 : index
    %c0_23 = arith.constant 0 : index
    %c0_24 = arith.constant 0 : index
    %23 = vector.load %arg4[%c0_22, %c0_23, %c0_24] : memref<1x96x1024xf32, #tpu.memory_space<vmem>>, vector<1x96x1024xf32>
    %24 = vector.shape_cast %23 : vector<1x96x1024xf32> to vector<96x1024xf32>
    %25 = arith.truncf %24 : vector<96x1024xf32> to vector<96x1024xbf16>
    %c0_25 = arith.constant 0 : index
    %c0_26 = arith.constant 0 : index
    %26 = vector.load %arg11[%c0_25, %c0_26] : memref<1024x16xbf16, #tpu.memory_space<vmem>>, vector<1024x16xbf16>
    %cst_27 = arith.constant dense<0.000000e+00> : vector<96x16xf32>
    %27 = tpu.matmul %25, %26, %cst_27 {dimension_numbers = #tpu.dot_dimension_numbers<[1], [0], [0], [1], [0, 0, 1, 1], [], []>} : vector<96x1024xbf16>, vector<1024x16xbf16>, vector<96x16xf32> -> vector<96x16xf32>
    %28 = arith.truncf %27 : vector<96x16xf32> to vector<96x16xbf16>
    %c0_28 = arith.constant 0 : index
    %c0_29 = arith.constant 0 : index
    %29 = vector.load %arg8[%c0_28, %c0_29] : memref<128x96xbf16, #tpu.memory_space<vmem>>, vector<128x96xbf16>
    %cst_30 = arith.constant dense<0.000000e+00> : vector<128x16xf32>
    %30 = tpu.matmul %29, %28, %cst_30 {dimension_numbers = #tpu.dot_dimension_numbers<[1], [0], [0], [1], [0, 0, 1, 1], [], []>} : vector<128x96xbf16>, vector<96x16xbf16>, vector<128x16xf32> -> vector<128x16xf32>
    %31 = arith.addf %22, %30 : vector<128x16xf32>
    %cst_31 = arith.constant 2.500000e-01 : f32
    %32 = vector.broadcast %cst_31 : f32 to vector<128x16xf32>
    %33 = arith.mulf %31, %32 : vector<128x16xf32>
    %c0_32 = arith.constant 0 : index
    %c0_33 = arith.constant 0 : index
    %c0_34 = arith.constant 0 : index
    %34 = vector.load %arg12[%c0_32, %c0_33, %c0_34] : memref<1x128x16xf32, #tpu.memory_space<vmem>>, vector<1x128x16xf32>
    %35 = vector.shape_cast %34 : vector<1x128x16xf32> to vector<128x16xf32>
    %36 = vector.shape_cast %33 : vector<128x16xf32> to vector<1x128x16xf32>
    tpu.vector_store %arg12[%c0_32, %c0_33, %c0_34], %36 {strides = array<i32>} : memref<1x128x16xf32, #tpu.memory_space<vmem>>, vector<1x128x16xf32>,
    return
  }
  func.func @transform_0(%arg0: i32) -> (i32, i32, i32) {
    %c0_i32 = arith.constant 0 : i32
    %c0_i32_0 = arith.constant 0 : i32
    %c0_i32_1 = arith.constant 0 : i32
    return %arg0, %c0_i32, %c0_i32_0 : i32, i32, i32
  }
  func.func @transform_1(%arg0: i32) -> (i32, i32, i32) {
    %c0_i32 = arith.constant 0 : i32
    %c0_i32_0 = arith.constant 0 : i32
    %c0_i32_1 = arith.constant 0 : i32
    return %arg0, %c0_i32, %c0_i32_0 : i32, i32, i32
  }
  func.func @transform_2(%arg0: i32) -> (i32, i32, i32) {
    %c0_i32 = arith.constant 0 : i32
    %c0_i32_0 = arith.constant 0 : i32
    %c0_i32_1 = arith.constant 0 : i32
    return %arg0, %c0_i32, %c0_i32_0 : i32, i32, i32
  }
  func.func @transform_3(%arg0: i32) -> (i32, i32, i32) {
    %c0_i32 = arith.constant 0 : i32
    %c0_i32_0 = arith.constant 0 : i32
    %c0_i32_1 = arith.constant 0 : i32
    return %arg0, %c0_i32, %c0_i32_0 : i32, i32, i32
  }
  func.func @transform_4(%arg0: i32) -> (i32, i32) {
    %c0_i32 = arith.constant 0 : i32
    %c0_i32_0 = arith.constant 0 : i32
    %c0_i32_1 = arith.constant 0 : i32
    return %c0_i32, %c0_i32_0 : i32, i32
  }
  func.func @transform_5(%arg0: i32) -> (i32, i32) {
    %c0_i32 = arith.constant 0 : i32
    %c0_i32_0 = arith.constant 0 : i32
    %c0_i32_1 = arith.constant 0 : i32
    return %c0_i32, %c0_i32_0 : i32, i32
  }
  func.func @transform_6(%arg0: i32) -> (i32, i32) {
    %c0_i32 = arith.constant 0 : i32
    %c0_i32_0 = arith.constant 0 : i32
    %c0_i32_1 = arith.constant 0 : i32
    return %c0_i32, %c0_i32_0 : i32, i32
  }
  func.func @transform_7(%arg0: i32) -> (i32, i32) {
    %c0_i32 = arith.constant 0 : i32
    %c0_i32_0 = arith.constant 0 : i32
    %c0_i32_1 = arith.constant 0 : i32
    return %c0_i32, %c0_i32_0 : i32, i32
  }
  func.func @transform_8(%arg0: i32) -> (i32, i32) {
    %c0_i32 = arith.constant 0 : i32
    %c0_i32_0 = arith.constant 0 : i32
    %c0_i32_1 = arith.constant 0 : i32
    return %c0_i32, %c0_i32_0 : i32, i32
  }
  func.func @transform_9(%arg0: i32) -> (i32, i32) {
    %c0_i32 = arith.constant 0 : i32
    %c0_i32_0 = arith.constant 0 : i32
    %c0_i32_1 = arith.constant 0 : i32
    return %c0_i32, %c0_i32_0 : i32, i32
  }
  func.func @transform_10(%arg0: i32) -> (i32, i32) {
    %c0_i32 = arith.constant 0 : i32
    %c0_i32_0 = arith.constant 0 : i32
    %c0_i32_1 = arith.constant 0 : i32
    return %c0_i32, %c0_i32_0 : i32, i32
  }
  func.func @transform_11(%arg0: i32) -> (i32, i32, i32) {
    %c0_i32 = arith.constant 0 : i32
    %c0_i32_0 = arith.constant 0 : i32
    %c0_i32_1 = arith.constant 0 : i32
    return %arg0, %c0_i32, %c0_i32_0 : i32, i32, i32
  }
}

module attributes {stable_mosaic.version = 11 : i64} {
  func.func @_attn_pool_logits_ce_kernel(%arg0: memref<2x16x128xf32, #tpu.memory_space<vmem>>, %arg1: memref<1x128xf32, #tpu.memory_space<vmem>>, %arg2: memref<16x128xf32, #tpu.memory_space<vmem>>, %arg3: memref<128x384xf32, #tpu.memory_space<vmem>>, %arg4: memref<1x384xf32, #tpu.memory_space<vmem>>, %arg5: memref<128x8xf32, #tpu.memory_space<vmem>>, %arg6: memref<8x128xf32, #tpu.memory_space<vmem>>, %arg7: memref<128x128xf32, #tpu.memory_space<vmem>>, %arg8: memref<1x128xf32, #tpu.memory_space<vmem>>, %arg9: memref<128x16xf32, #tpu.memory_space<vmem>>, %arg10: memref<2xi32, #tpu.memory_space<smem>>, %arg11: memref<2x16xf32, #tpu.memory_space<vmem>>, %arg12: memref<1x1xf32, #tpu.memory_space<vmem>>) attributes {dimension_semantics = [], scalar_prefetch = 0 : i64, scratch_operands = 0 : i64, tpu.core_type = #tpu.core_type<tc>} {
    %cst = arith.constant 0.000000e+00 : f32
    %0 = vector.broadcast %cst : f32 to vector<1x1xf32>
    %c0 = arith.constant 0 : index
    %c0_0 = arith.constant 0 : index
    %c0_1 = arith.constant 0 : index
    %1 = vector.load %arg0[%c0, %c0_0, %c0_1] : memref<2x16x128xf32, #tpu.memory_space<vmem>>, vector<1x16x128xf32>
    %2 = vector.shape_cast %1 : vector<1x16x128xf32> to vector<16x128xf32>
    %cst_2 = arith.constant dense<0.000000e+00> : vector<128xf32>
    %3 = vector.multi_reduction <add>, %2, %cst_2 [0] : vector<16x128xf32> to vector<128xf32>
    %4 = vector.shape_cast %3 : vector<128xf32> to vector<1x128xf32>
    %cst_3 = arith.constant 1.600000e+01 : f32
    %5 = vector.broadcast %cst_3 : f32 to vector<1x128xf32>
    %6 = arith.divf %4, %5 : vector<1x128xf32>
    %c0_4 = arith.constant 0 : index
    %c0_5 = arith.constant 0 : index
    %7 = vector.load %arg1[%c0_4, %c0_5] : memref<1x128xf32, #tpu.memory_space<vmem>>, vector<1x128xf32>
    %8 = arith.addf %6, %7 : vector<1x128xf32>
    %c0_6 = arith.constant 0 : index
    %c0_7 = arith.constant 0 : index
    %9 = vector.load %arg2[%c0_6, %c0_7] : memref<16x128xf32, #tpu.memory_space<vmem>>, vector<16x128xf32>
    %10 = arith.addf %2, %9 : vector<16x128xf32>
    %c0_8 = arith.constant 0 : index
    %c0_9 = arith.constant 0 : index
    %11 = vector.load %arg3[%c0_8, %c0_9] : memref<128x384xf32, #tpu.memory_space<vmem>>, vector<128x384xf32>
    %cst_10 = arith.constant dense<0.000000e+00> : vector<1x384xf32>
    %12 = tpu.matmul %8, %11, %cst_10 {dimension_numbers = #tpu.dot_dimension_numbers<[1], [0], [0], [1], [0, 0, 1, 1], [], []>} : vector<1x128xf32>, vector<128x384xf32>, vector<1x384xf32> -> vector<1x384xf32>
    %c0_11 = arith.constant 0 : index
    %c0_12 = arith.constant 0 : index
    %13 = vector.load %arg4[%c0_11, %c0_12] : memref<1x384xf32, #tpu.memory_space<vmem>>, vector<1x384xf32>
    %14 = arith.addf %12, %13 : vector<1x384xf32>
    %c0_13 = arith.constant 0 : index
    %c0_14 = arith.constant 0 : index
    %15 = vector.load %arg3[%c0_13, %c0_14] : memref<128x384xf32, #tpu.memory_space<vmem>>, vector<128x384xf32>
    %cst_15 = arith.constant dense<0.000000e+00> : vector<16x384xf32>
    %16 = tpu.matmul %10, %15, %cst_15 {dimension_numbers = #tpu.dot_dimension_numbers<[1], [0], [0], [1], [0, 0, 1, 1], [], []>} : vector<16x128xf32>, vector<128x384xf32>, vector<16x384xf32> -> vector<16x384xf32>
    %c0_16 = arith.constant 0 : index
    %c0_17 = arith.constant 0 : index
    %17 = vector.load %arg4[%c0_16, %c0_17] : memref<1x384xf32, #tpu.memory_space<vmem>>, vector<1x384xf32>
    %18 = vector.broadcast %17 : vector<1x384xf32> to vector<16x384xf32>
    %19 = arith.addf %16, %18 : vector<16x384xf32>
    %20 = vector.extract_strided_slice %14 {offsets = [0, 0], sizes = [1, 128], strides = [1, 1]} : vector<1x384xf32> to vector<1x128xf32>
    %cst_18 = arith.constant 2.500000e-01 : f32
    %21 = vector.broadcast %cst_18 : f32 to vector<1x128xf32>
    %22 = arith.mulf %20, %21 : vector<1x128xf32>
    %23 = vector.extract_strided_slice %14 {offsets = [0, 128], sizes = [1, 128], strides = [1, 1]} : vector<1x384xf32> to vector<1x128xf32>
    %24 = vector.extract_strided_slice %14 {offsets = [0, 256], sizes = [1, 128], strides = [1, 1]} : vector<1x384xf32> to vector<1x128xf32>
    %25 = vector.extract_strided_slice %19 {offsets = [0, 128], sizes = [16, 128], strides = [1, 1]} : vector<16x384xf32> to vector<16x128xf32>
    %26 = vector.extract_strided_slice %19 {offsets = [0, 256], sizes = [16, 128], strides = [1, 1]} : vector<16x384xf32> to vector<16x128xf32>
    %27 = arith.mulf %22, %23 : vector<1x128xf32>
    %c0_19 = arith.constant 0 : index
    %c0_20 = arith.constant 0 : index
    %28 = vector.load %arg5[%c0_19, %c0_20] : memref<128x8xf32, #tpu.memory_space<vmem>>, vector<128x8xf32>
    %cst_21 = arith.constant dense<0.000000e+00> : vector<1x8xf32>
    %29 = tpu.matmul %27, %28, %cst_21 {dimension_numbers = #tpu.dot_dimension_numbers<[1], [0], [0], [1], [0, 0, 1, 1], [], []>} : vector<1x128xf32>, vector<128x8xf32>, vector<1x8xf32> -> vector<1x8xf32>
    %30 = vector.broadcast %22 : vector<1x128xf32> to vector<16x128xf32>
    %31 = arith.mulf %30, %25 : vector<16x128xf32>
    %c0_22 = arith.constant 0 : index
    %c0_23 = arith.constant 0 : index
    %32 = vector.load %arg5[%c0_22, %c0_23] : memref<128x8xf32, #tpu.memory_space<vmem>>, vector<128x8xf32>
    %cst_24 = arith.constant dense<0.000000e+00> : vector<16x8xf32>
    %33 = tpu.matmul %31, %32, %cst_24 {dimension_numbers = #tpu.dot_dimension_numbers<[1], [0], [0], [1], [0, 0, 1, 1], [], []>} : vector<16x128xf32>, vector<128x8xf32>, vector<16x8xf32> -> vector<16x8xf32>
    %cst_25 = arith.constant dense<0xFF800000> : vector<8xf32>
    %34 = vector.multi_reduction <maximumf>, %33, %cst_25 [0] : vector<16x8xf32> to vector<8xf32>
    %35 = vector.shape_cast %34 : vector<8xf32> to vector<1x8xf32>
    %36 = arith.maximumf %29, %35 : vector<1x8xf32>
    %37 = arith.subf %29, %36 : vector<1x8xf32>
    %38 = math.exp %37 : vector<1x8xf32>
    %39 = vector.broadcast %36 : vector<1x8xf32> to vector<16x8xf32>
    %40 = arith.subf %33, %39 : vector<16x8xf32>
    %41 = math.exp %40 : vector<16x8xf32>
    %cst_26 = arith.constant dense<0.000000e+00> : vector<8xf32>
    %42 = vector.multi_reduction <add>, %41, %cst_26 [0] : vector<16x8xf32> to vector<8xf32>
    %43 = vector.shape_cast %42 : vector<8xf32> to vector<1x8xf32>
    %44 = arith.addf %38, %43 : vector<1x8xf32>
    %45 = tpu.reciprocal %44 {approx = true} : vector<1x8xf32> -> vector<1x8xf32>
    %46 = arith.mulf %38, %45 : vector<1x8xf32>
    %47 = vector.broadcast %45 : vector<1x8xf32> to vector<16x8xf32>
    %48 = arith.mulf %41, %47 : vector<16x8xf32>
    %c0_27 = arith.constant 0 : index
    %c0_28 = arith.constant 0 : index
    %49 = vector.load %arg6[%c0_27, %c0_28] : memref<8x128xf32, #tpu.memory_space<vmem>>, vector<8x128xf32>
    %cst_29 = arith.constant dense<0.000000e+00> : vector<1x128xf32>
    %50 = tpu.matmul %46, %49, %cst_29 {dimension_numbers = #tpu.dot_dimension_numbers<[1], [0], [0], [1], [0, 0, 1, 1], [], []>} : vector<1x8xf32>, vector<8x128xf32>, vector<1x128xf32> -> vector<1x128xf32>
    %51 = arith.mulf %50, %24 : vector<1x128xf32>
    %c0_30 = arith.constant 0 : index
    %c0_31 = arith.constant 0 : index
    %52 = vector.load %arg6[%c0_30, %c0_31] : memref<8x128xf32, #tpu.memory_space<vmem>>, vector<8x128xf32>
    %cst_32 = arith.constant dense<0.000000e+00> : vector<16x128xf32>
    %53 = tpu.matmul %48, %52, %cst_32 {dimension_numbers = #tpu.dot_dimension_numbers<[1], [0], [0], [1], [0, 0, 1, 1], [], []>} : vector<16x8xf32>, vector<8x128xf32>, vector<16x128xf32> -> vector<16x128xf32>
    %54 = arith.mulf %53, %26 : vector<16x128xf32>
    %cst_33 = arith.constant dense<0.000000e+00> : vector<128xf32>
    %55 = vector.multi_reduction <add>, %54, %cst_33 [0] : vector<16x128xf32> to vector<128xf32>
    %56 = vector.shape_cast %55 : vector<128xf32> to vector<1x128xf32>
    %57 = arith.addf %51, %56 : vector<1x128xf32>
    %c0_34 = arith.constant 0 : index
    %c0_35 = arith.constant 0 : index
    %58 = vector.load %arg7[%c0_34, %c0_35] : memref<128x128xf32, #tpu.memory_space<vmem>>, vector<128x128xf32>
    %cst_36 = arith.constant dense<0.000000e+00> : vector<1x128xf32>
    %59 = tpu.matmul %57, %58, %cst_36 {dimension_numbers = #tpu.dot_dimension_numbers<[1], [0], [0], [1], [0, 0, 1, 1], [], []>} : vector<1x128xf32>, vector<128x128xf32>, vector<1x128xf32> -> vector<1x128xf32>
    %c0_37 = arith.constant 0 : index
    %c0_38 = arith.constant 0 : index
    %60 = vector.load %arg8[%c0_37, %c0_38] : memref<1x128xf32, #tpu.memory_space<vmem>>, vector<1x128xf32>
    %61 = arith.addf %59, %60 : vector<1x128xf32>
    %62 = arith.mulf %61, %61 : vector<1x128xf32>
    %cst_39 = arith.constant dense<0.000000e+00> : vector<1xf32>
    %63 = vector.multi_reduction <add>, %62, %cst_39 [1] : vector<1x128xf32> to vector<1xf32>
    %64 = vector.shape_cast %63 : vector<1xf32> to vector<1x1xf32>
    %65 = math.sqrt %64 : vector<1x1xf32>
    %cst_40 = arith.constant 9.99999996E-13 : f32
    %66 = vector.broadcast %cst_40 : f32 to vector<1x1xf32>
    %67 = arith.maximumf %65, %66 : vector<1x1xf32>
    %68 = tpu.reciprocal %67 {approx = true} : vector<1x1xf32> -> vector<1x1xf32>
    %69 = vector.broadcast %68 : vector<1x1xf32> to vector<1x128xf32>
    %70 = arith.mulf %61, %69 : vector<1x128xf32>
    %c0_41 = arith.constant 0 : index
    %c0_42 = arith.constant 0 : index
    %71 = vector.load %arg9[%c0_41, %c0_42] : memref<128x16xf32, #tpu.memory_space<vmem>>, vector<128x16xf32>
    %cst_43 = arith.constant dense<0.000000e+00> : vector<1x16xf32>
    %72 = tpu.matmul %70, %71, %cst_43 {dimension_numbers = #tpu.dot_dimension_numbers<[1], [0], [0], [1], [0, 0, 1, 1], [], []>} : vector<1x128xf32>, vector<128x16xf32>, vector<1x16xf32> -> vector<1x16xf32>
    %cst_44 = arith.constant 4.605200e+00 : f32
    %73 = vector.broadcast %cst_44 : f32 to vector<1x16xf32>
    %74 = arith.mulf %72, %73 : vector<1x16xf32>
    %c0_45 = arith.constant 0 : index
    %c0_46 = arith.constant 0 : index
    %75 = vector.load %arg11[%c0_45, %c0_46] : memref<2x16xf32, #tpu.memory_space<vmem>>, vector<1x16xf32>
    tpu.vector_store %arg11[%c0_45, %c0_46], %74 {strides = array<i32>} : memref<2x16xf32, #tpu.memory_space<vmem>>, vector<1x16xf32>,
    %cst_47 = arith.constant 14.2857141 : f32
    %76 = vector.broadcast %cst_47 : f32 to vector<1x16xf32>
    %77 = arith.mulf %74, %76 : vector<1x16xf32>
    %cst_48 = arith.constant dense<0xFF800000> : vector<1xf32>
    %78 = vector.multi_reduction <maximumf>, %77, %cst_48 [1] : vector<1x16xf32> to vector<1xf32>
    %79 = vector.shape_cast %78 : vector<1xf32> to vector<1x1xf32>
    %80 = vector.broadcast %79 : vector<1x1xf32> to vector<1x16xf32>
    %81 = arith.subf %77, %80 : vector<1x16xf32>
    %82 = math.exp %81 : vector<1x16xf32>
    %cst_49 = arith.constant dense<0.000000e+00> : vector<1xf32>
    %83 = vector.multi_reduction <add>, %82, %cst_49 [1] : vector<1x16xf32> to vector<1xf32>
    %84 = vector.shape_cast %83 : vector<1xf32> to vector<1x1xf32>
    %85 = math.log %84 : vector<1x1xf32>
    %86 = arith.addf %85, %79 : vector<1x1xf32>
    %87 = tpu.iota {dimensions = array<i32: 1>} : vector<1x16xi32>
    %c0_50 = arith.constant 0 : index
    %88 = memref.load %arg10[%c0_50] : memref<2xi32, #tpu.memory_space<smem>>
    %89 = vector.broadcast %88 : i32 to vector<1x16xi32>
    %90 = arith.cmpi eq, %87, %89 : vector<1x16xi32>
    %cst_51 = arith.constant 0.000000e+00 : f32
    %91 = vector.broadcast %cst_51 : f32 to vector<1x16xf32>
    %92 = arith.select %90, %77, %91 : vector<1x16xi1>, vector<1x16xf32>
    %cst_52 = arith.constant dense<0.000000e+00> : vector<1xf32>
    %93 = vector.multi_reduction <add>, %92, %cst_52 [1] : vector<1x16xf32> to vector<1xf32>
    %94 = vector.shape_cast %93 : vector<1xf32> to vector<1x1xf32>
    %95 = arith.subf %86, %94 : vector<1x1xf32>
    %96 = arith.addf %0, %95 : vector<1x1xf32>
    %c1 = arith.constant 1 : index
    %c0_53 = arith.constant 0 : index
    %c0_54 = arith.constant 0 : index
    %97 = vector.load %arg0[%c1, %c0_53, %c0_54] : memref<2x16x128xf32, #tpu.memory_space<vmem>>, vector<1x16x128xf32>
    %98 = vector.shape_cast %97 : vector<1x16x128xf32> to vector<16x128xf32>
    %cst_55 = arith.constant dense<0.000000e+00> : vector<128xf32>
    %99 = vector.multi_reduction <add>, %98, %cst_55 [0] : vector<16x128xf32> to vector<128xf32>
    %100 = vector.shape_cast %99 : vector<128xf32> to vector<1x128xf32>
    %cst_56 = arith.constant 1.600000e+01 : f32
    %101 = vector.broadcast %cst_56 : f32 to vector<1x128xf32>
    %102 = arith.divf %100, %101 : vector<1x128xf32>
    %c0_57 = arith.constant 0 : index
    %c0_58 = arith.constant 0 : index
    %103 = vector.load %arg1[%c0_57, %c0_58] : memref<1x128xf32, #tpu.memory_space<vmem>>, vector<1x128xf32>
    %104 = arith.addf %102, %103 : vector<1x128xf32>
    %c0_59 = arith.constant 0 : index
    %c0_60 = arith.constant 0 : index
    %105 = vector.load %arg2[%c0_59, %c0_60] : memref<16x128xf32, #tpu.memory_space<vmem>>, vector<16x128xf32>
    %106 = arith.addf %98, %105 : vector<16x128xf32>
    %c0_61 = arith.constant 0 : index
    %c0_62 = arith.constant 0 : index
    %107 = vector.load %arg3[%c0_61, %c0_62] : memref<128x384xf32, #tpu.memory_space<vmem>>, vector<128x384xf32>
    %cst_63 = arith.constant dense<0.000000e+00> : vector<1x384xf32>
    %108 = tpu.matmul %104, %107, %cst_63 {dimension_numbers = #tpu.dot_dimension_numbers<[1], [0], [0], [1], [0, 0, 1, 1], [], []>} : vector<1x128xf32>, vector<128x384xf32>, vector<1x384xf32> -> vector<1x384xf32>
    %c0_64 = arith.constant 0 : index
    %c0_65 = arith.constant 0 : index
    %109 = vector.load %arg4[%c0_64, %c0_65] : memref<1x384xf32, #tpu.memory_space<vmem>>, vector<1x384xf32>
    %110 = arith.addf %108, %109 : vector<1x384xf32>
    %c0_66 = arith.constant 0 : index
    %c0_67 = arith.constant 0 : index
    %111 = vector.load %arg3[%c0_66, %c0_67] : memref<128x384xf32, #tpu.memory_space<vmem>>, vector<128x384xf32>
    %cst_68 = arith.constant dense<0.000000e+00> : vector<16x384xf32>
    %112 = tpu.matmul %106, %111, %cst_68 {dimension_numbers = #tpu.dot_dimension_numbers<[1], [0], [0], [1], [0, 0, 1, 1], [], []>} : vector<16x128xf32>, vector<128x384xf32>, vector<16x384xf32> -> vector<16x384xf32>
    %c0_69 = arith.constant 0 : index
    %c0_70 = arith.constant 0 : index
    %113 = vector.load %arg4[%c0_69, %c0_70] : memref<1x384xf32, #tpu.memory_space<vmem>>, vector<1x384xf32>
    %114 = vector.broadcast %113 : vector<1x384xf32> to vector<16x384xf32>
    %115 = arith.addf %112, %114 : vector<16x384xf32>
    %116 = vector.extract_strided_slice %110 {offsets = [0, 0], sizes = [1, 128], strides = [1, 1]} : vector<1x384xf32> to vector<1x128xf32>
    %cst_71 = arith.constant 2.500000e-01 : f32
    %117 = vector.broadcast %cst_71 : f32 to vector<1x128xf32>
    %118 = arith.mulf %116, %117 : vector<1x128xf32>
    %119 = vector.extract_strided_slice %110 {offsets = [0, 128], sizes = [1, 128], strides = [1, 1]} : vector<1x384xf32> to vector<1x128xf32>
    %120 = vector.extract_strided_slice %110 {offsets = [0, 256], sizes = [1, 128], strides = [1, 1]} : vector<1x384xf32> to vector<1x128xf32>
    %121 = vector.extract_strided_slice %115 {offsets = [0, 128], sizes = [16, 128], strides = [1, 1]} : vector<16x384xf32> to vector<16x128xf32>
    %122 = vector.extract_strided_slice %115 {offsets = [0, 256], sizes = [16, 128], strides = [1, 1]} : vector<16x384xf32> to vector<16x128xf32>
    %123 = arith.mulf %118, %119 : vector<1x128xf32>
    %c0_72 = arith.constant 0 : index
    %c0_73 = arith.constant 0 : index
    %124 = vector.load %arg5[%c0_72, %c0_73] : memref<128x8xf32, #tpu.memory_space<vmem>>, vector<128x8xf32>
    %cst_74 = arith.constant dense<0.000000e+00> : vector<1x8xf32>
    %125 = tpu.matmul %123, %124, %cst_74 {dimension_numbers = #tpu.dot_dimension_numbers<[1], [0], [0], [1], [0, 0, 1, 1], [], []>} : vector<1x128xf32>, vector<128x8xf32>, vector<1x8xf32> -> vector<1x8xf32>
    %126 = vector.broadcast %118 : vector<1x128xf32> to vector<16x128xf32>
    %127 = arith.mulf %126, %121 : vector<16x128xf32>
    %c0_75 = arith.constant 0 : index
    %c0_76 = arith.constant 0 : index
    %128 = vector.load %arg5[%c0_75, %c0_76] : memref<128x8xf32, #tpu.memory_space<vmem>>, vector<128x8xf32>
    %cst_77 = arith.constant dense<0.000000e+00> : vector<16x8xf32>
    %129 = tpu.matmul %127, %128, %cst_77 {dimension_numbers = #tpu.dot_dimension_numbers<[1], [0], [0], [1], [0, 0, 1, 1], [], []>} : vector<16x128xf32>, vector<128x8xf32>, vector<16x8xf32> -> vector<16x8xf32>
    %cst_78 = arith.constant dense<0xFF800000> : vector<8xf32>
    %130 = vector.multi_reduction <maximumf>, %129, %cst_78 [0] : vector<16x8xf32> to vector<8xf32>
    %131 = vector.shape_cast %130 : vector<8xf32> to vector<1x8xf32>
    %132 = arith.maximumf %125, %131 : vector<1x8xf32>
    %133 = arith.subf %125, %132 : vector<1x8xf32>
    %134 = math.exp %133 : vector<1x8xf32>
    %135 = vector.broadcast %132 : vector<1x8xf32> to vector<16x8xf32>
    %136 = arith.subf %129, %135 : vector<16x8xf32>
    %137 = math.exp %136 : vector<16x8xf32>
    %cst_79 = arith.constant dense<0.000000e+00> : vector<8xf32>
    %138 = vector.multi_reduction <add>, %137, %cst_79 [0] : vector<16x8xf32> to vector<8xf32>
    %139 = vector.shape_cast %138 : vector<8xf32> to vector<1x8xf32>
    %140 = arith.addf %134, %139 : vector<1x8xf32>
    %141 = tpu.reciprocal %140 {approx = true} : vector<1x8xf32> -> vector<1x8xf32>
    %142 = arith.mulf %134, %141 : vector<1x8xf32>
    %143 = vector.broadcast %141 : vector<1x8xf32> to vector<16x8xf32>
    %144 = arith.mulf %137, %143 : vector<16x8xf32>
    %c0_80 = arith.constant 0 : index
    %c0_81 = arith.constant 0 : index
    %145 = vector.load %arg6[%c0_80, %c0_81] : memref<8x128xf32, #tpu.memory_space<vmem>>, vector<8x128xf32>
    %cst_82 = arith.constant dense<0.000000e+00> : vector<1x128xf32>
    %146 = tpu.matmul %142, %145, %cst_82 {dimension_numbers = #tpu.dot_dimension_numbers<[1], [0], [0], [1], [0, 0, 1, 1], [], []>} : vector<1x8xf32>, vector<8x128xf32>, vector<1x128xf32> -> vector<1x128xf32>
    %147 = arith.mulf %146, %120 : vector<1x128xf32>
    %c0_83 = arith.constant 0 : index
    %c0_84 = arith.constant 0 : index
    %148 = vector.load %arg6[%c0_83, %c0_84] : memref<8x128xf32, #tpu.memory_space<vmem>>, vector<8x128xf32>
    %cst_85 = arith.constant dense<0.000000e+00> : vector<16x128xf32>
    %149 = tpu.matmul %144, %148, %cst_85 {dimension_numbers = #tpu.dot_dimension_numbers<[1], [0], [0], [1], [0, 0, 1, 1], [], []>} : vector<16x8xf32>, vector<8x128xf32>, vector<16x128xf32> -> vector<16x128xf32>
    %150 = arith.mulf %149, %122 : vector<16x128xf32>
    %cst_86 = arith.constant dense<0.000000e+00> : vector<128xf32>
    %151 = vector.multi_reduction <add>, %150, %cst_86 [0] : vector<16x128xf32> to vector<128xf32>
    %152 = vector.shape_cast %151 : vector<128xf32> to vector<1x128xf32>
    %153 = arith.addf %147, %152 : vector<1x128xf32>
    %c0_87 = arith.constant 0 : index
    %c0_88 = arith.constant 0 : index
    %154 = vector.load %arg7[%c0_87, %c0_88] : memref<128x128xf32, #tpu.memory_space<vmem>>, vector<128x128xf32>
    %cst_89 = arith.constant dense<0.000000e+00> : vector<1x128xf32>
    %155 = tpu.matmul %153, %154, %cst_89 {dimension_numbers = #tpu.dot_dimension_numbers<[1], [0], [0], [1], [0, 0, 1, 1], [], []>} : vector<1x128xf32>, vector<128x128xf32>, vector<1x128xf32> -> vector<1x128xf32>
    %c0_90 = arith.constant 0 : index
    %c0_91 = arith.constant 0 : index
    %156 = vector.load %arg8[%c0_90, %c0_91] : memref<1x128xf32, #tpu.memory_space<vmem>>, vector<1x128xf32>
    %157 = arith.addf %155, %156 : vector<1x128xf32>
    %158 = arith.mulf %157, %157 : vector<1x128xf32>
    %cst_92 = arith.constant dense<0.000000e+00> : vector<1xf32>
    %159 = vector.multi_reduction <add>, %158, %cst_92 [1] : vector<1x128xf32> to vector<1xf32>
    %160 = vector.shape_cast %159 : vector<1xf32> to vector<1x1xf32>
    %161 = math.sqrt %160 : vector<1x1xf32>
    %cst_93 = arith.constant 9.99999996E-13 : f32
    %162 = vector.broadcast %cst_93 : f32 to vector<1x1xf32>
    %163 = arith.maximumf %161, %162 : vector<1x1xf32>
    %164 = tpu.reciprocal %163 {approx = true} : vector<1x1xf32> -> vector<1x1xf32>
    %165 = vector.broadcast %164 : vector<1x1xf32> to vector<1x128xf32>
    %166 = arith.mulf %157, %165 : vector<1x128xf32>
    %c0_94 = arith.constant 0 : index
    %c0_95 = arith.constant 0 : index
    %167 = vector.load %arg9[%c0_94, %c0_95] : memref<128x16xf32, #tpu.memory_space<vmem>>, vector<128x16xf32>
    %cst_96 = arith.constant dense<0.000000e+00> : vector<1x16xf32>
    %168 = tpu.matmul %166, %167, %cst_96 {dimension_numbers = #tpu.dot_dimension_numbers<[1], [0], [0], [1], [0, 0, 1, 1], [], []>} : vector<1x128xf32>, vector<128x16xf32>, vector<1x16xf32> -> vector<1x16xf32>
    %cst_97 = arith.constant 4.605200e+00 : f32
    %169 = vector.broadcast %cst_97 : f32 to vector<1x16xf32>
    %170 = arith.mulf %168, %169 : vector<1x16xf32>
    %c1_98 = arith.constant 1 : index
    %c0_99 = arith.constant 0 : index
    %171 = vector.load %arg11[%c1_98, %c0_99] : memref<2x16xf32, #tpu.memory_space<vmem>>, vector<1x16xf32>
    tpu.vector_store %arg11[%c1_98, %c0_99], %170 {strides = array<i32>} : memref<2x16xf32, #tpu.memory_space<vmem>>, vector<1x16xf32>,
    %cst_100 = arith.constant 14.2857141 : f32
    %172 = vector.broadcast %cst_100 : f32 to vector<1x16xf32>
    %173 = arith.mulf %170, %172 : vector<1x16xf32>
    %cst_101 = arith.constant dense<0xFF800000> : vector<1xf32>
    %174 = vector.multi_reduction <maximumf>, %173, %cst_101 [1] : vector<1x16xf32> to vector<1xf32>
    %175 = vector.shape_cast %174 : vector<1xf32> to vector<1x1xf32>
    %176 = vector.broadcast %175 : vector<1x1xf32> to vector<1x16xf32>
    %177 = arith.subf %173, %176 : vector<1x16xf32>
    %178 = math.exp %177 : vector<1x16xf32>
    %cst_102 = arith.constant dense<0.000000e+00> : vector<1xf32>
    %179 = vector.multi_reduction <add>, %178, %cst_102 [1] : vector<1x16xf32> to vector<1xf32>
    %180 = vector.shape_cast %179 : vector<1xf32> to vector<1x1xf32>
    %181 = math.log %180 : vector<1x1xf32>
    %182 = arith.addf %181, %175 : vector<1x1xf32>
    %183 = tpu.iota {dimensions = array<i32: 1>} : vector<1x16xi32>
    %c1_103 = arith.constant 1 : index
    %184 = memref.load %arg10[%c1_103] : memref<2xi32, #tpu.memory_space<smem>>
    %185 = vector.broadcast %184 : i32 to vector<1x16xi32>
    %186 = arith.cmpi eq, %183, %185 : vector<1x16xi32>
    %cst_104 = arith.constant 0.000000e+00 : f32
    %187 = vector.broadcast %cst_104 : f32 to vector<1x16xf32>
    %188 = arith.select %186, %173, %187 : vector<1x16xi1>, vector<1x16xf32>
    %cst_105 = arith.constant dense<0.000000e+00> : vector<1xf32>
    %189 = vector.multi_reduction <add>, %188, %cst_105 [1] : vector<1x16xf32> to vector<1xf32>
    %190 = vector.shape_cast %189 : vector<1xf32> to vector<1x1xf32>
    %191 = arith.subf %182, %190 : vector<1x1xf32>
    %192 = arith.addf %96, %191 : vector<1x1xf32>
    %cst_106 = arith.constant 5.000000e-01 : f32
    %193 = vector.broadcast %cst_106 : f32 to vector<1x1xf32>
    %194 = arith.mulf %192, %193 : vector<1x1xf32>
    %c0_107 = arith.constant 0 : index
    %c0_108 = arith.constant 0 : index
    %195 = vector.load %arg12[%c0_107, %c0_108] : memref<1x1xf32, #tpu.memory_space<vmem>>, vector<1x1xf32>
    tpu.vector_store %arg12[%c0_107, %c0_108], %194 {strides = array<i32>} : memref<1x1xf32, #tpu.memory_space<vmem>>, vector<1x1xf32>,
    return
  }
}

</mosaic_0001>

<bundles_post_ra>
// kernel: _lambda_.3
= control target key start
LH: loop header
LB: loop body
LE: loop exit
PB: predicated region body
PF: predicated region fallthrough
CT: control target
= control target key end

     0   :  { %18 = vsyncpa [#allocation4], 0  ;;  %s4080_s0 = inlined_call_operand.vmem [shape: f32[2,16,128], index: 0, kind: input, shape index: {}]   ;;  %s4081_s1 = inlined_call_operand.vmem [shape: f32[1,128], index: 1, kind: input, shape index: {}]   ;;  %s4082_s2 = inlined_call_operand.vmem [shape: f32[16,128], index: 2, kind: input, shape index: {}]   ;;  %s4083_s3 = inlined_call_operand.vmem [shape: f32[128,384], index: 3, kind: input, shape index: {}]   ;;  %s4084_s4 = inlined_call_operand.vmem [shape: f32[1,384], index: 4, kind: input, shape index: {}]   ;;  %s4085_s5 = inlined_call_operand.vmem [shape: f32[128,8], index: 5, kind: input, shape index: {}]   ;;  %s4086_s6 = inlined_call_operand.vmem [shape: f32[8,128], index: 6, kind: input, shape index: {}]   ;;  %s4087_s7 = inlined_call_operand.vmem [shape: f32[128,128], index: 7, kind: input, shape index: {}]   ;;  %s4088_s8 = inlined_call_operand.vmem [shape: f32[1,128], index: 8, kind: input, shape index: {}]   ;;  %s4089_s9 = inlined_call_operand.vmem [shape: f32[128,16], index: 9, kind: input, shape index: {}]   ;;  %s4090_s10 = inlined_call_operand.vmem [shape: s32[2], index: 10, kind: input, shape index: {}]   ;;  %s4091_s11 = inlined_call_operand.hbm [shape: f32[2,16], index: 11, kind: output, shape index: {0}]   ;;  %s4092_s12 = inlined_call_operand.hbm [shape: f32[1,1], index: 12, kind: output, shape index: {1}]  }
   0x1   :  { %19 = vsyncpa [#allocation3], 0 }
   0x2   :  { %20 = vsyncpa [#allocation7], 0  ;;  %s47_s23 = sshll.u32 %s4090_s10, 4  ;;  %s48_s23 = int_to_ptr.vmem [resolvable:$true] %s47_s23 }
   0x3   :  { %s2741_s24 = scalar_lea.vmem %s48_s23, 16  ;;  %p2746_p1 = scmp.lt.s32.totalorder %s48_s23, %s48_s23 }
   0x4   :  { %p2742_p0 = scmp.ne.s32.totalorder %s48_s23, %s2741_s24  ;;  %p2747_p2 = scmp.lt.s32.totalorder %s2741_s24, %s2741_s24 }
   0x6   :  { %p2748_p3 = por %p2747_p2, %p2746_p1 }
   0x8   :  { %p2749_p4 = pnand %p2748_p3, %p2742_p0 }
   0xa   :  { %2752 = shalt.err (!%p2749_p4)
}
   0xb   :  { %s2799_s25 = smov [#allocation2]  }
   0xc   :  { %50 = dma.vmem_to_smem %s48_s23, 16, %s2799_s25, [#allocation4]  }
   0xd   :  { %2793 = dma.done.wait [#allocation4], 16  }
   0xe   :  { %2794 = vsyncadd [#allocation4], 4294967280 }
   0xf   :  { %54 = sfence }
  0x10   :  { %v2875_v0 = vld [vmem:[%s4083_s3 + $0x170] sm:$0xff]  ;;  %v2880_v1 = vld [vmem:[%s4083_s3 + $0x168] sm:$0xff]  ;;  %v2885_v2 = vld [vmem:[%s4083_s3 + $0x158] sm:$0xff]  ;;  %v4109_v4 = vmov 0.0   ;;  %vm2801_vm0 = vmmov 0   ;;  %vm597_vm1 = vcmask 64512  }
  0x11   :  { %137 = vmatprep.subr.mxu0 %v2875_v0  ;;  %v2891_v3 = vld [vmem:[%s4083_s3 + $0x150] sm:$0xff]  ;;  %201 = vmatprep.mubr.f32.mxu0 %v4109_v4  ;;  %v2898_v5 = vld [vmem:[%s4083_s3 + $0x140] sm:$0xff]  ;;  %v2905_v6 = vld [vmem:[%s4083_s3 + $0x138] sm:$0xff]  ;;  %vm893_vm2 = vcmask 1040384   ;;  %vm994_vm5 = vcmask 122880   ;;  %s2802_s17 = smov [#allocation5]  }
  0x12   :  { %138 = vmatpush1.msra.mxu0 %v2880_v1  ;;  %2239 = vmatprep.subr.mxu1 %v4109_v4  ;;  %v2913_v7 = vld [vmem:[%s4083_s3 + $0x128] sm:$0xff]  ;;  %v2919_v8 = vld [vmem:[%s4083_s3 + $0x120] sm:$0xff]  ;;  %v2925_v9 = vld [vmem:[%s4083_s3 + $0x110] sm:$0xff] }
  0x13   :  { %139 = vmatprep.subr.mxu0 %v2885_v2  ;;  %2271 = vmatprep.mubr.msk.f32.mxu1 %vm2801_vm0, %v4109_v4  ;;  %v2931_v10 = vld [vmem:[%s4083_s3 + $0x108] sm:$0xff]  ;;  %v2937_v11 = vld [vmem:[%s4083_s3 + $0xf8] sm:$0xff]  ;;  %v2943_v12 = vld [vmem:[%s4083_s3 + $0xf0] sm:$0xff] }
  0x14   :  { %140 = vmatpush1.msra.mxu0 %v2891_v3  ;;  %v2949_v13 = vld [vmem:[%s4083_s3 + $0xe0] sm:$0xff]  ;;  %v2960_v15 = vld [vmem:[%s4083_s3 + $0xd8] sm:$0xff]  ;;  %v2965_v16 = vld [vmem:[%s4080_s0 + $0x8] sm:$0xff] }
  0x15   :  { %141 = vmatprep.subr.mxu0 %v2898_v5  ;;  %v2954_v14 = vld [vmem:[%s4080_s0] sm:$0xff]  ;;  %v2971_v17 = vld [vmem:[%s4083_s3 + $0xc8] sm:$0xff]  ;;  %v2978_v19 = vld [vmem:[%s4083_s3 + $0x178] sm:$0xff] }
  0x16   :  { %142 = vmatpush1.msra.mxu0 %v2905_v6  ;;  %v57_v18 = vadd.f32 %v2965_v16, %v2954_v14  ;;  %v2983_v20 = vld [vmem:[%s4083_s3 + $0x160] sm:$0xff]  ;;  %2240 = vmatpush3.msra.mxu1 %v2978_v19  ;;  %v2996_v22 = vld [vmem:[%s4083_s3 + $0xb0] sm:$0xff]  ;;  %v3002_v24 = vld [vmem:[%s4083_s3 + $0x148] sm:$0xff] }
  0x17   :  { %143 = vmatprep.subr.mxu0 %v2913_v7  ;;  %v2989_v21 = vld [vmem:[%s4083_s3 + $0xc0] sm:$0xff]  ;;  %2241 = vmatprep.subr.mxu1 %v4109_v4  ;;  %v3008_v25 = vld [vmem:[%s4083_s3 + $0xa8] sm:$0xff]  ;;  %v3015_v26 = vld [vmem:[%s4083_s3 + $0x98] sm:$0xff] }
  0x18   :  { %144 = vmatpush1.msra.mxu0 %v2919_v8  ;;  %v58_v23 = vrot.slane %v57_v18, 4  ;;  %2242 = vmatpush3.msra.mxu1 %v2983_v20  ;;  %v3021_v28 = vld [vmem:[%s4083_s3 + $0x130] sm:$0xff]  ;;  %v3034_v30 = vld [vmem:[%s4083_s3 + $0x80] sm:$0xff]  ;;  %v3040_v32 = vld [vmem:[%s4083_s3 + $0x118] sm:$0xff] }
  0x19   :  { %145 = vmatprep.subr.mxu0 %v2925_v9  ;;  %2243 = vmatprep.subr.mxu1 %v4109_v4  ;;  %v3027_v29 = vld [vmem:[%s4083_s3 + $0x90] sm:$0xff]  ;;  %v3046_v33 = vld [vmem:[%s4083_s3 + $0x78] sm:$0xff]  ;;  %v3053_v34 = vld [vmem:[%s4083_s3 + $0x68] sm:$0xff] }
  0x1a   :  { %146 = vmatpush1.msra.mxu0 %v2931_v10  ;;  %v59_v27 = vadd.f32 %v58_v23, %v57_v18  ;;  %2244 = vmatpush3.msra.mxu1 %v3002_v24  ;;  %v3059_v36 = vld [vmem:[%s4083_s3 + $0x100] sm:$0xff]  ;;  %v3072_v38 = vld [vmem:[%s4083_s3 + $0x50] sm:$0xff]  ;;  %v3078_v40 = vld [vmem:[%s4083_s3 + $0xe8] sm:$0xff] }
  0x1b   :  { %147 = vmatprep.subr.mxu0 %v2937_v11  ;;  %2245 = vmatprep.subr.mxu1 %v4109_v4  ;;  %v3065_v37 = vld [vmem:[%s4083_s3 + $0x60] sm:$0xff]  ;;  %v3084_v41 = vld [vmem:[%s4083_s3 + $0x48] sm:$0xff]  ;;  %v3091_v42 = vld [vmem:[%s4083_s3 + $0x38] sm:$0xff] }
  0x1c   :  { %148 = vmatpush1.msra.mxu0 %v2943_v12  ;;  %v60_v31 = vrot.slane %v59_v27, 2  ;;  %2246 = vmatpush3.msra.mxu1 %v3021_v28  ;;  %v3097_v44 = vld [vmem:[%s4083_s3 + $0xd0] sm:$0xff]  ;;  %v3110_v46 = vld [vmem:[%s4083_s3 + $0x20] sm:$0xff]  ;;  %v3119_v49 = vld [vmem:[%s4083_s3 + $0xb8] sm:$0xff] }
  0x1d   :  { %149 = vmatprep.subr.mxu0 %v2949_v13  ;;  %2247 = vmatprep.subr.mxu1 %v4109_v4  ;;  %v3103_v45 = vld [vmem:[%s4083_s3 + $0x30] sm:$0xff]  ;;  %v66_v48 = vld [vmem:[%s4081_s1] sm:$0x1]  ;;  %v3125_v50 = vld [vmem:[%s4083_s3 + $0x18] sm:$0xff] }
  0x1e   :  { %150 = vmatpush1.msra.mxu0 %v2960_v15  ;;  %v61_v35 = vadd.f32 %v60_v31, %v59_v27  ;;  %2248 = vmatpush3.msra.mxu1 %v3040_v32  ;;  %v3132_v51 = vld [vmem:[%s4083_s3 + $0x8] sm:$0xff]  ;;  %v3138_v52 = vld [vmem:[%s4083_s3 + $0xa0] sm:$0xff]  ;;  %v3164_v56 = vld [vmem:[%s4083_s3 + $0x70] sm:$0xff] }
  0x1f   :  { %151 = vmatprep.subr.mxu0 %v2971_v17  ;;  %2249 = vmatprep.subr.mxu1 %v4109_v4  ;;  %v3144_v53 = vld [vmem:[%s4083_s3] sm:$0xff]  ;;  %v3156_v55 = vld [vmem:[%s4083_s3 + $0x88] sm:$0xff]  ;;  %v3173_v57 = vld [vmem:[%s4083_s3 + $0x58] sm:$0xff] }
  0x20   :  { %152 = vmatpush1.msra.mxu0 %v2989_v21  ;;  %v62_v39 = vrot.slane %v61_v35, 1  ;;  %2250 = vmatpush3.msra.mxu1 %v3059_v36  ;;  %v3182_v58 = vld [vmem:[%s4083_s3 + $0x40] sm:$0xff]  ;;  %v3191_v59 = vld [vmem:[%s4083_s3 + $0x28] sm:$0xff]  ;;  %v3200_v60 = vld [vmem:[%s4083_s3 + $0x10] sm:$0xff] }
  0x21   :  { %153 = vmatprep.subr.mxu0 %v2996_v22  ;;  %2251 = vmatprep.subr.mxu1 %v4109_v4  ;;  %v3235_v61 = vld [vmem:[%s4082_s2] sm:$0xff]  ;;  %v3250_v63 = vld [vmem:[%s4082_s2 + $0x8] sm:$0xff]  ;;  %v3257_v18 = vld [vmem:[%s4085_s5 + $0x78] sm:$0xff] }
  0x22   :  { %154 = vmatpush1.msra.mxu0 %v3008_v25  ;;  %v63_v43 = vadd.f32 %v62_v39, %v61_v35  ;;  %2252 = vmatpush3.msra.mxu1 %v3078_v40  ;;  %v70_v62 = vadd.f32 %v3235_v61, %v2954_v14  ;;  %v71_v14 = vadd.f32 %v3250_v63, %v2965_v16  ;;  %v3285_v16 = vld [vmem:[%s4085_s5 + $0x60] sm:$0xff]  ;;  %v3293_v23 = vld [vmem:[%s4085_s5 + $0x58] sm:$0xff]  ;;  %v3311_v27 = vld [vmem:[%s4085_s5 + $0x48] sm:$0xff] }
  0x23   :  { %155 = vmatprep.subr.mxu0 %v3015_v26  ;;  %2253 = vmatprep.subr.mxu1 %v4109_v4  ;;  %4136 = vst [vmem:[#allocation12_spill] sm:$0xff] %v3285_v16  ;;  %4137 = vst [vmem:[#allocation13_spill] sm:$0xff] %v3293_v23  ;;  %v3329_v31 = vld [vmem:[%s4085_s5 + $0x38] sm:$0xff]  ;;  %v3348_v35 = vld [vmem:[%s4085_s5 + $0x28] sm:$0xff] }
  0x24   :  { %156 = vmatpush1.msra.mxu0 %v3027_v29  ;;  %v65_v47 = vmul.f32 0.0625, %v63_v43  ;;  %2254 = vmatpush3.msra.mxu1 %v3097_v44  ;;  %4139 = vst [vmem:[#allocation15_spill] sm:$0xff] %v3311_v27  ;;  %4141 = vst [vmem:[#allocation17_spill] sm:$0xff] %v3329_v31  ;;  %v3375_v39 = vld [vmem:[%s4085_s5 + $0x18] sm:$0xff]  ;;  %v3393_v43 = vld [vmem:[%s4085_s5 + $0x8] sm:$0xff] }
  0x25   :  { %157 = vmatprep.subr.mxu0 %v3034_v30  ;;  %2255 = vmatprep.subr.mxu1 %v4109_v4  ;;  %4143 = vst [vmem:[#allocation19_spill] sm:$0xff] %v3348_v35  ;;  %4145 = vst [vmem:[#allocation21_spill] sm:$0xff] %v3375_v39 }
  0x26   :  { %158 = vmatpush1.msra.mxu0 %v3046_v33  ;;  %v67_v54 = vadd.f32 %v66_v48, %v65_v47  ;;  %2256 = vmatpush3.msra.mxu1 %v3119_v49  ;;  %4147 = vst [vmem:[#allocation23_spill] sm:$0xff] %v3393_v43  ;;  %v4093_v47 = vlaneseq }
  0x27   :  { %159 = vmatprep.subr.mxu0 %v3053_v34  ;;  %2257 = vmatprep.subr.mxu1 %v4109_v4 }
  0x28   :  { %160 = vmatpush1.msra.mxu0 %v3065_v37  ;;  %2258 = vmatpush3.msra.mxu1 %v3138_v52  ;;  %v3422_v48 = vshrl.u32 %v4093_v47, 7 }
  0x29   :  { %161 = vmatprep.subr.mxu0 %v3072_v38  ;;  %2259 = vmatprep.subr.mxu1 %v4109_v4 }
  0x2a   :  { %162 = vmatpush1.msra.mxu0 %v3084_v41  ;;  %2260 = vmatpush3.msra.mxu1 %v3156_v55 }
  0x2b   :  { %163 = vmatprep.subr.mxu0 %v3091_v42  ;;  %2261 = vmatprep.subr.mxu1 %v4109_v4 }
  0x2c   :  { %164 = vmatpush1.msra.mxu0 %v3103_v45  ;;  %2262 = vmatpush3.msra.mxu1 %v3164_v56 }
  0x2d   :  { %165 = vmatprep.subr.mxu0 %v3110_v46  ;;  %2263 = vmatprep.subr.mxu1 %v4109_v4 }
  0x2e   :  { %166 = vmatpush1.msra.mxu0 %v3125_v50  ;;  %2264 = vmatpush3.msra.mxu1 %v3173_v57 }
  0x2f   :  { %167 = vmatprep.subr.mxu0 %v3132_v51  ;;  %2265 = vmatprep.subr.mxu1 %v4109_v4 }
  0x30   :  { %168 = vmatpush1.msra.mxu0 %v3144_v53  ;;  %2266 = vmatpush3.msra.mxu1 %v3182_v58 }
  0x31   :  { %202 = vmatmul.mubr.f32.vlgmr.msra.gmra.mxu0 %v67_v54  ;;  %278 = vmatprep.subr.mxu0 %v2875_v0 }
  0x32   :  { %279 = vmatpush1.msra.mxu0 %v2880_v1  ;;  %342 = vmatprep.mubr.f32.mxu0 %v4109_v4 }
  0x33   :  { %280 = vmatprep.subr.mxu0 %v2885_v2  ;;  %2267 = vmatprep.subr.mxu1 %v4109_v4 }
  0x34   :  { %281 = vmatpush1.msra.mxu0 %v2891_v3  ;;  %2268 = vmatpush3.msra.mxu1 %v3191_v59 }
  0x35   :  { %282 = vmatprep.subr.mxu0 %v2898_v5  ;;  %2269 = vmatprep.subr.mxu1 %v4109_v4 }
  0x36   :  { %283 = vmatpush1.msra.mxu0 %v2905_v6  ;;  %2270 = vmatpush3.msra.mxu1 %v3200_v60 }
  0x37   :  { %284 = vmatprep.subr.mxu0 %v2913_v7  ;;  %2272 = vmatmul.mubr.f32.vlgmr.msra.gmra.mxu1 %v67_v54  ;;  %v4106_v54 = vsub.s32 1, %v3422_v48 }
  0x38   :  { %285 = vmatpush1.msra.mxu0 %v2919_v8  ;;  %2274 = vmatprep.subr.mxu1 %v2978_v19 }
  0x39   :  { %286 = vmatprep.subr.mxu0 %v2925_v9  ;;  %2275 = vmatpush3.msra.mxu1 %v2978_v19  ;;  %v3268_v19 = vld [vmem:[%s4085_s5 + $0x70] sm:$0xff] }
  0x3a   :  { %287 = vmatpush1.msra.mxu0 %v2931_v10  ;;  %2276 = vmatprep.subr.mxu1 %v2983_v20 }
  0x3b   :  { %288 = vmatprep.subr.mxu0 %v2937_v11  ;;  %2277 = vmatpush3.msra.mxu1 %v2983_v20  ;;  %v3276_v20 = vld [vmem:[%s4085_s5 + $0x68] sm:$0xff] }
  0x3c   :  { %289 = vmatpush1.msra.mxu0 %v2943_v12  ;;  %2278 = vmatprep.subr.mxu1 %v3002_v24  ;;  %4135 = vst [vmem:[#allocation11_spill] sm:$0xff] %v3276_v20 }
  0x3d   :  { %290 = vmatprep.subr.mxu0 %v2949_v13  ;;  %2279 = vmatpush3.msra.mxu1 %v3002_v24  ;;  %v3302_v24 = vld [vmem:[%s4085_s5 + $0x50] sm:$0xff] }
  0x3e   :  { %291 = vmatpush1.msra.mxu0 %v2960_v15  ;;  %2280 = vmatprep.subr.mxu1 %v3021_v28  ;;  %4138 = vst [vmem:[#allocation14_spill] sm:$0xff] %v3302_v24 }
  0x3f   :  { %292 = vmatprep.subr.mxu0 %v2971_v17  ;;  %2281 = vmatpush3.msra.mxu1 %v3021_v28  ;;  %v3320_v28 = vld [vmem:[%s4085_s5 + $0x40] sm:$0xff] }
  0x40   :  { %293 = vmatpush1.msra.mxu0 %v2989_v21  ;;  %2282 = vmatprep.subr.mxu1 %v3040_v32  ;;  %4140 = vst [vmem:[#allocation16_spill] sm:$0xff] %v3320_v28 }
  0x41   :  { %294 = vmatprep.subr.mxu0 %v2996_v22  ;;  %2283 = vmatpush3.msra.mxu1 %v3040_v32  ;;  %v3339_v32 = vld [vmem:[%s4085_s5 + $0x30] sm:$0xff] }
  0x42   :  { %295 = vmatpush1.msra.mxu0 %v3008_v25  ;;  %2284 = vmatprep.subr.mxu1 %v3059_v36  ;;  %4142 = vst [vmem:[#allocation18_spill] sm:$0xff] %v3339_v32 }
  0x43   :  { %296 = vmatprep.subr.mxu0 %v3015_v26  ;;  %2285 = vmatpush3.msra.mxu1 %v3059_v36  ;;  %v3355_v36 = vld [vmem:[%s4085_s5 + $0x20] sm:$0xff] }
  0x44   :  { %297 = vmatpush1.msra.mxu0 %v3027_v29  ;;  %2286 = vmatprep.subr.mxu1 %v3078_v40  ;;  %4144 = vst [vmem:[#allocation20_spill] sm:$0xff] %v3355_v36 }
  0x45   :  { %298 = vmatprep.subr.mxu0 %v3034_v30  ;;  %2287 = vmatpush3.msra.mxu1 %v3078_v40  ;;  %v3384_v40 = vld [vmem:[%s4085_s5 + $0x10] sm:$0xff] }
  0x46   :  { %299 = vmatpush1.msra.mxu0 %v3046_v33  ;;  %2288 = vmatprep.subr.mxu1 %v3097_v44  ;;  %4146 = vst [vmem:[#allocation22_spill] sm:$0xff] %v3384_v40 }
  0x47   :  { %300 = vmatprep.subr.mxu0 %v3053_v34  ;;  %2289 = vmatpush3.msra.mxu1 %v3097_v44  ;;  %v3402_v44 = vld [vmem:[%s4085_s5] sm:$0xff] }
  0x48   :  { %301 = vmatpush1.msra.mxu0 %v3065_v37  ;;  %2290 = vmatprep.subr.mxu1 %v3119_v49  ;;  %4148 = vst [vmem:[#allocation24_spill] sm:$0xff] %v3402_v44 }
  0x49   :  { %302 = vmatprep.subr.mxu0 %v3072_v38  ;;  %2291 = vmatpush3.msra.mxu1 %v3119_v49  ;;  %v3425_v49 = vsub.s32 0, %v3422_v48 }
  0x4a   :  { %303 = vmatpush1.msra.mxu0 %v3084_v41  ;;  %2292 = vmatprep.subr.mxu1 %v3138_v52 }
  0x4b   :  { %304 = vmatprep.subr.mxu0 %v3091_v42  ;;  %2293 = vmatpush3.msra.mxu1 %v3138_v52  ;;  %v3430_v52 = vld [vmem:[%s4084_s4] sm:$0x7] }
  0x4c   :  { %305 = vmatpush1.msra.mxu0 %v3103_v45  ;;  %2294 = vmatprep.subr.mxu1 %v3156_v55 }
  0x4d   :  { %306 = vmatprep.subr.mxu0 %v3110_v46  ;;  %2295 = vmatpush3.msra.mxu1 %v3156_v55  ;;  %v125_v55 = vrot.slane %v3430_v52, %v3425_v49 }
  0x4e   :  { %307 = vmatpush1.msra.mxu0 %v3125_v50  ;;  %2296 = vmatprep.subr.mxu1 %v3164_v56 }
  0x4f   :  { %308 = vmatprep.subr.mxu0 %v3132_v51  ;;  %2297 = vmatpush3.msra.mxu1 %v3164_v56  ;;  %v129_v56 = vrot.slane %v3430_v52, %v4106_v54 }
  0x50   :  { %309 = vmatpush1.msra.mxu0 %v3144_v53  ;;  %2298 = vmatprep.subr.mxu1 %v3173_v57 }
  0x51   :  { %343 = vmatmul.mubr.f32.vlgmr.msra.gmra.mxu0 %v70_v62  ;;  %2309 = vmatprep.subr.mxu0 %v4109_v4 }
  0x52   :  { %347 = vmatprep.mubr.f32.mxu0 %v4109_v4  ;;  %2310 = vmatpush3.msra.mxu0 %v3257_v18 }
  0x53   :  { %2311 = vmatprep.subr.mxu0 %v4109_v4  ;;  %2299 = vmatpush3.msra.mxu1 %v3173_v57 }
  0x54   :  { %2312 = vmatpush3.msra.mxu0 %v3268_v19  ;;  %2300 = vmatprep.subr.mxu1 %v3182_v58 }
  0x55   :  { %348 = vmatmul.mubr.f32.gmra.mxu0 %v71_v14  ;;  %2313 = vmatprep.subr.mxu0 %v4109_v4 }
  0x56   :  { %2314 = vmatpush3.msra.mxu0 %v3276_v20  ;;  %2301 = vmatpush3.msra.mxu1 %v3182_v58 }
  0x57   :  { %2315 = vmatprep.subr.mxu0 %v4109_v4  ;;  %2302 = vmatprep.subr.mxu1 %v3191_v59 }
  0x58   :  { %2316 = vmatpush3.msra.mxu0 %v3285_v16  ;;  %2341 = vmatprep.mubr.msk.f32.mxu0 %vm2801_vm0, %v4109_v4 }
  0x59   :  { %2317 = vmatprep.subr.mxu0 %v4109_v4  ;;  %2303 = vmatpush3.msra.mxu1 %v3191_v59 }
  0x5a   :  { %2318 = vmatpush3.msra.mxu0 %v3293_v23  ;;  %2304 = vmatprep.subr.mxu1 %v3200_v60 }
  0x5b   :  { %2319 = vmatprep.subr.mxu0 %v4109_v4  ;;  %2305 = vmatpush3.msra.mxu1 %v3200_v60 }
  0x5c   :  { %2320 = vmatpush3.msra.mxu0 %v3302_v24  ;;  %2306 = vmatprep.mubr.f32.mxu1 %v70_v62 }
  0x5d   :  { %2321 = vmatprep.subr.mxu0 %v4109_v4  ;;  %2307 = vmatmul.mubr.f32.vlgmr.msra.gmra.mxu1 %v71_v14 }
  0x5e   :  { %2322 = vmatpush3.msra.mxu0 %v3311_v27  ;;  %2344 = vmatprep.subr.mxu1 %v3257_v18 }
  0x5f   :  { %2323 = vmatprep.subr.mxu0 %v4109_v4  ;;  %2345 = vmatpush3.msra.mxu1 %v3257_v18 }
  0x60   :  { %2324 = vmatpush3.msra.mxu0 %v3320_v28  ;;  %2346 = vmatprep.subr.mxu1 %v3268_v19 }
  0x61   :  { %2325 = vmatprep.subr.mxu0 %v4109_v4  ;;  %2347 = vmatpush3.msra.mxu1 %v3268_v19 }
  0x62   :  { %2326 = vmatpush3.msra.mxu0 %v3329_v31  ;;  %2348 = vmatprep.subr.mxu1 %v3276_v20 }
  0x63   :  { %2327 = vmatprep.subr.mxu0 %v4109_v4  ;;  %2349 = vmatpush3.msra.mxu1 %v3276_v20 }
  0x64   :  { %2328 = vmatpush3.msra.mxu0 %v3339_v32  ;;  %2350 = vmatprep.subr.mxu1 %v3285_v16 }
  0x65   :  { %2329 = vmatprep.subr.mxu0 %v4109_v4  ;;  %2351 = vmatpush3.msra.mxu1 %v3285_v16 }
  0x66   :  { %2330 = vmatpush3.msra.mxu0 %v3348_v35  ;;  %2352 = vmatprep.subr.mxu1 %v3293_v23 }
  0x67   :  { %2331 = vmatprep.subr.mxu0 %v4109_v4  ;;  %2353 = vmatpush3.msra.mxu1 %v3293_v23 }
  0x68   :  { %2332 = vmatpush3.msra.mxu0 %v3355_v36  ;;  %2354 = vmatprep.subr.mxu1 %v3302_v24 }
  0x69   :  { %2333 = vmatprep.subr.mxu0 %v4109_v4  ;;  %2355 = vmatpush3.msra.mxu1 %v3302_v24 }
  0x6a   :  { %2334 = vmatpush3.msra.mxu0 %v3375_v39  ;;  %2356 = vmatprep.subr.mxu1 %v3311_v27 }
  0x6b   :  { %2335 = vmatprep.subr.mxu0 %v4109_v4  ;;  %2357 = vmatpush3.msra.mxu1 %v3311_v27 }
  0x6c   :  { %2336 = vmatpush3.msra.mxu0 %v3384_v40  ;;  %2358 = vmatprep.subr.mxu1 %v3320_v28 }
  0x6d   :  { %2337 = vmatprep.subr.mxu0 %v4109_v4  ;;  %2359 = vmatpush3.msra.mxu1 %v3320_v28 }
  0x6e   :  { %2338 = vmatpush3.msra.mxu0 %v3393_v43  ;;  %2360 = vmatprep.subr.mxu1 %v3329_v31 }
  0x6f   :  { %2339 = vmatprep.subr.mxu0 %v4109_v4  ;;  %2361 = vmatpush3.msra.mxu1 %v3329_v31 }
  0x70   :  { %2340 = vmatpush3.msra.mxu0 %v3402_v44  ;;  %2362 = vmatprep.subr.mxu1 %v3339_v32 }
  0x71   :  { %2363 = vmatpush3.msra.mxu1 %v3339_v32  ;;  %2379 = vmatprep.subr.mxu0 %v4109_v4 }
  0x72   :  { %2364 = vmatprep.subr.mxu1 %v3348_v35 }
  0x73   :  { %2365 = vmatpush3.msra.mxu1 %v3348_v35 }
  0x74   :  { %2366 = vmatprep.subr.mxu1 %v3355_v36 }
  0x75   :  { %2367 = vmatpush3.msra.mxu1 %v3355_v36 }
  0x76   :  { %2368 = vmatprep.subr.mxu1 %v3375_v39 }
  0x77   :  { %2369 = vmatpush3.msra.mxu1 %v3375_v39 }
  0x78   :  { %2370 = vmatprep.subr.mxu1 %v3384_v40 }
  0x79   :  { %2371 = vmatpush3.msra.mxu1 %v3384_v40 }
  0x7a   :  { %2372 = vmatprep.subr.mxu1 %v3393_v43 }
  0x7b   :  { %2373 = vmatpush3.msra.mxu1 %v3393_v43 }
  0x7c   :  { %2374 = vmatprep.subr.mxu1 %v3402_v44 }
  0x7d   :  { %2375 = vmatpush3.msra.mxu1 %v3402_v44 }
  0xf1   :  { %v203_v57 = vpop.f32.mrf.mxu0 }
  0xf2   :  { %v204_v58 = vadd.f32 %v203_v57, %v125_v55 }
  0xf3   :  { %v205_v59 = vpop.f32.mrf.mxu0 }
  0xf4   :  { %v428_v60 = vmul.f32 0.25, %v204_v58  ;;  %v206_v62 = vadd.f32 %v205_v59, %v129_v56  ;;  %v3446_v58 = vld [vmem:[%s4086_s6] sm:$0xff] }
  0xf5   :  { %4149 = vst [vmem:[#allocation25_spill] sm:$0xff] %v3446_v58  ;;  %2384 = vmatprep.subr.mxu1 %v3446_v58 }
  0xf6   :  { %v429_v14 = vmul.f32 %v428_v60, %v206_v62  ;;  %v519_v39 = vrot.slane %v428_v60, %v3425_v49 }
  0xf7   :  { %v3440_v47 = vpop.f32.mrf.mxu1 }
  0xf8   :  { %2342 = vmatmul.mubr.f32.vlgmr.msra.gmra.mxu0 %v429_v14 }
  0xf9   :  { %2381 = vmatprep.mubr.msk.f32.mxu0 %vm2801_vm0, %v4109_v4  ;;  %v2273_v44 = vpop.f32.mrf.mxu1  ;;  %2380 = vmatpush3.msra.mxu0 %v3446_v58 }
  0xfa   :  { %2389 = vmatprep.subr.mxu0 %v4109_v4 }
 0x111   :  { %v344_v43 = vpop.f32.mrf.mxu0 }
 0x113   :  { %v345_v40 = vpop.f32.mrf.mxu0 }
 0x114   :  { %v346_v36 = vadd.f32 %v345_v40, %v129_v56 }
 0x115   :  { %v349_v35 = vpop.f32.mrf.mxu0 }
 0x116   :  { %v520_v54 = vmul.f32 %v519_v39, %v346_v36 }
 0x117   :  { %v350_v32 = vpop.f32.mrf.mxu0 }
 0x118   :  { %v351_v55 = vadd.f32 %v350_v32, %v129_v56  ;;  %2376 = vmatprep.mubr.f32.mxu1 %v520_v54 }
 0x11a   :  { %v521_v57 = vmul.f32 %v519_v39, %v351_v55 }
 0x11c   :  { %2377 = vmatmul.mubr.f32.vlgmr.msra.gmra.mxu1 %v521_v57 }
 0x11d   :  { %2385 = vmatpush3.msra.mxu1 %v3446_v58  ;;  %v3453_v36 = vpop.f32.mrf.mxu1 }
 0x11e   :  { %2424 = vmatprep.subr.mxu1 %v4109_v4 }
 0x11f   :  { %v3455_v39 = vpop.f32.mrf.mxu1 }
 0x1b8   :  { %v512_v35 = vpop.f32.mrf.mxu0 }
 0x1ba   :  { %v2343_v32 = vpop.f32.mrf.mxu0 }
 0x1dc   :  { %v2378_v40 = vpop.f32.mrf.mxu1 }
 0x1dd   :  { %v599_v44 = vsel %vm597_vm1, %v2378_v40, -inf }
 0x1de   :  { %v588_v43 = vpop.f32.mrf.mxu1 }
 0x1df   :  { %v598_v54 = vsel %vm597_vm1, %v588_v43, -inf }
 0x1e0   :  { %v600_v56 = vmax.f32 %v598_v54, %v599_v44 }
 0x1e2   :  { %v601_v59 = vrot.slane %v600_v56, 4 }
 0x1e4   :  { %v602_v60 = vmax.f32 %v600_v56, %v601_v59 }
 0x1e6   :  { %v603_v62 = vrot.slane %v602_v60, 2 }
 0x1e8   :  { %v604_v14 = vmax.f32 %v602_v60, %v603_v62 }
 0x1ea   :  { %v605_v55 = vrot.slane %v604_v14, 1 }
 0x1ec   :  { %v606_v57 = vmax.f32 %v604_v14, %v605_v55  ;;  %v3472_v55 = vld [vmem:[%s4087_s7 + $0x70] sm:$0xff] }
 0x1ee   :  { %v607_v4 = vmax.f32 %v512_v35, %v606_v57  ;;  %v4150_v57 = vmov 0.0  }
 0x1f0   :  { %v614_v32 = vrot.slane %v607_v4, %v3425_v49  ;;  %v608_v24 = vsub.f32 %v512_v35, %v607_v4 }
 0x1f2   :  { %v615_v58 = vsub.f32 %v588_v43, %v614_v32  ;;  %v616_v31 = vsub.f32 %v2378_v40, %v614_v32  ;;  %v609_v23 = vmul.f32 1.442695, %v608_v24  ;;  %v3482_v32 = vld [vmem:[%s4087_s7 + $0x68] sm:$0xff] }
 0x1f3   :  { %4151 = vst [vmem:[#allocation26_spill] sm:$0xff] %v3482_v32 }
 0x1f4   :  { %v617_v28 = vmul.f32 1.442695, %v615_v58  ;;  %v619_v27 = vmul.f32 1.442695, %v616_v31 }
 0x1f6   :  { %2684 = vpow2.f32 %v617_v28  ;;  %v3466_v28 = vld [vmem:[%s4087_s7 + $0x78] sm:$0xff] }
 0x1f7   :  { %2686 = vpow2.f32 %v619_v27 }
 0x1f8   :  { %2688 = vpow2.f32 %v609_v23 }
 0x203   :  { %v2685_v16 = vpop.eup %2684 }
 0x204   :  { %v2687_v20 = vpop.eup %2686  ;;  %v621_v44 = vsel %vm597_vm1, %v2685_v16, 0.0 }
 0x205   :  { %v622_v54 = vsel %vm597_vm1, %v2687_v20, 0.0  ;;  %v2689_v58 = vpop.eup %2688 }
 0x206   :  { %v623_v56 = vadd.f32 %v622_v54, %v621_v44  ;;  %v3508_v44 = vld [vmem:[%s4087_s7 + $0x50] sm:$0xff]  ;;  %v3515_v54 = vld [vmem:[%s4087_s7 + $0x48] sm:$0xff] }
 0x207   :  { %4154 = vst [vmem:[#allocation29_spill] sm:$0xff] %v3508_v44  ;;  %4155 = vst [vmem:[#allocation30_spill] sm:$0xff] %v3515_v54 }
 0x208   :  { %v624_v59 = vrot.slane %v623_v56, 4 }
 0x20a   :  { %v625_v60 = vadd.f32 %v624_v59, %v623_v56  ;;  %v3522_v56 = vld [vmem:[%s4087_s7 + $0x40] sm:$0xff]  ;;  %v3529_v59 = vld [vmem:[%s4087_s7 + $0x38] sm:$0xff] }
 0x20b   :  { %4156 = vst [vmem:[#allocation31_spill] sm:$0xff] %v3522_v56  ;;  %4157 = vst [vmem:[#allocation32_spill] sm:$0xff] %v3529_v59 }
 0x20c   :  { %v626_v62 = vrot.slane %v625_v60, 2 }
 0x20e   :  { %v627_v14 = vadd.f32 %v626_v62, %v625_v60  ;;  %v3536_v60 = vld [vmem:[%s4087_s7 + $0x30] sm:$0xff]  ;;  %v3543_v62 = vld [vmem:[%s4087_s7 + $0x28] sm:$0xff] }
 0x20f   :  { %4158 = vst [vmem:[#allocation33_spill] sm:$0xff] %v3536_v60  ;;  %4159 = vst [vmem:[#allocation34_spill] sm:$0xff] %v3543_v62 }
 0x210   :  { %v628_v43 = vrot.slane %v627_v14, 1 }
 0x212   :  { %v629_v40 = vadd.f32 %v628_v43, %v627_v14  ;;  %v3550_v14 = vld [vmem:[%s4087_s7 + $0x20] sm:$0xff]  ;;  %v3557_v43 = vld [vmem:[%s4087_s7 + $0x18] sm:$0xff] }
 0x213   :  { %4160 = vst [vmem:[#allocation35_spill] sm:$0xff] %v3550_v14  ;;  %4161 = vst [vmem:[#allocation36_spill] sm:$0xff] %v3557_v43 }
 0x214   :  { %v630_v31 = vadd.f32 %v2689_v58, %v629_v40  ;;  %v3564_v40 = vld [vmem:[%s4087_s7 + $0x10] sm:$0xff] }
 0x215   :  { %4162 = vst [vmem:[#allocation37_spill] sm:$0xff] %v3564_v40 }
 0x216   :  { %2690 = vrcp.f32 %v630_v31  ;;  %v3576_v31 = vld [vmem:[%s4087_s7] sm:$0xff] }
 0x217   :  { %4164 = vst [vmem:[#allocation39_spill] sm:$0xff] %v3576_v31 }
 0x223   :  { %v2691_v27 = vpop.eup %2690 }
 0x224   :  { %v632_v4 = vmul.f32 %v2691_v27, %v2689_v58  ;;  %v636_v24 = vrot.slane %v2691_v27, %v3425_v49  ;;  %v3571_v58 = vld [vmem:[%s4087_s7 + $0x8] sm:$0xff]  ;;  %v132_v27 = vsub.s32 2, %v3422_v48 }
 0x225   :  { %4163 = vst [vmem:[#allocation38_spill] sm:$0xff] %v3571_v58 }
 0x226   :  { %2382 = vmatmul.mubr.msk.f32.vlgmr.msra.gmra.mxu0 %vm597_vm1, %v632_v4  ;;  %v637_v23 = vmul.f32 %v2685_v16, %v636_v24  ;;  %v638_v35 = vmul.f32 %v2687_v20, %v636_v24  ;;  %v3490_v20 = vld [vmem:[%s4087_s7 + $0x60] sm:$0xff]  ;;  %v3501_v16 = vld [vmem:[%s4087_s7 + $0x58] sm:$0xff]  ;;  %v133_v24 = vrot.slane %v3430_v52, %v132_v27 }
 0x227   :  { %2390 = vmatpush3.msra.mxu0 %v3466_v28  ;;  %2421 = vmatprep.mubr.msk.f32.mxu0 %vm2801_vm0, %v4150_v57  ;;  %4152 = vst [vmem:[#allocation27_spill] sm:$0xff] %v3490_v20  ;;  %4153 = vst [vmem:[#allocation28_spill] sm:$0xff] %v3501_v16 }
 0x228   :  { %2386 = vmatprep.mubr.msk.f32.mxu1 %vm597_vm1, %v637_v23  ;;  %2391 = vmatprep.subr.mxu0 %v4150_v57 }
 0x229   :  { %2387 = vmatmul.mubr.msk.f32.vlgmr.msra.gmra.mxu1 %vm597_vm1, %v638_v35  ;;  %2392 = vmatpush3.msra.mxu0 %v3472_v55 }
 0x22a   :  { %2393 = vmatprep.subr.mxu0 %v4150_v57  ;;  %2456 = vmatprep.mubr.msk.f32.mxu1 %vm2801_vm0, %v4150_v57 }
 0x22b   :  { %2394 = vmatpush3.msra.mxu0 %v3482_v32 }
 0x22c   :  { %2395 = vmatprep.subr.mxu0 %v4150_v57 }
 0x22d   :  { %2396 = vmatpush3.msra.mxu0 %v3490_v20 }
 0x22e   :  { %2397 = vmatprep.subr.mxu0 %v4150_v57 }
 0x22f   :  { %2398 = vmatpush3.msra.mxu0 %v3501_v16 }
 0x230   :  { %2399 = vmatprep.subr.mxu0 %v4150_v57 }
 0x231   :  { %2400 = vmatpush3.msra.mxu0 %v3508_v44  ;;  %v275_v44 = vadd.f32 %v3440_v47, %v133_v24  ;;  %v2015_v47 = vld [vmem:[%s4080_s0 + $0x10] sm:$0xff] }
 0x232   :  { %2401 = vmatprep.subr.mxu0 %v4150_v57 }
 0x233   :  { %2402 = vmatpush3.msra.mxu0 %v3515_v54 }
 0x234   :  { %2403 = vmatprep.subr.mxu0 %v4150_v57 }
 0x235   :  { %2404 = vmatpush3.msra.mxu0 %v3522_v56 }
 0x236   :  { %2405 = vmatprep.subr.mxu0 %v4150_v57 }
 0x237   :  { %2406 = vmatpush3.msra.mxu0 %v3529_v59 }
 0x238   :  { %2407 = vmatprep.subr.mxu0 %v4150_v57 }
 0x239   :  { %2408 = vmatpush3.msra.mxu0 %v3536_v60 }
 0x23a   :  { %2409 = vmatprep.subr.mxu0 %v4150_v57 }
 0x23b   :  { %2410 = vmatpush3.msra.mxu0 %v3543_v62 }
 0x23c   :  { %2411 = vmatprep.subr.mxu0 %v4150_v57 }
 0x23d   :  { %2412 = vmatpush3.msra.mxu0 %v3550_v14 }
 0x23e   :  { %2413 = vmatprep.subr.mxu0 %v4150_v57 }
 0x23f   :  { %2414 = vmatpush3.msra.mxu0 %v3557_v43  ;;  %v420_v43 = vadd.f32 %v3455_v39, %v133_v24 }
 0x240   :  { %2415 = vmatprep.subr.mxu0 %v4150_v57 }
 0x241   :  { %2416 = vmatpush3.msra.mxu0 %v3564_v40  ;;  %v425_v40 = vadd.f32 %v3453_v36, %v133_v24  ;;  %v2016_v36 = vld [vmem:[%s4080_s0 + $0x18] sm:$0xff] }
 0x242   :  { %2417 = vmatprep.subr.mxu0 %v4150_v57  ;;  %v1023_v39 = vadd.f32 %v2016_v36, %v2015_v47 }
 0x243   :  { %2418 = vmatpush3.msra.mxu0 %v3571_v58 }
 0x244   :  { %2419 = vmatprep.subr.mxu0 %v4150_v57 }
 0x245   :  { %2420 = vmatpush3.msra.mxu0 %v3576_v31 }
 0x246   :  { %1102 = vmatprep.subr.mxu0 %v2875_v0 }
 0x2e6   :  { %v709_v4 = vpop.f32.mrf.mxu0 }
 0x2e7   :  { %v713_v20 = vmul.f32 %v709_v4, %v275_v44  ;;  %v4179_v4 = vsub.s32 1, %v3422_v48 }
 0x2e8   :  { %v2383_v23 = vpop.f32.mrf.mxu0 }
 0x2e9   :  { %v2388_v35 = vpop.f32.mrf.mxu1 }
 0x2ea   :  { %v796_v14 = vmul.f32 %v2388_v35, %v425_v40  ;;  %v3833_v40 = vld [vmem:[%s4084_s4] sm:$0x7]  ;;  %s1989_s4 = sshll.u32 %s2802_s17, 4  ;;  %s1990_s4 = int_to_ptr.vmem [resolvable:$true] %s1989_s4 }
 0x2eb   :  { %v786_v58 = vpop.f32.mrf.mxu1  ;;  %v1094_v24 = vrot.slane %v3833_v40, %v4179_v4  ;;  %v2720_v4 = vld [vmem:[%s4083_s3 + $0x118] sm:$0xff]  ;;  %p2758_p6 = scmp.lt.s32.totalorder %s1990_s4, %s1990_s4 }
 0x2ec   :  { %v795_v62 = vmul.f32 %v786_v58, %v420_v43  ;;  %v3824_v43 = vld [vmem:[%s4089_s9] sm:$0xff] }
 0x2ee   :  { %v797_v60 = vadd.f32 %v796_v14, %v795_v62  ;;  %v3810_v62 = vld [vmem:[%s4089_s9 + $0x10] sm:$0xff]  ;;  %v3817_v14 = vld [vmem:[%s4089_s9 + $0x8] sm:$0xff] }
 0x2f0   :  { %v798_v31 = vrot.slane %v797_v60, 4 }
 0x2f2   :  { %v799_v59 = vadd.f32 %v798_v31, %v797_v60  ;;  %v1090_v31 = vrot.slane %v3833_v40, %v3425_v49 }
 0x2f4   :  { %v800_v56 = vrot.slane %v799_v59, 2 }
 0x2f6   :  { %v801_v54 = vadd.f32 %v800_v56, %v799_v59 }
 0x2f8   :  { %v802_v16 = vrot.slane %v801_v54, 1 }
 0x2fa   :  { %v803_v32 = vadd.f32 %v802_v16, %v801_v54 }
 0x2fc   :  { %v804_v52 = vadd.f32 %v803_v32, %v713_v20  ;;  %v1024_v32 = vrot.slane %v1023_v39, 4 }
 0x2fe   :  { %2422 = vmatmul.mubr.f32.vlgmr.msra.gmra.mxu0 %v804_v52  ;;  %v1025_v20 = vadd.f32 %v1024_v32, %v1023_v39 }
 0x2ff   :  { %1103 = vmatpush1.msra.mxu0 %v2880_v1  ;;  %1166 = vmatprep.mubr.f32.mxu0 %v4150_v57 }
 0x300   :  { %1104 = vmatprep.subr.mxu0 %v2885_v2  ;;  %v1026_v16 = vrot.slane %v1025_v20, 2 }
 0x301   :  { %1105 = vmatpush1.msra.mxu0 %v2891_v3 }
 0x302   :  { %1106 = vmatprep.subr.mxu0 %v2898_v5  ;;  %v1027_v44 = vadd.f32 %v1026_v16, %v1025_v20 }
 0x303   :  { %1107 = vmatpush1.msra.mxu0 %v2905_v6 }
 0x304   :  { %1108 = vmatprep.subr.mxu0 %v2913_v7  ;;  %v1028_v54 = vrot.slane %v1027_v44, 1 }
 0x305   :  { %1109 = vmatpush1.msra.mxu0 %v2919_v8 }
 0x306   :  { %1110 = vmatprep.subr.mxu0 %v2925_v9  ;;  %v1029_v56 = vadd.f32 %v1028_v54, %v1027_v44 }
 0x307   :  { %1111 = vmatpush1.msra.mxu0 %v2931_v10 }
 0x308   :  { %1112 = vmatprep.subr.mxu0 %v2937_v11  ;;  %v1030_v59 = vmul.f32 0.0625, %v1029_v56  ;;  %v4180_v56 = vld [vmem:[#allocation25_spill] sm:$0xff] }
 0x309   :  { %1113 = vmatpush1.msra.mxu0 %v2943_v12 }
 0x30a   :  { %1114 = vmatprep.subr.mxu0 %v2949_v13 }
 0x30b   :  { %1115 = vmatpush1.msra.mxu0 %v2960_v15 }
 0x30c   :  { %1116 = vmatprep.subr.mxu0 %v2971_v17 }
 0x30d   :  { %1117 = vmatpush1.msra.mxu0 %v2989_v21 }
 0x30e   :  { %1118 = vmatprep.subr.mxu0 %v2996_v22 }
 0x30f   :  { %1119 = vmatpush1.msra.mxu0 %v3008_v25 }
 0x310   :  { %1120 = vmatprep.subr.mxu0 %v3015_v26 }
 0x311   :  { %1121 = vmatpush1.msra.mxu0 %v3027_v29 }
 0x312   :  { %1122 = vmatprep.subr.mxu0 %v3034_v30 }
 0x313   :  { %1123 = vmatpush1.msra.mxu0 %v3046_v33 }
 0x314   :  { %1124 = vmatprep.subr.mxu0 %v3053_v34 }
 0x315   :  { %1125 = vmatpush1.msra.mxu0 %v3065_v37 }
 0x316   :  { %1126 = vmatprep.subr.mxu0 %v3072_v38 }
 0x317   :  { %1127 = vmatpush1.msra.mxu0 %v3084_v41 }
 0x318   :  { %1128 = vmatprep.subr.mxu0 %v3091_v42 }
 0x319   :  { %1129 = vmatpush1.msra.mxu0 %v3103_v45 }
 0x31a   :  { %1130 = vmatprep.subr.mxu0 %v3110_v46 }
 0x31b   :  { %1131 = vmatpush1.msra.mxu0 %v3125_v50 }
 0x31c   :  { %1132 = vmatprep.subr.mxu0 %v3132_v51 }
 0x31d   :  { %1133 = vmatpush1.msra.mxu0 %v3144_v53 }
 0x31e   :  { %1243 = vmatprep.subr.mxu0 %v2875_v0  ;;  %v1031_v0 = vld [vmem:[%s4081_s1] sm:$0x1] }
 0x31f   :  { %v3631_v60 = vadd.f32 %v1031_v0, %v1030_v59 }
 0x321   :  { %1167 = vmatmul.mubr.f32.vlgmr.msra.gmra.mxu0 %v3631_v60 }
 0x322   :  { %1244 = vmatpush1.msra.mxu0 %v2880_v1  ;;  %1307 = vmatprep.mubr.f32.mxu0 %v4150_v57  ;;  %v3664_v1 = vadd.f32 %v2015_v47, %v3235_v61  ;;  %v3783_v61 = vld [vmem:[%s4089_s9 + $0x30] sm:$0xff] }
 0x323   :  { %1245 = vmatprep.subr.mxu0 %v2885_v2  ;;  %v3671_v2 = vadd.f32 %v2016_v36, %v3250_v63  ;;  %v3789_v63 = vld [vmem:[%s4089_s9 + $0x28] sm:$0xff] }
 0x324   :  { %1246 = vmatpush1.msra.mxu0 %v2891_v3  ;;  %v4165_v3 = vld [vmem:[#allocation11_spill] sm:$0xff] }
 0x325   :  { %1247 = vmatprep.subr.mxu0 %v2898_v5  ;;  %v4166_v5 = vld [vmem:[#allocation12_spill] sm:$0xff] }
 0x326   :  { %1248 = vmatpush1.msra.mxu0 %v2905_v6  ;;  %v4167_v6 = vld [vmem:[#allocation13_spill] sm:$0xff] }
 0x327   :  { %1249 = vmatprep.subr.mxu0 %v2913_v7  ;;  %v4168_v7 = vld [vmem:[#allocation14_spill] sm:$0xff] }
 0x328   :  { %1250 = vmatpush1.msra.mxu0 %v2919_v8  ;;  %v4169_v8 = vld [vmem:[#allocation15_spill] sm:$0xff] }
 0x329   :  { %1251 = vmatprep.subr.mxu0 %v2925_v9  ;;  %v4170_v9 = vld [vmem:[#allocation16_spill] sm:$0xff] }
 0x32a   :  { %1252 = vmatpush1.msra.mxu0 %v2931_v10  ;;  %v4171_v10 = vld [vmem:[#allocation17_spill] sm:$0xff] }
 0x32b   :  { %1253 = vmatprep.subr.mxu0 %v2937_v11  ;;  %v4172_v11 = vld [vmem:[#allocation18_spill] sm:$0xff] }
 0x32c   :  { %1254 = vmatpush1.msra.mxu0 %v2943_v12  ;;  %v4173_v12 = vld [vmem:[#allocation19_spill] sm:$0xff] }
 0x32d   :  { %1255 = vmatprep.subr.mxu0 %v2949_v13  ;;  %v4174_v13 = vld [vmem:[#allocation20_spill] sm:$0xff] }
 0x32e   :  { %1256 = vmatpush1.msra.mxu0 %v2960_v15  ;;  %v4175_v15 = vld [vmem:[#allocation21_spill] sm:$0xff] }
 0x32f   :  { %1257 = vmatprep.subr.mxu0 %v2971_v17  ;;  %v4176_v17 = vld [vmem:[#allocation22_spill] sm:$0xff] }
 0x330   :  { %1258 = vmatpush1.msra.mxu0 %v2989_v21  ;;  %v4177_v21 = vld [vmem:[#allocation23_spill] sm:$0xff] }
 0x331   :  { %1259 = vmatprep.subr.mxu0 %v2996_v22  ;;  %v4178_v22 = vld [vmem:[#allocation24_spill] sm:$0xff] }
 0x332   :  { %1260 = vmatpush1.msra.mxu0 %v3008_v25  ;;  %v821_v25 = vld [vmem:[%s4088_s8] sm:$0x1] }
 0x333   :  { %1261 = vmatprep.subr.mxu0 %v3015_v26 }
 0x334   :  { %1262 = vmatpush1.msra.mxu0 %v3027_v29 }
 0x335   :  { %1263 = vmatprep.subr.mxu0 %v3034_v30 }
 0x336   :  { %1264 = vmatpush1.msra.mxu0 %v3046_v33 }
 0x337   :  { %1265 = vmatprep.subr.mxu0 %v3053_v34 }
 0x338   :  { %1266 = vmatpush1.msra.mxu0 %v3065_v37  ;;  %v3721_v37 = vld [vmem:[%s4089_s9 + $0x78] sm:$0xff] }
 0x339   :  { %1267 = vmatprep.subr.mxu0 %v3072_v38  ;;  %2425 = vmatpush3.msra.mxu1 %v3721_v37  ;;  %v3728_v38 = vld [vmem:[%s4089_s9 + $0x70] sm:$0xff] }
 0x33a   :  { %1268 = vmatpush1.msra.mxu0 %v3084_v41  ;;  %2426 = vmatprep.subr.mxu1 %v4150_v57  ;;  %v3735_v41 = vld [vmem:[%s4089_s9 + $0x68] sm:$0xff] }
 0x33b   :  { %1269 = vmatprep.subr.mxu0 %v3091_v42  ;;  %2427 = vmatpush3.msra.mxu1 %v3728_v38  ;;  %v3742_v42 = vld [vmem:[%s4089_s9 + $0x60] sm:$0xff] }
 0x33c   :  { %1270 = vmatpush1.msra.mxu0 %v3103_v45  ;;  %2428 = vmatprep.subr.mxu1 %v4150_v57  ;;  %v3749_v45 = vld [vmem:[%s4089_s9 + $0x58] sm:$0xff] }
 0x33d   :  { %1271 = vmatprep.subr.mxu0 %v3110_v46  ;;  %2429 = vmatpush3.msra.mxu1 %v3735_v41  ;;  %v3756_v46 = vld [vmem:[%s4089_s9 + $0x50] sm:$0xff] }
 0x33e   :  { %1272 = vmatpush1.msra.mxu0 %v3125_v50  ;;  %2430 = vmatprep.subr.mxu1 %v4150_v57  ;;  %v3763_v50 = vld [vmem:[%s4089_s9 + $0x48] sm:$0xff] }
 0x33f   :  { %1273 = vmatprep.subr.mxu0 %v3132_v51  ;;  %2431 = vmatpush3.msra.mxu1 %v3742_v42  ;;  %v3770_v51 = vld [vmem:[%s4089_s9 + $0x40] sm:$0xff] }
 0x340   :  { %1274 = vmatpush1.msra.mxu0 %v3144_v53  ;;  %2432 = vmatprep.subr.mxu1 %v4150_v57  ;;  %v3777_v53 = vld [vmem:[%s4089_s9 + $0x38] sm:$0xff] }
 0x341   :  { %1308 = vmatmul.mubr.f32.vlgmr.msra.gmra.mxu0 %v3664_v1  ;;  %2529 = vmatprep.subr.mxu0 %v4150_v57 }
 0x342   :  { %1312 = vmatprep.mubr.f32.mxu0 %v4150_v57  ;;  %2530 = vmatpush3.msra.mxu0 %v3257_v18  ;;  %v3796_v18 = vld [vmem:[%s4089_s9 + $0x20] sm:$0xff] }
 0x343   :  { %2531 = vmatprep.subr.mxu0 %v4150_v57  ;;  %2433 = vmatpush3.msra.mxu1 %v3749_v45 }
 0x344   :  { %2532 = vmatpush3.msra.mxu0 %v3268_v19  ;;  %2434 = vmatprep.subr.mxu1 %v4150_v57  ;;  %v3803_v19 = vld [vmem:[%s4089_s9 + $0x18] sm:$0xff]  ;;  %s2753_s9 = scalar_lea.vmem %s1990_s4, 32 }
 0x345   :  { %1313 = vmatmul.mubr.f32.gmra.mxu0 %v3671_v2  ;;  %2533 = vmatprep.subr.mxu0 %v4150_v57  ;;  %p2754_p5 = scmp.ne.s32.totalorder %s1990_s4, %s2753_s9  ;;  %p2759_p7 = scmp.lt.s32.totalorder %s2753_s9, %s2753_s9 }
 0x346   :  { %2534 = vmatpush3.msra.mxu0 %v4165_v3  ;;  %2561 = vmatprep.mubr.msk.f32.mxu0 %vm2801_vm0, %v4150_v57 }
 0x347   :  { %2535 = vmatprep.subr.mxu0 %v4150_v57  ;;  %2435 = vmatpush3.msra.mxu1 %v3756_v46  ;;  %p2760_p8 = por %p2759_p7, %p2758_p6 }
 0x348   :  { %2536 = vmatpush3.msra.mxu0 %v4166_v5  ;;  %2436 = vmatprep.subr.mxu1 %v4150_v57 }
 0x349   :  { %2537 = vmatprep.subr.mxu0 %v4150_v57  ;;  %2437 = vmatpush3.msra.mxu1 %v3763_v50  ;;  %p2761_p9 = pnand %p2760_p8, %p2754_p5 }
 0x34a   :  { %2538 = vmatpush3.msra.mxu0 %v4167_v6  ;;  %2438 = vmatprep.subr.mxu1 %v4150_v57 }
 0x34b   :  { %2539 = vmatprep.subr.mxu0 %v4150_v57  ;;  %2439 = vmatpush3.msra.mxu1 %v3770_v51 }
 0x34c   :  { %2540 = vmatpush3.msra.mxu0 %v4168_v7  ;;  %2440 = vmatprep.subr.mxu1 %v4150_v57 }
 0x34d   :  { %2541 = vmatprep.subr.mxu0 %v4150_v57  ;;  %2441 = vmatpush3.msra.mxu1 %v3777_v53 }
 0x34e   :  { %2542 = vmatpush3.msra.mxu0 %v4169_v8  ;;  %2442 = vmatprep.subr.mxu1 %v4150_v57 }
 0x34f   :  { %2543 = vmatprep.subr.mxu0 %v4150_v57  ;;  %2443 = vmatpush3.msra.mxu1 %v3783_v61 }
 0x350   :  { %2544 = vmatpush3.msra.mxu0 %v4170_v9  ;;  %2444 = vmatprep.subr.mxu1 %v4150_v57 }
 0x351   :  { %2545 = vmatprep.subr.mxu0 %v4150_v57  ;;  %2445 = vmatpush3.msra.mxu1 %v3789_v63 }
 0x352   :  { %2546 = vmatpush3.msra.mxu0 %v4171_v10  ;;  %2446 = vmatprep.subr.mxu1 %v4150_v57 }
 0x353   :  { %2547 = vmatprep.subr.mxu0 %v4150_v57  ;;  %2447 = vmatpush3.msra.mxu1 %v3796_v18 }
 0x354   :  { %2548 = vmatpush3.msra.mxu0 %v4172_v11  ;;  %2448 = vmatprep.subr.mxu1 %v4150_v57 }
 0x355   :  { %2549 = vmatprep.subr.mxu0 %v4150_v57  ;;  %2449 = vmatpush3.msra.mxu1 %v3803_v19 }
 0x356   :  { %2550 = vmatpush3.msra.mxu0 %v4173_v12  ;;  %2450 = vmatprep.subr.mxu1 %v4150_v57 }
 0x357   :  { %2551 = vmatprep.subr.mxu0 %v4150_v57  ;;  %2451 = vmatpush3.msra.mxu1 %v3810_v62 }
 0x358   :  { %2552 = vmatpush3.msra.mxu0 %v4174_v13  ;;  %2452 = vmatprep.subr.mxu1 %v4150_v57 }
 0x359   :  { %2553 = vmatprep.subr.mxu0 %v4150_v57  ;;  %2453 = vmatpush3.msra.mxu1 %v3817_v14 }
 0x35a   :  { %2554 = vmatpush3.msra.mxu0 %v4175_v15  ;;  %2454 = vmatprep.subr.mxu1 %v4150_v57 }
 0x35b   :  { %2555 = vmatprep.subr.mxu0 %v4150_v57  ;;  %2455 = vmatpush3.msra.mxu1 %v3824_v43 }
 0x35c   :  { %2556 = vmatpush3.msra.mxu0 %v4176_v17  ;;  %2459 = vmatprep.subr.mxu1 %v4150_v57 }
 0x35d   :  { %2557 = vmatprep.subr.mxu0 %v4150_v57 }
 0x35e   :  { %2558 = vmatpush3.msra.mxu0 %v4177_v21 }
 0x35f   :  { %2559 = vmatprep.subr.mxu0 %v4150_v57 }
 0x360   :  { %2560 = vmatpush3.msra.mxu0 %v4178_v22 }
 0x361   :  { %2599 = vmatprep.subr.mxu0 %v4150_v57 }
 0x3be   :  { %v888_v26 = vpop.f32.mrf.mxu0 }
 0x3bf   :  { %v3713_v29 = vadd.f32 %v888_v26, %v821_v25 }
 0x3c0   :  { %v2423_v30 = vpop.f32.mrf.mxu0 }
 0x3c1   :  { %v892_v33 = vmul.f32 %v3713_v29, %v3713_v29 }
 0x3c3   :  { %v894_v34 = vsel %vm893_vm2, %v892_v33, 0.0 }
 0x3c4   :  { %895 = vadd.xlane.f32.xlu0 %v894_v34  ;;  %v2716_v34 = vld [vmem:[%s4083_s3 + $0x178] sm:$0xff] }
 0x3e1   :  { %v1168_v58 = vpop.f32.mrf.mxu0 }
 0x3e2   :  { %v1169_v35 = vadd.f32 %v1168_v58, %v1090_v31  ;;  %v2717_v58 = vld [vmem:[%s4083_s3 + $0x160] sm:$0xff]  ;;  %v2719_v31 = vld [vmem:[%s4083_s3 + $0x130] sm:$0xff] }
 0x3e3   :  { %v1170_v23 = vpop.f32.mrf.mxu0 }
 0x3e4   :  { %v1171_v52 = vadd.f32 %v1170_v23, %v1094_v24  ;;  %v1393_v47 = vmul.f32 0.25, %v1169_v35  ;;  %v2722_v23 = vld [vmem:[%s4083_s3 + $0xe8] sm:$0xff]  ;;  %v2723_v35 = vld [vmem:[%s4083_s3 + $0xd0] sm:$0xff] }
 0x3e6   :  { %v1484_v39 = vrot.slane %v1393_v47, %v3425_v49  ;;  %v1394_v32 = vmul.f32 %v1393_v47, %v1171_v52  ;;  %v2724_v52 = vld [vmem:[%s4083_s3 + $0xb8] sm:$0xff]  ;;  %v2725_v47 = vld [vmem:[%s4083_s3 + $0xa0] sm:$0xff] }
 0x3e8   :  { %2562 = vmatmul.mubr.f32.vlgmr.msra.gmra.mxu0 %v1394_v32  ;;  %v2728_v32 = vld [vmem:[%s4083_s3 + $0x58] sm:$0xff] }
 0x3e9   :  { %2600 = vmatpush3.msra.mxu0 %v4180_v56  ;;  %2601 = vmatprep.mubr.msk.f32.mxu0 %vm2801_vm0, %v4150_v57 }
 0x3ea   :  { %2609 = vmatprep.subr.mxu0 %v4150_v57 }
 0x401   :  { %v1309_v36 = vpop.f32.mrf.mxu0 }
 0x402   :  { %v2726_v36 = vld [vmem:[%s4083_s3 + $0x88] sm:$0xff] }
 0x403   :  { %v1310_v20 = vpop.f32.mrf.mxu0 }
 0x404   :  { %v1311_v16 = vadd.f32 %v1310_v20, %v1094_v24  ;;  %v2729_v20 = vld [vmem:[%s4083_s3 + $0x40] sm:$0xff] }
 0x405   :  { %v1314_v44 = vpop.f32.mrf.mxu0 }
 0x406   :  { %v3841_v54 = vmul.f32 %v1484_v39, %v1311_v16  ;;  %v2730_v16 = vld [vmem:[%s4083_s3 + $0x28] sm:$0xff]  ;;  %v2731_v44 = vld [vmem:[%s4083_s3 + $0x10] sm:$0xff] }
 0x407   :  { %v1315_v59 = vpop.f32.mrf.mxu0 }
 0x408   :  { %v1316_v0 = vadd.f32 %v1315_v59, %v1094_v24  ;;  %v2721_v24 = vld [vmem:[%s4083_s3 + $0x100] sm:$0xff]  ;;  %v2734_v59 = vld [vmem:[%s4085_s5 + $0x68] sm:$0xff] }
 0x40a   :  { %v3847_v3 = vmul.f32 %v1484_v39, %v1316_v0  ;;  %v2727_v39 = vld [vmem:[%s4083_s3 + $0x70] sm:$0xff] }
 0x40b   :  { %v2737_v0 = vld [vmem:[%s4085_s5 + $0x50] sm:$0xff] }
 0x44d   :  { %v896_v5 = vpop.xlane.xlu0 %895 }
 0x44e   :  { %2692 = vrsqrt.f32 %v896_v5  ;;  %vm899_vm3 = vcmp.eq.f32.partialorder %v896_v5, inf  ;;  %v902_v8 = vand.u32 2147483648, %v896_v5  ;;  %vm901_vm4 = vcmp.eq.f32.partialorder %v896_v5, 0.0 }
 0x45b   :  { %v2693_v6 = vpop.eup %2692 }
 0x45c   :  { %v898_v7 = vmul.f32 %v2693_v6, %v896_v5  ;;  %v2739_v6 = vld [vmem:[%s4085_s5 + $0x40] sm:$0xff] }
 0x45e   :  { %v900_v9 = vsel %vm899_vm3, %v896_v5, %v898_v7  ;;  %v2738_v5 = vld [vmem:[%s4085_s5 + $0x48] sm:$0xff]  ;;  %v2740_v7 = vld [vmem:[%s4085_s5 + $0x38] sm:$0xff] }
 0x45f   :  { %v903_v25 = vsel %vm901_vm4, %v902_v8, %v900_v9 }
 0x460   :  { %v904_v26 = vmax.f32 %v903_v25, 1e-12 }
 0x462   :  { %2694 = vrcp.f32 %v904_v26 }
 0x46f   :  { %v2695_v30 = vpop.eup %2694 }
 0x470   :  { %v906_v33 = vmul.f32 %v2695_v30, %v3713_v29  ;;  %v2718_v29 = vld [vmem:[%s4083_s3 + $0x148] sm:$0xff] }
 0x472   :  { %2457 = vmatmul.mubr.f32.vlgmr.msra.gmra.mxu1 %v906_v33 }
 0x473   :  { %2460 = vmatpush3.msra.mxu1 %v2716_v34  ;;  %2491 = vmatprep.mubr.msk.f32.mxu1 %vm2801_vm0, %v4150_v57 }
 0x474   :  { %2461 = vmatprep.subr.mxu1 %v4150_v57 }
 0x475   :  { %2462 = vmatpush3.msra.mxu1 %v2717_v58 }
 0x476   :  { %2463 = vmatprep.subr.mxu1 %v4150_v57 }
 0x477   :  { %2464 = vmatpush3.msra.mxu1 %v2718_v29 }
 0x478   :  { %2465 = vmatprep.subr.mxu1 %v4150_v57 }
 0x479   :  { %2466 = vmatpush3.msra.mxu1 %v2719_v31 }
 0x47a   :  { %2467 = vmatprep.subr.mxu1 %v4150_v57 }
 0x47b   :  { %2468 = vmatpush3.msra.mxu1 %v2720_v4 }
 0x47c   :  { %2469 = vmatprep.subr.mxu1 %v4150_v57 }
 0x47d   :  { %2470 = vmatpush3.msra.mxu1 %v2721_v24 }
 0x47e   :  { %2471 = vmatprep.subr.mxu1 %v4150_v57 }
 0x47f   :  { %2472 = vmatpush3.msra.mxu1 %v2722_v23 }
 0x480   :  { %2473 = vmatprep.subr.mxu1 %v4150_v57 }
 0x481   :  { %2474 = vmatpush3.msra.mxu1 %v2723_v35 }
 0x482   :  { %2475 = vmatprep.subr.mxu1 %v4150_v57 }
 0x483   :  { %2476 = vmatpush3.msra.mxu1 %v2724_v52 }
 0x484   :  { %2477 = vmatprep.subr.mxu1 %v4150_v57 }
 0x485   :  { %2478 = vmatpush3.msra.mxu1 %v2725_v47 }
 0x486   :  { %2479 = vmatprep.subr.mxu1 %v4150_v57 }
 0x487   :  { %2480 = vmatpush3.msra.mxu1 %v2726_v36 }
 0x488   :  { %2481 = vmatprep.subr.mxu1 %v4150_v57 }
 0x489   :  { %2482 = vmatpush3.msra.mxu1 %v2727_v39 }
 0x48a   :  { %2483 = vmatprep.subr.mxu1 %v4150_v57 }
 0x48b   :  { %2484 = vmatpush3.msra.mxu1 %v2728_v32 }
 0x48c   :  { %2485 = vmatprep.subr.mxu1 %v4150_v57 }
 0x48d   :  { %2486 = vmatpush3.msra.mxu1 %v2729_v20 }
 0x48e   :  { %2487 = vmatprep.subr.mxu1 %v4150_v57 }
 0x48f   :  { %2488 = vmatpush3.msra.mxu1 %v2730_v16 }
 0x490   :  { %2489 = vmatprep.subr.mxu1 %v4150_v57 }
 0x491   :  { %2490 = vmatpush3.msra.mxu1 %v2731_v44 }
 0x492   :  { %2492 = vmatmul.mubr.f32.vlgmr.msra.gmra.mxu1 %v3631_v60  ;;  %2494 = vmatprep.subr.mxu1 %v2716_v34  ;;  %v2732_v60 = vld [vmem:[%s4085_s5 + $0x78] sm:$0xff] }
 0x493   :  { %2495 = vmatpush3.msra.mxu1 %v2716_v34  ;;  %2526 = vmatprep.mubr.f32.mxu1 %v3664_v1  ;;  %v2733_v1 = vld [vmem:[%s4085_s5 + $0x70] sm:$0xff] }
 0x494   :  { %2496 = vmatprep.subr.mxu1 %v2717_v58 }
 0x495   :  { %2497 = vmatpush3.msra.mxu1 %v2717_v58 }
 0x496   :  { %2498 = vmatprep.subr.mxu1 %v2718_v29 }
 0x497   :  { %2499 = vmatpush3.msra.mxu1 %v2718_v29 }
 0x498   :  { %2500 = vmatprep.subr.mxu1 %v2719_v31 }
 0x499   :  { %2501 = vmatpush3.msra.mxu1 %v2719_v31 }
 0x49a   :  { %2502 = vmatprep.subr.mxu1 %v2720_v4 }
 0x49b   :  { %2503 = vmatpush3.msra.mxu1 %v2720_v4 }
 0x49c   :  { %2504 = vmatprep.subr.mxu1 %v2721_v24 }
 0x49d   :  { %2505 = vmatpush3.msra.mxu1 %v2721_v24 }
 0x49e   :  { %2506 = vmatprep.subr.mxu1 %v2722_v23 }
 0x49f   :  { %2507 = vmatpush3.msra.mxu1 %v2722_v23 }
 0x4a0   :  { %2508 = vmatprep.subr.mxu1 %v2723_v35 }
 0x4a1   :  { %2509 = vmatpush3.msra.mxu1 %v2723_v35 }
 0x4a2   :  { %2510 = vmatprep.subr.mxu1 %v2724_v52 }
 0x4a3   :  { %2511 = vmatpush3.msra.mxu1 %v2724_v52 }
 0x4a4   :  { %2512 = vmatprep.subr.mxu1 %v2725_v47 }
 0x4a5   :  { %2513 = vmatpush3.msra.mxu1 %v2725_v47 }
 0x4a6   :  { %2514 = vmatprep.subr.mxu1 %v2726_v36 }
 0x4a7   :  { %2515 = vmatpush3.msra.mxu1 %v2726_v36 }
 0x4a8   :  { %2516 = vmatprep.subr.mxu1 %v2727_v39 }
 0x4a9   :  { %2517 = vmatpush3.msra.mxu1 %v2727_v39 }
 0x4aa   :  { %2518 = vmatprep.subr.mxu1 %v2728_v32 }
 0x4ab   :  { %2519 = vmatpush3.msra.mxu1 %v2728_v32 }
 0x4ac   :  { %2520 = vmatprep.subr.mxu1 %v2729_v20 }
 0x4ad   :  { %2521 = vmatpush3.msra.mxu1 %v2729_v20 }
 0x4ae   :  { %2522 = vmatprep.subr.mxu1 %v2730_v16 }
 0x4af   :  { %2523 = vmatpush3.msra.mxu1 %v2730_v16 }
 0x4b0   :  { %2524 = vmatprep.subr.mxu1 %v2731_v44 }
 0x4b1   :  { %2525 = vmatpush3.msra.mxu1 %v2731_v44 }
 0x4b2   :  { %2527 = vmatmul.mubr.f32.vlgmr.msra.gmra.mxu1 %v3671_v2  ;;  %2564 = vmatprep.subr.mxu1 %v2732_v60  ;;  %v2735_v2 = vld [vmem:[%s4085_s5 + $0x60] sm:$0xff] }
 0x4b3   :  { %2565 = vmatpush3.msra.mxu1 %v2732_v60  ;;  %2596 = vmatprep.mubr.f32.mxu1 %v3841_v54  ;;  %v2736_v54 = vld [vmem:[%s4085_s5 + $0x58] sm:$0xff]  ;;  %s1011_s5 = sld [smem:[#allocation2]] }
 0x4b4   :  { %2566 = vmatprep.subr.mxu1 %v2733_v1 }
 0x4b5   :  { %2567 = vmatpush3.msra.mxu1 %v2733_v1 }
 0x4b6   :  { %2568 = vmatprep.subr.mxu1 %v2734_v59 }
 0x4b7   :  { %2569 = vmatpush3.msra.mxu1 %v2734_v59 }
 0x4b8   :  { %2570 = vmatprep.subr.mxu1 %v2735_v2 }
 0x4b9   :  { %2571 = vmatpush3.msra.mxu1 %v2735_v2 }
 0x4ba   :  { %2572 = vmatprep.subr.mxu1 %v2736_v54 }
 0x4bb   :  { %2573 = vmatpush3.msra.mxu1 %v2736_v54 }
 0x4bc   :  { %2574 = vmatprep.subr.mxu1 %v2737_v0 }
 0x4bd   :  { %2575 = vmatpush3.msra.mxu1 %v2737_v0 }
 0x4be   :  { %2576 = vmatprep.subr.mxu1 %v2738_v5 }
 0x4bf   :  { %2577 = vmatpush3.msra.mxu1 %v2738_v5 }
 0x4c0   :  { %2578 = vmatprep.subr.mxu1 %v2739_v6 }
 0x4c1   :  { %2579 = vmatpush3.msra.mxu1 %v2739_v6 }
 0x4c2   :  { %2580 = vmatprep.subr.mxu1 %v4171_v10  ;;  %v1477_v10 = vpop.f32.mrf.mxu0 }
 0x4c3   :  { %2581 = vmatpush3.msra.mxu1 %v2740_v7 }
 0x4c4   :  { %2582 = vmatprep.subr.mxu1 %v4172_v11 }
 0x4c5   :  { %2583 = vmatpush3.msra.mxu1 %v4172_v11  ;;  %v2563_v11 = vpop.f32.mrf.mxu0 }
 0x4c6   :  { %2584 = vmatprep.subr.mxu1 %v4173_v12 }
 0x4c7   :  { %2585 = vmatpush3.msra.mxu1 %v4173_v12 }
 0x4c8   :  { %2586 = vmatprep.subr.mxu1 %v4174_v13 }
 0x4c9   :  { %2587 = vmatpush3.msra.mxu1 %v4174_v13 }
 0x4ca   :  { %2588 = vmatprep.subr.mxu1 %v4175_v15 }
 0x4cb   :  { %2589 = vmatpush3.msra.mxu1 %v4175_v15 }
 0x4cc   :  { %2590 = vmatprep.subr.mxu1 %v4176_v17 }
 0x4cd   :  { %2591 = vmatpush3.msra.mxu1 %v4176_v17 }
 0x4ce   :  { %2592 = vmatprep.subr.mxu1 %v4177_v21 }
 0x4cf   :  { %2593 = vmatpush3.msra.mxu1 %v4177_v21 }
 0x4d0   :  { %2594 = vmatprep.subr.mxu1 %v4178_v22 }
 0x4d1   :  { %2595 = vmatpush3.msra.mxu1 %v4178_v22 }
 0x4d2   :  { %2597 = vmatmul.mubr.f32.vlgmr.msra.gmra.mxu1 %v3847_v3  ;;  %2604 = vmatprep.subr.mxu1 %v4180_v56 }
 0x4d3   :  { %2605 = vmatpush3.msra.mxu1 %v4180_v56 }
 0x4d4   :  { %2644 = vmatprep.subr.mxu1 %v4150_v57 }
 0x532   :  { %v989_v12 = vpop.f32.mrf.mxu1 }
 0x533   :  { %v993_v13 = vmul.f32 4.6052, %v989_v12 }
 0x534   :  { %v2458_v15 = vpop.f32.mrf.mxu1 }
 0x535   :  { %v3965_v17 = vmul.f32 14.285714, %v993_v13  ;;  %995 = vst.msk [vmem:[#allocation5] sm:$0x1] %vm994_vm5, %v993_v13 }
 0x537   :  { %v997_v21 = vsel %vm994_vm5, %v3965_v17, -inf }
 0x538   :  { %998 = vmax.xlane.f32.xlu1 %v997_v21 }
 0x552   :  { %v3970_v22 = vpop.f32.mrf.mxu1 }
 0x554   :  { %v2493_v3 = vpop.f32.mrf.mxu1 }
 0x572   :  { %v3972_v56 = vpop.f32.mrf.mxu1 }
 0x574   :  { %v3974_v8 = vpop.f32.mrf.mxu1 }
 0x592   :  { %v2598_v9 = vpop.f32.mrf.mxu1 }
 0x593   :  { %v1563_v26 = vsel %vm597_vm1, %v2598_v9, -inf }
 0x594   :  { %v1553_v25 = vpop.f32.mrf.mxu1 }
 0x595   :  { %v1562_v30 = vsel %vm597_vm1, %v1553_v25, -inf }
 0x596   :  { %v1564_v33 = vmax.f32 %v1562_v30, %v1563_v26 }
 0x598   :  { %v1565_v34 = vrot.slane %v1564_v33, 4 }
 0x59a   :  { %v1566_v58 = vmax.f32 %v1564_v33, %v1565_v34 }
 0x59c   :  { %v1567_v29 = vrot.slane %v1566_v58, 2 }
 0x59e   :  { %v1568_v31 = vmax.f32 %v1566_v58, %v1567_v29 }
 0x5a0   :  { %v1569_v4 = vrot.slane %v1568_v31, 1 }
 0x5a2   :  { %v1570_v24 = vmax.f32 %v1568_v31, %v1569_v4 }
 0x5a4   :  { %v1571_v23 = vmax.f32 %v1477_v10, %v1570_v24 }
 0x5a6   :  { %v1578_v35 = vrot.slane %v1571_v23, %v3425_v49  ;;  %v1572_v32 = vsub.f32 %v1477_v10, %v1571_v23  ;;  %v1785_v23 = vld [vmem:[%s4088_s8] sm:$0x1]  ;;  %s2020_s8 = sld [smem:[#allocation2 + $0x1]] }
 0x5a8   :  { %v1579_v52 = vsub.f32 %v1553_v25, %v1578_v35  ;;  %v1580_v47 = vsub.f32 %v2598_v9, %v1578_v35  ;;  %v1573_v20 = vmul.f32 1.442695, %v1572_v32  ;;  %v1012_v32 = vstv %s1011_s5 }
 0x5aa   :  { %v1581_v36 = vmul.f32 1.442695, %v1579_v52  ;;  %v1583_v39 = vmul.f32 1.442695, %v1580_v47 }
 0x5ac   :  { %2696 = vpow2.f32 %v1581_v36  ;;  %v4195_v36 = vlaneseq }
 0x5ad   :  { %2698 = vpow2.f32 %v1583_v39 }
 0x5ae   :  { %2700 = vpow2.f32 %v1573_v20  ;;  %v1010_v39 = vand.u32 127, %v4195_v36 }
 0x5b0   :  { %vm1013_vm6 = vcmp.eq.s32.totalorder %v1010_v39, %v1012_v32 }
 0x5b9   :  { %v2697_v16 = vpop.eup %2696 }
 0x5ba   :  { %v2699_v44 = vpop.eup %2698  ;;  %v1585_v60 = vsel %vm597_vm1, %v2697_v16, 0.0 }
 0x5bb   :  { %v1586_v1 = vsel %vm597_vm1, %v2699_v44, 0.0  ;;  %v2701_v11 = vpop.eup %2700 }
 0x5bc   :  { %v1587_v59 = vadd.f32 %v1586_v1, %v1585_v60  ;;  %v1014_v60 = vsel %vm1013_vm6, %v3965_v17, 0.0 }
 0x5bd   :  { %v1015_v1 = vsel %vm994_vm5, %v1014_v60, 0.0 }
 0x5be   :  { %v1588_v2 = vrot.slane %v1587_v59, 4 }
 0x5c0   :  { %v1589_v54 = vadd.f32 %v1588_v2, %v1587_v59 }
 0x5c2   :  { %v1590_v0 = vrot.slane %v1589_v54, 2 }
 0x5c4   :  { %v1591_v5 = vadd.f32 %v1590_v0, %v1589_v54 }
 0x5c6   :  { %v1592_v6 = vrot.slane %v1591_v5, 1 }
 0x5c8   :  { %v1593_v7 = vadd.f32 %v1592_v6, %v1591_v5 }
 0x5ca   :  { %v1594_v12 = vadd.f32 %v2701_v11, %v1593_v7 }
 0x5cc   :  { %2702 = vrcp.f32 %v1594_v12 }
 0x5d9   :  { %v2703_v13 = vpop.eup %2702 }
 0x5da   :  { %v1596_v10 = vmul.f32 %v2703_v13, %v2701_v11  ;;  %v1600_v15 = vrot.slane %v2703_v13, %v3425_v49  ;;  %v4181_v49 = vld [vmem:[#allocation26_spill] sm:$0xff] }
 0x5dc   :  { %2602 = vmatmul.mubr.msk.f32.vlgmr.msra.gmra.mxu0 %vm597_vm1, %v1596_v10  ;;  %v1601_v21 = vmul.f32 %v2697_v16, %v1600_v15  ;;  %v1602_v3 = vmul.f32 %v2699_v44, %v1600_v15 }
 0x5dd   :  { %2610 = vmatpush3.msra.mxu0 %v3466_v28  ;;  %2641 = vmatprep.mubr.msk.f32.mxu0 %vm2801_vm0, %v4150_v57  ;;  %v4182_v28 = vld [vmem:[#allocation27_spill] sm:$0xff] }
 0x5de   :  { %2606 = vmatprep.mubr.msk.f32.mxu1 %vm597_vm1, %v1601_v21  ;;  %2611 = vmatprep.subr.mxu0 %v4150_v57 }
 0x5df   :  { %2607 = vmatmul.mubr.msk.f32.vlgmr.msra.gmra.mxu1 %vm597_vm1, %v1602_v3  ;;  %2612 = vmatpush3.msra.mxu0 %v3472_v55  ;;  %v4183_v55 = vld [vmem:[#allocation28_spill] sm:$0xff] }
 0x5e0   :  { %2613 = vmatprep.subr.mxu0 %v4150_v57  ;;  %2645 = vmatpush3.msra.mxu1 %v3721_v37  ;;  %v4184_v37 = vld [vmem:[#allocation29_spill] sm:$0xff] }
 0x5e1   :  { %2614 = vmatpush3.msra.mxu0 %v4181_v49  ;;  %2646 = vmatprep.subr.mxu1 %v4150_v57 }
 0x5e2   :  { %2615 = vmatprep.subr.mxu0 %v4150_v57  ;;  %2647 = vmatpush3.msra.mxu1 %v3728_v38  ;;  %v4185_v38 = vld [vmem:[#allocation30_spill] sm:$0xff] }
 0x5e3   :  { %2616 = vmatpush3.msra.mxu0 %v4182_v28  ;;  %2648 = vmatprep.subr.mxu1 %v4150_v57 }
 0x5e4   :  { %2617 = vmatprep.subr.mxu0 %v4150_v57  ;;  %2649 = vmatpush3.msra.mxu1 %v3735_v41  ;;  %v4186_v41 = vld [vmem:[#allocation31_spill] sm:$0xff] }
 0x5e5   :  { %2618 = vmatpush3.msra.mxu0 %v4183_v55  ;;  %2650 = vmatprep.subr.mxu1 %v4150_v57  ;;  %v1972_v55 = vstv %s2020_s8 }
 0x5e6   :  { %2619 = vmatprep.subr.mxu0 %v4150_v57  ;;  %2651 = vmatpush3.msra.mxu1 %v3742_v42  ;;  %v4187_v42 = vld [vmem:[#allocation32_spill] sm:$0xff]  ;;  %vm1973_vm9 = vcmp.eq.s32.totalorder %v1010_v39, %v1972_v55 }
 0x5e7   :  { %2620 = vmatpush3.msra.mxu0 %v4184_v37  ;;  %2652 = vmatprep.subr.mxu1 %v4150_v57 }
 0x5e8   :  { %2621 = vmatprep.subr.mxu0 %v4150_v57  ;;  %2653 = vmatpush3.msra.mxu1 %v3749_v45  ;;  %v4188_v45 = vld [vmem:[#allocation33_spill] sm:$0xff] }
 0x5e9   :  { %2622 = vmatpush3.msra.mxu0 %v4185_v38  ;;  %2654 = vmatprep.subr.mxu1 %v4150_v57 }
 0x5ea   :  { %2623 = vmatprep.subr.mxu0 %v4150_v57  ;;  %2655 = vmatpush3.msra.mxu1 %v3756_v46  ;;  %v4189_v46 = vld [vmem:[#allocation34_spill] sm:$0xff] }
 0x5eb   :  { %2624 = vmatpush3.msra.mxu0 %v4186_v41  ;;  %2656 = vmatprep.subr.mxu1 %v4150_v57 }
 0x5ec   :  { %2625 = vmatprep.subr.mxu0 %v4150_v57  ;;  %2657 = vmatpush3.msra.mxu1 %v3763_v50  ;;  %v4190_v50 = vld [vmem:[#allocation35_spill] sm:$0xff] }
 0x5ed   :  { %2626 = vmatpush3.msra.mxu0 %v4187_v42  ;;  %2658 = vmatprep.subr.mxu1 %v4150_v57 }
 0x5ee   :  { %2627 = vmatprep.subr.mxu0 %v4150_v57  ;;  %2659 = vmatpush3.msra.mxu1 %v3770_v51  ;;  %v4191_v51 = vld [vmem:[#allocation36_spill] sm:$0xff] }
 0x5ef   :  { %2628 = vmatpush3.msra.mxu0 %v4188_v45  ;;  %2660 = vmatprep.subr.mxu1 %v4150_v57 }
 0x5f0   :  { %2629 = vmatprep.subr.mxu0 %v4150_v57  ;;  %2661 = vmatpush3.msra.mxu1 %v3777_v53  ;;  %v4192_v53 = vld [vmem:[#allocation37_spill] sm:$0xff] }
 0x5f1   :  { %2630 = vmatpush3.msra.mxu0 %v4189_v46  ;;  %2662 = vmatprep.subr.mxu1 %v4150_v57 }
 0x5f2   :  { %2631 = vmatprep.subr.mxu0 %v4150_v57  ;;  %2663 = vmatpush3.msra.mxu1 %v3783_v61  ;;  %v4193_v61 = vld [vmem:[#allocation38_spill] sm:$0xff] }
 0x5f3   :  { %2632 = vmatpush3.msra.mxu0 %v4190_v50  ;;  %2664 = vmatprep.subr.mxu1 %v4150_v57 }
 0x5f4   :  { %2633 = vmatprep.subr.mxu0 %v4150_v57  ;;  %2665 = vmatpush3.msra.mxu1 %v3789_v63  ;;  %v4194_v63 = vld [vmem:[#allocation39_spill] sm:$0xff] }
 0x5f5   :  { %2634 = vmatpush3.msra.mxu0 %v4191_v51  ;;  %2666 = vmatprep.subr.mxu1 %v4150_v57 }
 0x5f6   :  { %2635 = vmatprep.subr.mxu0 %v4150_v57  ;;  %2667 = vmatpush3.msra.mxu1 %v3796_v18 }
 0x5f7   :  { %2636 = vmatpush3.msra.mxu0 %v4192_v53  ;;  %2668 = vmatprep.subr.mxu1 %v4150_v57 }
 0x5f8   :  { %2637 = vmatprep.subr.mxu0 %v4150_v57  ;;  %2669 = vmatpush3.msra.mxu1 %v3803_v19  ;;  %v1098_v19 = vrot.slane %v3833_v40, %v132_v27  ;;  %v4057_v40 = vpop.xlane.xlu1 %998 }
 0x5f9   :  { %2638 = vmatpush3.msra.mxu0 %v4193_v61  ;;  %2670 = vmatprep.subr.mxu1 %v4150_v57 }
 0x5fa   :  { %2639 = vmatprep.subr.mxu0 %v4150_v57  ;;  %2671 = vmatpush3.msra.mxu1 %v3810_v62  ;;  %v1390_v25 = vadd.f32 %v3972_v56, %v1098_v19  ;;  %v1385_v26 = vadd.f32 %v3974_v8, %v1098_v19  ;;  %v1000_v56 = vsub.f32 %v3965_v17, %v4057_v40 }
 0x5fb   :  { %2640 = vmatpush3.msra.mxu0 %v4194_v63  ;;  %2672 = vmatprep.subr.mxu1 %v4150_v57 }
 0x5fc   :  { %2673 = vmatpush3.msra.mxu1 %v3817_v14  ;;  %2676 = vmatprep.mubr.msk.f32.mxu1 %vm2801_vm0, %v4150_v57  ;;  %v1001_v8 = vmul.f32 1.442695, %v1000_v56 }
 0x5fd   :  { %2674 = vmatprep.subr.mxu1 %v4150_v57 }
 0x5fe   :  { %2675 = vmatpush3.msra.mxu1 %v3824_v43  ;;  %v1240_v43 = vadd.f32 %v3970_v22, %v1098_v19  ;;  %2704 = vpow2.f32 %v1001_v8 }
 0x60b   :  { %v2705_v16 = vpop.eup %2704 }
 0x60c   :  { %v1003_v44 = vsel %vm994_vm5, %v2705_v16, 0.0 }
 0x69c   :  { %v1673_v18 = vpop.f32.mrf.mxu0 }
 0x69d   :  { %v1677_v48 = vmul.f32 %v1673_v18, %v1240_v43 }
 0x69e   :  { %v2603_v9 = vpop.f32.mrf.mxu0 }
 0x69f   :  { %v2608_v62 = vpop.f32.mrf.mxu1 }
 0x6a0   :  { %v1760_v14 = vmul.f32 %v2608_v62, %v1390_v25 }
 0x6a1   :  { %v1750_v30 = vpop.f32.mrf.mxu1 }
 0x6a2   :  { %v1759_v33 = vmul.f32 %v1750_v30, %v1385_v26 }
 0x6a4   :  { %v1761_v34 = vadd.f32 %v1760_v14, %v1759_v33 }
 0x6a6   :  { %v1762_v58 = vrot.slane %v1761_v34, 4 }
 0x6a8   :  { %v1763_v29 = vadd.f32 %v1762_v58, %v1761_v34 }
 0x6aa   :  { %v1764_v57 = vrot.slane %v1763_v29, 2 }
 0x6ac   :  { %v1765_v31 = vadd.f32 %v1764_v57, %v1763_v29 }
 0x6ae   :  { %v1766_v4 = vrot.slane %v1765_v31, 1 }
 0x6b0   :  { %v1767_v24 = vadd.f32 %v1766_v4, %v1765_v31 }
 0x6b2   :  { %v1768_v27 = vadd.f32 %v1767_v24, %v1677_v48 }
 0x6b4   :  { %2642 = vmatmul.mubr.f32.vlgmr.msra.gmra.mxu0 %v1768_v27 }
 0x774   :  { %v1852_v35 = vpop.f32.mrf.mxu0 }
 0x775   :  { %v1853_v52 = vadd.f32 %v1852_v35, %v1785_v23 }
 0x776   :  { %v2643_v22 = vpop.f32.mrf.mxu0 }
 0x777   :  { %v1856_v47 = vmul.f32 %v1853_v52, %v1853_v52 }
 0x779   :  { %v1857_v20 = vsel %vm893_vm2, %v1856_v47, 0.0 }
 0x77a   :  { %1858 = vadd.xlane.f32.xlu0 %v1857_v20 }
 0x77e   :  { %1004 = vadd.xlane.f32.xlu0 %v1003_v44 }
 0x782   :  { %1016 = vadd.xlane.f32.xlu0 %v1015_v1 }
 0x803   :  { %v1859_v59 = vpop.xlane.xlu0 %1858 }
 0x804   :  { %2706 = vrsqrt.f32 %v1859_v59  ;;  %vm1862_vm7 = vcmp.eq.f32.partialorder %v1859_v59, inf  ;;  %v1865_v0 = vand.u32 2147483648, %v1859_v59  ;;  %vm1864_vm8 = vcmp.eq.f32.partialorder %v1859_v59, 0.0 }
 0x811   :  { %v2707_v2 = vpop.eup %2706 }
 0x812   :  { %v1861_v54 = vmul.f32 %v2707_v2, %v1859_v59 }
 0x814   :  { %v1863_v5 = vsel %vm1862_vm7, %v1859_v59, %v1861_v54 }
 0x815   :  { %v1866_v6 = vsel %vm1864_vm8, %v1865_v0, %v1863_v5 }
 0x816   :  { %v1867_v7 = vmax.f32 %v1866_v6, 1e-12 }
 0x818   :  { %2708 = vrcp.f32 %v1867_v7 }
 0x825   :  { %v2709_v11 = vpop.eup %2708 }
 0x826   :  { %v1869_v12 = vmul.f32 %v2709_v11, %v1853_v52 }
 0x828   :  { %2677 = vmatmul.mubr.f32.vlgmr.msra.gmra.mxu1 %v1869_v12 }
 0x8e8   :  { %v1952_v13 = vpop.f32.mrf.mxu1 }
 0x8e9   :  { %v1956_v10 = vmul.f32 4.6052, %v1952_v13 }
 0x8ea   :  { %v2678_v17 = vpop.f32.mrf.mxu1 }
 0x8eb   :  { %v1958_v15 = vmul.f32 14.285714, %v1956_v10  ;;  %1957 = vst.msk [vmem:[#allocation5 + $0x1] sm:$0x1] %vm994_vm5, %v1956_v10 }
 0x8ed   :  { %v1959_v21 = vsel %vm994_vm5, %v1958_v15, -inf  ;;  %v1974_v41 = vsel %vm1973_vm9, %v1958_v15, 0.0 }
 0x8ee   :  { %1960 = vmax.xlane.f32.xlu1 %v1959_v21  ;;  %v1975_v42 = vsel %vm994_vm5, %v1974_v41, 0.0 }
 0x977   :  { %v1961_v3 = vpop.xlane.xlu1 %1960 }
 0x978   :  { %v1962_v49 = vsub.f32 %v1958_v15, %v1961_v3 }
 0x97a   :  { %v1963_v28 = vmul.f32 1.442695, %v1962_v49 }
 0x97c   :  { %2710 = vpow2.f32 %v1963_v28 }
 0x989   :  { %v2711_v37 = vpop.eup %2710 }
 0x98a   :  { %v1965_v38 = vsel %vm994_vm5, %v2711_v37, 0.0 }
 0x98b   :  { %1966 = vadd.xlane.f32.xlu1 %v1965_v38 }
 0x98f   :  { %1976 = vadd.xlane.f32.xlu1 %v1975_v42 }
 0x990   :  { %2764 = shalt.err (!%p2761_p9)
}
 0x991   :  { %1992 = dma.vmem_to_hbm [thread:$0]  %s1990_s4, 32, %s4091_s11, [#allocation3]   ;;  %v1005_v45 = vpop.xlane.xlu0 %1004  ;;  %vm1981_vm10 = vcmask 0  }
 0x992   :  { %2712 = vlog2.f32 %v1005_v45  ;;  %s2803_s2 = smov [#allocation6]  }
 0x993   :  { %s1999_s20 = sshll.u32 %s2803_s2, 4  ;;  %s2000_s20 = int_to_ptr.vmem [resolvable:$true] %s1999_s20 }
 0x994   :  { %s2773_s11 = scalar_lea.vmem %s2000_s20, 16  ;;  %s2777_s3 = scalar_lea.vmem %s2000_s20, 32 }
 0x995   :  { %v1017_v19 = vpop.xlane.xlu0 %1016  ;;  %p2774_p10 = scmp.ne.s32.totalorder %s2000_s20, %s2773_s11  ;;  %p2778_p11 = scmp.lt.s32.totalorder %s2000_s20, %s2000_s20 }
 0x996   :  { %p2779_p12 = scmp.lt.s32.totalorder %s2777_s3, %s2773_s11 }
 0x998   :  { %p2780_p13 = por %p2779_p12, %p2778_p11 }
 0x99a   :  { %p2781_p0 = pnand %p2780_p13, %p2774_p10 }
 0x99f   :  { %v2713_v50 = vpop.eup %2712 }
 0x9a0   :  { %v1007_v51 = vmul.f32 0.6931472, %v2713_v50 }
 0x9a2   :  { %v1008_v61 = vadd.f32 %v1007_v51, %v4057_v40 }
 0x9a4   :  { %v1018_v62 = vsub.f32 %v1008_v61, %v1017_v19 }
 0xa14   :  { %v1967_v46 = vpop.xlane.xlu1 %1966 }
 0xa15   :  { %2714 = vlog2.f32 %v1967_v46 }
 0xa18   :  { %v1977_v9 = vpop.xlane.xlu1 %1976 }
 0xa22   :  { %v2715_v53 = vpop.eup %2714 }
 0xa23   :  { %v1969_v63 = vmul.f32 0.6931472, %v2715_v53 }
 0xa25   :  { %v1970_v18 = vadd.f32 %v1969_v63, %v1961_v3 }
 0xa27   :  { %v1978_v25 = vsub.f32 %v1970_v18, %v1977_v9 }
 0xa29   :  { %v1979_v26 = vadd.f32 %v1978_v25, %v1018_v62 }
 0xa2b   :  { %v1980_v30 = vmul.f32 0.5, %v1979_v26 }
 0xa2d   :  { %1982 = vst.msk [vmem:[#allocation6] sm:$0x1] %vm1981_vm10, %v1980_v30 }
 0xa2e   :  { %2784 = shalt.err (!%p2781_p0)
}
 0xa2f   :  { %2002 = dma.vmem_to_hbm [thread:$0]  %s2000_s20, 16, %s4092_s12, [#allocation7]  }
 0xa30   :  { %2795 = dma.done.wait [#allocation3], 32  }
 0xa31   :  { %2796 = vsyncadd [#allocation3], 4294967264 }
 0xa32   :  { %2797 = dma.done.wait [#allocation7], 16  }
 0xa33   :  { %2798 = vsyncadd [#allocation7], 4294967280 }
 0xa34   :  { %2009 = vsyncpa [#allocation3], 1 }
 0xa35   :  { %2010 = vsyncpa [#allocation7], 1 }
 0xa36   :  { %2011 = vsyncpa [#allocation4], 1 }

// kernel: _lambda_.2
= control target key start
LH: loop header
LB: loop body
LE: loop exit
PB: predicated region body
PF: predicated region fallthrough
CT: control target
= control target key end

     0   :  { %s3593_s17 = smov 0   ;;  %s4440_s0 = inlined_call_operand.vmem [shape: f32[2,128,16], index: 0, kind: input, shape index: {}]   ;;  %s4441_s1 = inlined_call_operand.vmem [shape: f32[2,128,64], index: 1, kind: input, shape index: {}]   ;;  %s4442_s2 = inlined_call_operand.vmem [shape: f32[2,128,256], index: 2, kind: input, shape index: {}]   ;;  %s4443_s3 = inlined_call_operand.vmem [shape: f32[2,96,1024], index: 3, kind: input, shape index: {}]   ;;  %s4444_s4 = inlined_call_operand.vmem [shape: bf16[128,128], index: 4, kind: input, shape index: {}]   ;;  %s4445_s5 = inlined_call_operand.vmem [shape: bf16[128,128], index: 5, kind: input, shape index: {}]   ;;  %s4446_s6 = inlined_call_operand.vmem [shape: bf16[128,128], index: 6, kind: input, shape index: {}]   ;;  %s4447_s7 = inlined_call_operand.vmem [shape: bf16[128,96], index: 7, kind: input, shape index: {}]   ;;  %s4448_s8 = inlined_call_operand.vmem [shape: bf16[64,16], index: 8, kind: input, shape index: {}]   ;;  %s4449_s9 = inlined_call_operand.vmem [shape: bf16[256,16], index: 9, kind: input, shape index: {}]   ;;  %s4450_s10 = inlined_call_operand.vmem [shape: bf16[1024,16], index: 10, kind: input, shape index: {}]   ;;  %s4451_s11 = inlined_call_operand.vmem [shape: f32[2,128,16], index: 11, kind: output, shape index: {}]  }
   0x1 LB: > { %s2742_s18 = sadd.s32 4294967295, %s3531_s17   ;;  %p2746_p0 = scmp.ge.s32.totalorder %s3531_s17, 1  ;;  %s3531_s17 = sphi %s3593_s17, %s21_s17  }
   0x2   : > { %p367_p1 = scmp.lt.s32.totalorder %s3531_s17, 3 }
   0x4   : > { %p368_p2 = pnand %p2746_p0, %p367_p1 }
   0x6   : > { %371 = sbr.rel (%p368_p2) target bundleno = 1177 (0x499), region = 64 }
   0xb   : > { %v3409_v0 = vld [vmem:[%s4448_s8 + $0x18] sm:$0xff]   ;;  %p422_p3 = scmp.lt.s32.totalorder %s2742_s18, 1  ;;  %v3410_v1 = vld [vmem:[%s4448_s8 + $0x10] sm:$0xff]   ;;  %v3411_v2 = vld [vmem:[%s4448_s8 + $0x8] sm:$0xff]   ;;  %vm544_vm0 = vcmask 523264   ;;  %vm2480_vm1 = vcmask 785408  }
   0xc   : > { %3240 = vmatprep.subr.bf16.mxu0 %v3409_v0  ;;  %v3412_v6 = vld [vmem:[%s4448_s8] sm:$0xff]   ;;  %v3416_v54 = vld [vmem:[%s4444_s4 + $0x8] sm:$0xff]   ;;  %v3422_v55 = vld [vmem:[%s4444_s4 + $0x10] sm:$0xff]   ;;  %vm2634_vm2 = vcmask 130048  }
   0xd   : > { %s4473_s18 = smov (!%p422_p3, %s2742_s18), 1  ;;  %3241 = vmatpush3.bf16.msra.mxu0 %v3409_v0  ;;  %v3413_v52 = vld [vmem:[%s4445_s5] sm:$0xff]   ;;  %v3424_v56 = vld [vmem:[%s4444_s4 + $0x18] sm:$0xff]   ;;  %v3432_v58 = vld [vmem:[%s4444_s4 + $0x28] sm:$0xff]  }
   0xe   : > { %3242 = vmatprep.subr.bf16.mxu0 %v3410_v1  ;;  %s3613_s25 = sshll.u32 %s4473_s18, 7  ;;  %v3414_v53 = vld [vmem:[%s4444_s4] sm:$0xff]   ;;  %3280 = vmatprep.mubr.bf16.mxu1 %v3413_v52  ;;  %v3438_v59 = vld [vmem:[%s4444_s4 + $0x30] sm:$0xff]   ;;  %v3440_v60 = vld [vmem:[%s4444_s4 + $0x38] sm:$0xff]   ;;  %s2892_s30 = sshll.u32 %s4473_s18, 8 }
   0xf   : > { %s3619_s28 = scalar_lea.vmem %s4441_s1, %s3613_s25  ;;  %s3652_s14 = scalar_lea.vmem %s4440_s0, %s3613_s25  ;;  %v3430_v57 = vld [vmem:[%s4444_s4 + $0x20] sm:$0xff]  }
  0x10   : > { %v488_v3 = vld [vmem:[%s3619_s28] sm:$0xff]  ;;  %v489_v4 = vld [vmem:[%s3619_s28 + $0x8] sm:$0xff]  ;;  %v490_v7 = vld [vmem:[%s3619_s28 + $0x10] sm:$0xff]  ;;  %s3752_s24 = scalar_lea.vmem %s4442_s2, %s2892_s30  ;;  %s3400_s13 = smul.u32 768, %s4473_s18 }
  0x11   : > { %3243 = vmatpush3.bf16.msra.mxu0 %v3410_v1  ;;  %v504_v5 = vpack.c.bf16 %v489_v4, %v488_v3  ;;  %v491_v8 = vld [vmem:[%s3619_s28 + $0x18] sm:$0xff]  ;;  %v492_v9 = vld [vmem:[%s3619_s28 + $0x20] sm:$0xff]  ;;  %v493_v10 = vld [vmem:[%s3619_s28 + $0x28] sm:$0xff]  ;;  %s4389_s26 = scalar_lea.vmem %s4451_s11, %s3613_s25 }
  0x12   : > { %3244 = vmatprep.subr.bf16.mxu0 %v3411_v2  ;;  %v505_v11 = vpack.c.bf16 %v491_v8, %v490_v7  ;;  %v506_v12 = vpack.c.bf16 %v493_v10, %v492_v9  ;;  %v494_v13 = vld [vmem:[%s3619_s28 + $0x30] sm:$0xff]  ;;  %v495_v14 = vld [vmem:[%s3619_s28 + $0x38] sm:$0xff]  ;;  %v496_v15 = vld [vmem:[%s3619_s28 + $0x40] sm:$0xff]  ;;  %s3877_s22 = scalar_lea.vmem %s4443_s3, %s3400_s13 }
  0x13   : > { %3248 = vmatprep.mubr.msk.bf16.mxu0 %vm544_vm0, %v504_v5  ;;  %v497_v16 = vld [vmem:[%s3619_s28 + $0x48] sm:$0xff]  ;;  %v507_v17 = vpack.c.bf16 %v495_v14, %v494_v13  ;;  %v498_v19 = vld [vmem:[%s3619_s28 + $0x50] sm:$0xff]  ;;  %v499_v20 = vld [vmem:[%s3619_s28 + $0x58] sm:$0xff] }
  0x14   : > { %v508_v18 = vpack.c.bf16 %v497_v16, %v496_v15  ;;  %v500_v21 = vld [vmem:[%s3619_s28 + $0x60] sm:$0xff]  ;;  %v501_v22 = vld [vmem:[%s3619_s28 + $0x68] sm:$0xff]  ;;  %v509_v23 = vpack.c.bf16 %v499_v20, %v498_v19  ;;  %v502_v25 = vld [vmem:[%s3619_s28 + $0x70] sm:$0xff] }
  0x15   : > { %3245 = vmatpush3.bf16.msra.mxu0 %v3411_v2  ;;  %v510_v24 = vpack.c.bf16 %v501_v22, %v500_v21  ;;  %v503_v26 = vld [vmem:[%s3619_s28 + $0x78] sm:$0xff]  ;;  %v462_v28 = vld [vmem:[%s3652_s14 + $0x70] sm:$0xff]  ;;  %v460_v31 = vld [vmem:[%s3652_s14 + $0x60] sm:$0xff] }
  0x16   : > { %3246 = vmatprep.subr.bf16.mxu0 %v3412_v6  ;;  %v511_v27 = vpack.c.bf16 %v503_v26, %v502_v25  ;;  %v463_v29 = vld [vmem:[%s3652_s14 + $0x78] sm:$0xff]  ;;  %v461_v32 = vld [vmem:[%s3652_s14 + $0x68] sm:$0xff]  ;;  %v458_v34 = vld [vmem:[%s3652_s14 + $0x50] sm:$0xff] }
  0x17   : > { %v471_v30 = vpack.c.bf16 %v463_v29, %v462_v28  ;;  %v470_v33 = vpack.c.bf16 %v461_v32, %v460_v31  ;;  %v459_v35 = vld [vmem:[%s3652_s14 + $0x58] sm:$0xff]  ;;  %v456_v37 = vld [vmem:[%s3652_s14 + $0x40] sm:$0xff]  ;;  %v457_v38 = vld [vmem:[%s3652_s14 + $0x48] sm:$0xff] }
  0x18   : > { %v469_v36 = vpack.c.bf16 %v459_v35, %v458_v34  ;;  %v468_v39 = vpack.c.bf16 %v457_v38, %v456_v37  ;;  %v454_v40 = vld [vmem:[%s3652_s14 + $0x30] sm:$0xff]  ;;  %v455_v41 = vld [vmem:[%s3652_s14 + $0x38] sm:$0xff]  ;;  %v452_v43 = vld [vmem:[%s3652_s14 + $0x20] sm:$0xff] }
  0x19   : > { %3247 = vmatpush3.bf16.msra.mxu0 %v3412_v6  ;;  %v467_v42 = vpack.c.bf16 %v455_v41, %v454_v40  ;;  %v453_v44 = vld [vmem:[%s3652_s14 + $0x28] sm:$0xff]  ;;  %v450_v46 = vld [vmem:[%s3652_s14 + $0x10] sm:$0xff]  ;;  %v451_v47 = vld [vmem:[%s3652_s14 + $0x18] sm:$0xff] }
  0x1a   : > { %3296 = vmatprep.subr.bf16.mxu0 %v471_v30  ;;  %v466_v45 = vpack.c.bf16 %v453_v44, %v452_v43  ;;  %v465_v48 = vpack.c.bf16 %v451_v47, %v450_v46  ;;  %v448_v49 = vld [vmem:[%s3652_s14] sm:$0xff]  ;;  %v449_v50 = vld [vmem:[%s3652_s14 + $0x8] sm:$0xff]  ;;  %v3417_v21 = vld [vmem:[%s4449_s9 + $0x78] sm:$0xff]  }
  0x1b   : > { %v464_v51 = vpack.c.bf16 %v449_v50, %v448_v49  ;;  %v3415_v22 = vld [vmem:[%s4445_s5 + $0x8] sm:$0xff]   ;;  %v3419_v25 = vld [vmem:[%s4449_s9 + $0x70] sm:$0xff]   ;;  %v3423_v28 = vld [vmem:[%s4445_s5 + $0x18] sm:$0xff]  }
  0x1c   : > { %3249 = vmatmul.mubr.msk.bf16.vlgmr.msra.gmra.mxu0 %vm544_vm0, %v505_v11  ;;  %v3420_v26 = vld [vmem:[%s4449_s9 + $0x30] sm:$0xff]   ;;  %v3426_v29 = vld [vmem:[%s4449_s9 + $0x28] sm:$0xff]   ;;  %v3427_v31 = vld [vmem:[%s4449_s9 + $0x60] sm:$0xff]  }
  0x1d   : > { %3252 = vmatprep.mubr.msk.bf16.mxu0 %vm544_vm0, %v506_v12  ;;  %3297 = vmatpush3.bf16.msra.mxu0 %v471_v30  ;;  %v3429_v30 = vld [vmem:[%s4445_s5 + $0x20] sm:$0xff]   ;;  %v3431_v34 = vld [vmem:[%s4445_s5 + $0x28] sm:$0xff]   ;;  %v3434_v35 = vld [vmem:[%s4449_s9 + $0x18] sm:$0xff]  }
  0x1e   : > { %3298 = vmatprep.subr.bf16.mxu0 %v470_v33  ;;  %v3428_v32 = vld [vmem:[%s4449_s9 + $0x20] sm:$0xff]   ;;  %v3435_v37 = vld [vmem:[%s4449_s9 + $0x50] sm:$0xff]   ;;  %v981_v40 = vld [vmem:[%s3752_s24 + $0x8] sm:$0xff] }
  0x1f   : > { %v3436_v38 = vld [vmem:[%s4449_s9 + $0x10] sm:$0xff]   ;;  %v983_v41 = vld [vmem:[%s3752_s24 + $0x18] sm:$0xff]  ;;  %v3442_v43 = vld [vmem:[%s4449_s9 + $0x8] sm:$0xff]  }
  0x20   : > { %v1013_v44 = vpack.c.bf16 %v983_v41, %v981_v40  ;;  %v3444_v46 = vld [vmem:[%s4449_s9] sm:$0xff]   ;;  %v985_v49 = vld [vmem:[%s3752_s24 + $0x28] sm:$0xff]  ;;  %v987_v50 = vld [vmem:[%s3752_s24 + $0x38] sm:$0xff] }
  0x21   : > { %3299 = vmatpush3.bf16.msra.mxu0 %v470_v33  ;;  %v3433_v33 = vld [vmem:[%s4449_s9 + $0x58] sm:$0xff]   ;;  %v980_v47 = vld [vmem:[%s3752_s24] sm:$0xff]  ;;  %v1015_v52 = vpack.c.bf16 %v987_v50, %v985_v49  ;;  %v3472_v50 = vld [vmem:[%s4450_s10 + $0x90] sm:$0xff]  }
  0x22   : > { %3300 = vmatprep.subr.bf16.mxu0 %v469_v36  ;;  %v3460_v40 = vld [vmem:[%s4450_s10 + $0xe0] sm:$0xff]  }
  0x24   : > { %3253 = vmatmul.mubr.msk.bf16.gmra.mxu0 %vm544_vm0, %v507_v17 }
  0x25   : > { %3256 = vmatprep.mubr.msk.bf16.mxu0 %vm544_vm0, %v508_v18  ;;  %3301 = vmatpush3.bf16.msra.mxu0 %v469_v36  ;;  %v3437_v36 = vld [vmem:[%s4445_s5 + $0x30] sm:$0xff]  }
  0x26   : > { %3302 = vmatprep.subr.bf16.mxu0 %v468_v39 }
  0x29   : > { %3303 = vmatpush3.bf16.msra.mxu0 %v468_v39  ;;  %v3441_v39 = vld [vmem:[%s4449_s9 + $0x48] sm:$0xff]  }
  0x2a   : > { %3304 = vmatprep.subr.bf16.mxu0 %v467_v42 }
  0x2c   : > { %3257 = vmatmul.mubr.msk.bf16.gmra.mxu0 %vm544_vm0, %v509_v23  ;;  %v3418_v23 = vld [vmem:[%s4449_s9 + $0x38] sm:$0xff]  }
  0x2d   : > { %3260 = vmatprep.mubr.msk.bf16.mxu0 %vm544_vm0, %v510_v24  ;;  %3305 = vmatpush3.bf16.msra.mxu0 %v467_v42  ;;  %v3421_v24 = vld [vmem:[%s4445_s5 + $0x10] sm:$0xff]   ;;  %v3439_v42 = vld [vmem:[%s4445_s5 + $0x38] sm:$0xff]  }
  0x2e   : > { %3306 = vmatprep.subr.bf16.mxu0 %v466_v45 }
  0x31   : > { %3307 = vmatpush3.bf16.msra.mxu0 %v466_v45  ;;  %v3443_v45 = vld [vmem:[%s4449_s9 + $0x40] sm:$0xff]  }
  0x32   : > { %3308 = vmatprep.subr.bf16.mxu0 %v465_v48 }
  0x34   : > { %3261 = vmatmul.mubr.msk.bf16.gmra.mxu0 %vm544_vm0, %v511_v27  ;;  %v3425_v27 = vld [vmem:[%s4449_s9 + $0x68] sm:$0xff]  }
  0x35   : > { %3309 = vmatpush3.bf16.msra.mxu0 %v465_v48  ;;  %3312 = vmatprep.mubr.bf16.mxu0 %v3414_v53  ;;  %v982_v48 = vld [vmem:[%s3752_s24 + $0x10] sm:$0xff]  ;;  %v984_v53 = vld [vmem:[%s3752_s24 + $0x20] sm:$0xff] }
  0x36   : > { %3310 = vmatprep.subr.bf16.mxu0 %v464_v51 }
  0x39   : > { %3311 = vmatpush3.bf16.msra.mxu0 %v464_v51  ;;  %v1012_v51 = vpack.c.bf16 %v982_v48, %v980_v47  ;;  %v3470_v48 = vld [vmem:[%s4450_s10 + $0xd0] sm:$0xff]  }
  0x3c   : > { %3313 = vmatmul.mubr.bf16.vlgmr.msra.gmra.mxu0 %v3416_v54  ;;  %v986_v54 = vld [vmem:[%s3752_s24 + $0x30] sm:$0xff] }
  0x3d   : > { %3316 = vmatprep.mubr.bf16.mxu0 %v3422_v55  ;;  %v989_v55 = vld [vmem:[%s3752_s24 + $0x48] sm:$0xff] }
  0x44   : > { %3317 = vmatmul.mubr.bf16.gmra.mxu0 %v3424_v56  ;;  %v991_v56 = vld [vmem:[%s3752_s24 + $0x58] sm:$0xff] }
  0x45   : > { %3320 = vmatprep.mubr.bf16.mxu0 %v3430_v57  ;;  %v1014_v57 = vpack.c.bf16 %v986_v54, %v984_v53  ;;  %v3476_v54 = vld [vmem:[%s4450_s10 + $0x88] sm:$0xff]  }
  0x4c   : > { %3321 = vmatmul.mubr.bf16.gmra.mxu0 %v3432_v58  ;;  %v1017_v58 = vpack.c.bf16 %v991_v56, %v989_v55  ;;  %v3480_v56 = vld [vmem:[%s4450_s10 + $0xc0] sm:$0xff]  }
  0x4d   : > { %3324 = vmatprep.mubr.bf16.mxu0 %v3438_v59  ;;  %v988_v59 = vld [vmem:[%s3752_s24 + $0x40] sm:$0xff] }
  0x54   : > { %3325 = vmatmul.mubr.bf16.gmra.mxu0 %v3440_v60  ;;  %v990_v60 = vld [vmem:[%s3752_s24 + $0x50] sm:$0xff] }
  0xdc   : > { %v3250_v61 = vpop.f32.mrf.mxu0 }
  0xde   : > { %v603_v62 = vpop.f32.mrf.mxu0 }
  0xe0   : > { %v3251_v63 = vpop.f32.mrf.mxu0 }
  0xe1   : > { %v667_v19 = vpack.c.bf16 %v3251_v63, %v3250_v61  ;;  %v993_v61 = vld [vmem:[%s3752_s24 + $0x68] sm:$0xff]  ;;  %v1016_v63 = vpack.c.bf16 %v990_v60, %v988_v59  ;;  %v1441_v59 = vld [vmem:[%s3877_s22 + $0x18] sm:$0xff] }
  0xe2   : > { %v606_v0 = vpop.f32.mrf.mxu0  ;;  %v1449_v60 = vld [vmem:[%s3877_s22 + $0x58] sm:$0xff] }
  0xe3   : > { %v666_v20 = vpack.c.bf16 %v606_v0, %v603_v62  ;;  %v995_v62 = vld [vmem:[%s3752_s24 + $0x78] sm:$0xff] }
  0xe4   : > { %v3254_v1 = vpop.f32.mrf.mxu0  ;;  %v1019_v0 = vpack.c.bf16 %v995_v62, %v993_v61  ;;  %v1537_v62 = vpack.c.bf16 %v1449_v60, %v1441_v59  ;;  %v3496_v60 = vld [vmem:[%s4450_s10 + $0x1e0] sm:$0xff]  }
  0xe6   : > { %v619_v2 = vpop.f32.mrf.mxu0 }
  0xe8   : > { %v3255_v3 = vpop.f32.mrf.mxu0 }
  0xe9   : > { %v669_v17 = vpack.c.bf16 %v3255_v3, %v3254_v1  ;;  %v992_v1 = vld [vmem:[%s3752_s24 + $0x60] sm:$0xff]  ;;  %v997_v3 = vld [vmem:[%s3752_s24 + $0x88] sm:$0xff] }
  0xea   : > { %v622_v4 = vpop.f32.mrf.mxu0 }
  0xeb   : > { %v668_v18 = vpack.c.bf16 %v622_v4, %v619_v2  ;;  %v994_v2 = vld [vmem:[%s3752_s24 + $0x70] sm:$0xff]  ;;  %v999_v4 = vld [vmem:[%s3752_s24 + $0x98] sm:$0xff] }
  0xec   : > { %v3258_v5 = vpop.f32.mrf.mxu0 }
  0xee   : > { %v635_v6 = vpop.f32.mrf.mxu0 }
  0xf0   : > { %v3259_v7 = vpop.f32.mrf.mxu0 }
  0xf1   : > { %v671_v15 = vpack.c.bf16 %v3259_v7, %v3258_v5  ;;  %v1018_v5 = vpack.c.bf16 %v994_v2, %v992_v1  ;;  %v996_v7 = vld [vmem:[%s3752_s24 + $0x80] sm:$0xff] }
  0xf2   : > { %v638_v8 = vpop.f32.mrf.mxu0 }
  0xf3   : > { %v670_v16 = vpack.c.bf16 %v638_v8, %v635_v6  ;;  %v1021_v6 = vpack.c.bf16 %v999_v4, %v997_v3  ;;  %v998_v8 = vld [vmem:[%s3752_s24 + $0x90] sm:$0xff] }
  0xf4   : > { %v3262_v9 = vpop.f32.mrf.mxu0 }
  0xf6   : > { %v651_v10 = vpop.f32.mrf.mxu0 }
  0xf8   : > { %v3263_v11 = vpop.f32.mrf.mxu0 }
  0xf9   : > { %v673_v12 = vpack.c.bf16 %v3263_v11, %v3262_v9  ;;  %v1001_v9 = vld [vmem:[%s3752_s24 + $0xa8] sm:$0xff]  ;;  %v1020_v11 = vpack.c.bf16 %v998_v8, %v996_v7  ;;  %v1465_v7 = vld [vmem:[%s3877_s22 + $0xd8] sm:$0xff]  ;;  %v1456_v8 = vld [vmem:[%s3877_s22 + $0x90] sm:$0xff] }
  0xfa   : > { %v654_v13 = vpop.f32.mrf.mxu0 }
  0xfb   : > { %v672_v14 = vpack.c.bf16 %v654_v13, %v651_v10  ;;  %3264 = vmatprep.subr.bf16.mxu1 %v673_v12  ;;  %v1003_v10 = vld [vmem:[%s3752_s24 + $0xb8] sm:$0xff]  ;;  %v1000_v13 = vld [vmem:[%s3752_s24 + $0xa0] sm:$0xff] }
  0xfc   : > { %3265 = vmatpush3.bf16.msra.mxu1 %v673_v12  ;;  %v1023_v12 = vpack.c.bf16 %v1003_v10, %v1001_v9 }
  0xfd   : > { %3266 = vmatprep.subr.bf16.mxu1 %v672_v14 }
 0x100   : > { %3267 = vmatpush3.bf16.msra.mxu1 %v672_v14  ;;  %v1002_v14 = vld [vmem:[%s3752_s24 + $0xb0] sm:$0xff] }
 0x101   : > { %3268 = vmatprep.subr.bf16.mxu1 %v671_v15 }
 0x104   : > { %3269 = vmatpush3.bf16.msra.mxu1 %v671_v15  ;;  %v1005_v15 = vld [vmem:[%s3752_s24 + $0xc8] sm:$0xff] }
 0x105   : > { %3270 = vmatprep.subr.bf16.mxu1 %v670_v16 }
 0x108   : > { %3271 = vmatpush3.bf16.msra.mxu1 %v670_v16  ;;  %v1007_v16 = vld [vmem:[%s3752_s24 + $0xd8] sm:$0xff] }
 0x109   : > { %3272 = vmatprep.subr.bf16.mxu1 %v669_v17 }
 0x10c   : > { %3273 = vmatpush3.bf16.msra.mxu1 %v669_v17  ;;  %v1022_v17 = vpack.c.bf16 %v1002_v14, %v1000_v13 }
 0x10d   : > { %3274 = vmatprep.subr.bf16.mxu1 %v668_v18 }
 0x110   : > { %3275 = vmatpush3.bf16.msra.mxu1 %v668_v18  ;;  %v1025_v18 = vpack.c.bf16 %v1007_v16, %v1005_v15 }
 0x111   : > { %3276 = vmatprep.subr.bf16.mxu1 %v667_v19 }
 0x114   : > { %3277 = vmatpush3.bf16.msra.mxu1 %v667_v19  ;;  %v1004_v19 = vld [vmem:[%s3752_s24 + $0xc0] sm:$0xff] }
 0x115   : > { %3278 = vmatprep.subr.bf16.mxu1 %v666_v20 }
 0x118   : > { %3279 = vmatpush3.bf16.msra.mxu1 %v666_v20  ;;  %v1006_v20 = vld [vmem:[%s3752_s24 + $0xd0] sm:$0xff] }
 0x119   : > { %2938 = vmatprep.subr.bf16.mxu1 %v3417_v21  ;;  %v1009_v21 = vld [vmem:[%s3752_s24 + $0xe8] sm:$0xff] }
 0x11b   : > { %3281 = vmatmul.mubr.bf16.vlgmr.msra.gmra.mxu1 %v3415_v22  ;;  %v1011_v22 = vld [vmem:[%s3752_s24 + $0xf8] sm:$0xff] }
 0x11c   : > { %2939 = vmatpush3.bf16.msra.mxu1 %v3418_v23  ;;  %3284 = vmatprep.mubr.bf16.mxu1 %v3421_v24  ;;  %v1024_v23 = vpack.c.bf16 %v1006_v20, %v1004_v19  ;;  %v1027_v24 = vpack.c.bf16 %v1011_v22, %v1009_v21  ;;  %v1473_v19 = vld [vmem:[%s3877_s22 + $0x118] sm:$0xff]  ;;  %v1472_v21 = vld [vmem:[%s3877_s22 + $0x110] sm:$0xff] }
 0x11d   : > { %2940 = vmatprep.subr.bf16.mxu1 %v3419_v25  ;;  %v1008_v25 = vld [vmem:[%s3752_s24 + $0xe0] sm:$0xff]  ;;  %v1481_v20 = vld [vmem:[%s3877_s22 + $0x158] sm:$0xff] }
 0x120   : > { %2941 = vmatpush3.bf16.msra.mxu1 %v3420_v26  ;;  %v1010_v26 = vld [vmem:[%s3752_s24 + $0xf0] sm:$0xff] }
 0x121   : > { %2942 = vmatprep.subr.bf16.mxu1 %v3425_v27  ;;  %v1026_v27 = vpack.c.bf16 %v1010_v26, %v1008_v25  ;;  %v3485_v25 = vld [vmem:[%s4450_s10 + $0x1f8] sm:$0xff]  }
 0x122   : > { %v3486_v26 = vld [vmem:[%s4450_s10 + $0x1b8] sm:$0xff]  }
 0x123   : > { %3285 = vmatmul.mubr.bf16.gmra.mxu1 %v3423_v28  ;;  %v3445_v28 = vld [vmem:[%s4450_s10 + $0xf8] sm:$0xff]  }
 0x124   : > { %2943 = vmatpush3.bf16.msra.mxu1 %v3426_v29  ;;  %3288 = vmatprep.mubr.bf16.mxu1 %v3429_v30  ;;  %v3446_v29 = vld [vmem:[%s4450_s10 + $0xb8] sm:$0xff]  }
 0x125   : > { %2944 = vmatprep.subr.bf16.mxu1 %v3427_v31  ;;  %v3447_v31 = vld [vmem:[%s4446_s6] sm:$0xff]  }
 0x126   : > { %3344 = vmatprep.mubr.bf16.mxu0 %v3447_v31 }
 0x128   : > { %2945 = vmatpush3.bf16.msra.mxu1 %v3428_v32  ;;  %v3450_v32 = vld [vmem:[%s4450_s10 + $0xf0] sm:$0xff]  }
 0x129   : > { %2946 = vmatprep.subr.bf16.mxu1 %v3433_v33 }
 0x12b   : > { %3289 = vmatmul.mubr.bf16.gmra.mxu1 %v3431_v34  ;;  %v3452_v34 = vld [vmem:[%s4450_s10 + $0xb0] sm:$0xff]  }
 0x12c   : > { %2947 = vmatpush3.bf16.msra.mxu1 %v3434_v35  ;;  %3292 = vmatprep.mubr.bf16.mxu1 %v3437_v36  ;;  %v3454_v36 = vld [vmem:[%s4450_s10 + $0xe8] sm:$0xff]  }
 0x12d   : > { %2948 = vmatprep.subr.bf16.mxu1 %v3435_v37 }
 0x130   : > { %2949 = vmatpush3.bf16.msra.mxu1 %v3436_v38  ;;  %v3456_v38 = vld [vmem:[%s4450_s10 + $0xa8] sm:$0xff]  }
 0x131   : > { %2950 = vmatprep.subr.bf16.mxu1 %v3441_v39 }
 0x133   : > { %3293 = vmatmul.mubr.bf16.gmra.mxu1 %v3439_v42  ;;  %v3462_v42 = vld [vmem:[%s4450_s10 + $0xa0] sm:$0xff]  }
 0x134   : > { %2951 = vmatpush3.bf16.msra.mxu1 %v3442_v43  ;;  %1188 = vmatprep.mubr.bf16.mxu1 %v1013_v44  ;;  %v3464_v44 = vld [vmem:[%s4450_s10 + $0xd8] sm:$0xff]  }
 0x135   : > { %2952 = vmatprep.subr.bf16.mxu1 %v3443_v45 }
 0x138   : > { %2953 = vmatpush3.bf16.msra.mxu1 %v3444_v46  ;;  %v3466_v46 = vld [vmem:[%s4450_s10 + $0x98] sm:$0xff]  }
 0x139   : > { %3070 = vmatprep.subr.bf16.mxu1 %v3445_v28 }
 0x13b   : > { %1189 = vmatmul.mubr.bf16.vlgmr.msra.gmra.mxu1 %v1012_v51 }
 0x13c   : > { %1196 = vmatprep.mubr.bf16.mxu1 %v1015_v52  ;;  %3071 = vmatpush3.bf16.msra.mxu1 %v3446_v29  ;;  %v3474_v52 = vld [vmem:[%s4450_s10 + $0xc8] sm:$0xff]  }
 0x13d   : > { %3072 = vmatprep.subr.bf16.mxu1 %v3450_v32 }
 0x140   : > { %3073 = vmatpush3.bf16.msra.mxu1 %v3452_v34  ;;  %v3488_v34 = vld [vmem:[%s4450_s10 + $0x1f0] sm:$0xff]  }
 0x141   : > { %3074 = vmatprep.subr.bf16.mxu1 %v3454_v36 }
 0x143   : > { %1197 = vmatmul.mubr.bf16.gmra.mxu1 %v1014_v57 }
 0x144   : > { %1204 = vmatprep.mubr.bf16.mxu1 %v1017_v58  ;;  %3075 = vmatpush3.bf16.msra.mxu1 %v3456_v38  ;;  %v3482_v58 = vld [vmem:[%s4450_s10 + $0x80] sm:$0xff]   ;;  %v3490_v38 = vld [vmem:[%s4450_s10 + $0x1b0] sm:$0xff]  }
 0x145   : > { %3076 = vmatprep.subr.bf16.mxu1 %v3460_v40  ;;  %v1489_v40 = vld [vmem:[%s3877_s22 + $0x198] sm:$0xff] }
 0x148   : > { %3077 = vmatpush3.bf16.msra.mxu1 %v3462_v42  ;;  %v1497_v42 = vld [vmem:[%s3877_s22 + $0x1d8] sm:$0xff] }
 0x149   : > { %3078 = vmatprep.subr.bf16.mxu1 %v3464_v44  ;;  %v1488_v44 = vld [vmem:[%s3877_s22 + $0x190] sm:$0xff] }
 0x14b   : > { %1205 = vmatmul.mubr.bf16.gmra.mxu1 %v1016_v63  ;;  %v1440_v63 = vld [vmem:[%s3877_s22 + $0x10] sm:$0xff] }
 0x14c   : > { %1212 = vmatprep.mubr.bf16.mxu1 %v1019_v0  ;;  %3079 = vmatpush3.bf16.msra.mxu1 %v3466_v46  ;;  %v1448_v0 = vld [vmem:[%s3877_s22 + $0x50] sm:$0xff] }
 0x14d   : > { %3080 = vmatprep.subr.bf16.mxu1 %v3470_v48  ;;  %v1536_v1 = vpack.c.bf16 %v1448_v0, %v1440_v63  ;;  %v1561_v48 = vpack.c.bf16 %v1497_v42, %v1489_v40  ;;  %v3498_v63 = vld [vmem:[%s4450_s10 + $0x1a0] sm:$0xff]   ;;  %v1505_v0 = vld [vmem:[%s3877_s22 + $0x218] sm:$0xff] }
 0x150   : > { %3081 = vmatpush3.bf16.msra.mxu1 %v3472_v50  ;;  %v1496_v50 = vld [vmem:[%s3877_s22 + $0x1d0] sm:$0xff] }
 0x151   : > { %3082 = vmatprep.subr.bf16.mxu1 %v3474_v52  ;;  %v3492_v52 = vld [vmem:[%s4450_s10 + $0x1e8] sm:$0xff]  }
 0x153   : > { %1213 = vmatmul.mubr.bf16.gmra.mxu1 %v1018_v5 }
 0x154   : > { %1220 = vmatprep.mubr.bf16.mxu1 %v1021_v6  ;;  %3083 = vmatpush3.bf16.msra.mxu1 %v3476_v54  ;;  %v1457_v6 = vld [vmem:[%s3877_s22 + $0x98] sm:$0xff]  ;;  %v1560_v54 = vpack.c.bf16 %v1496_v50, %v1488_v44  ;;  %v1444_v44 = vld [vmem:[%s3877_s22 + $0x30] sm:$0xff] }
 0x155   : > { %3084 = vmatprep.subr.bf16.mxu1 %v3480_v56  ;;  %v1545_v10 = vpack.c.bf16 %v1465_v7, %v1457_v6  ;;  %v3494_v56 = vld [vmem:[%s4450_s10 + $0x1a8] sm:$0xff]   ;;  %v1512_v6 = vld [vmem:[%s3877_s22 + $0x250] sm:$0xff]  ;;  %v3500_v7 = vld [vmem:[%s4450_s10 + $0x1d8] sm:$0xff]  }
 0x158   : > { %3085 = vmatpush3.bf16.msra.mxu1 %v3482_v58 }
 0x159   : > { %3174 = vmatprep.subr.bf16.mxu1 %v3485_v25 }
 0x15b   : > { %1221 = vmatmul.mubr.bf16.gmra.mxu1 %v1020_v11  ;;  %v1464_v11 = vld [vmem:[%s3877_s22 + $0xd0] sm:$0xff] }
 0x15c   : > { %1228 = vmatprep.mubr.bf16.mxu1 %v1023_v12  ;;  %v1544_v12 = vpack.c.bf16 %v1464_v11, %v1456_v8 }
 0x163   : > { %1229 = vmatmul.mubr.bf16.gmra.mxu1 %v1022_v17 }
 0x164   : > { %1236 = vmatprep.mubr.bf16.mxu1 %v1025_v18 }
 0x16b   : > { %1237 = vmatmul.mubr.bf16.gmra.mxu1 %v1024_v23  ;;  %v1553_v23 = vpack.c.bf16 %v1481_v20, %v1473_v19 }
 0x16c   : > { %1244 = vmatprep.mubr.bf16.mxu1 %v1027_v24  ;;  %v1480_v24 = vld [vmem:[%s3877_s22 + $0x150] sm:$0xff] }
 0x173   : > { %1245 = vmatmul.mubr.bf16.gmra.mxu1 %v1026_v27  ;;  %v1552_v27 = vpack.c.bf16 %v1480_v24, %v1472_v21  ;;  %v1528_v21 = vld [vmem:[%s3877_s22 + $0x2d0] sm:$0xff]  ;;  %v3510_v24 = vld [vmem:[%s4450_s10 + $0x188] sm:$0xff]  }
 0x174   : > { %2207 = vmatprep.mubr.bf16.mxu1 %v1537_v62 }
 0x17b   : > { %2208 = vmatmul.mubr.bf16.vlgmr.msra.gmra.mxu1 %v1536_v1  ;;  %v1513_v1 = vld [vmem:[%s3877_s22 + $0x258] sm:$0xff] }
 0x17c   : > { %2215 = vmatprep.mubr.bf16.mxu1 %v1545_v10  ;;  %3175 = vmatpush3.bf16.msra.mxu1 %v3486_v26 }
 0x17d   : > { %3176 = vmatprep.subr.bf16.mxu1 %v3488_v34  ;;  %v1445_v34 = vld [vmem:[%s3877_s22 + $0x38] sm:$0xff] }
 0x180   : > { %3177 = vmatpush3.bf16.msra.mxu1 %v3490_v38  ;;  %v1453_v38 = vld [vmem:[%s3877_s22 + $0x78] sm:$0xff] }
 0x181   : > { %3178 = vmatprep.subr.bf16.mxu1 %v3492_v52  ;;  %v1541_v42 = vpack.c.bf16 %v1453_v38, %v1445_v34 }
 0x183   : > { %2216 = vmatmul.mubr.bf16.gmra.mxu1 %v1544_v12  ;;  %v3504_v12 = vld [vmem:[%s4450_s10 + $0x1d0] sm:$0xff]  }
 0x184   : > { %2223 = vmatprep.mubr.bf16.mxu1 %v1553_v23  ;;  %3179 = vmatpush3.bf16.msra.mxu1 %v3494_v56 }
 0x185   : > { %3180 = vmatprep.subr.bf16.mxu1 %v3496_v60  ;;  %v1461_v60 = vld [vmem:[%s3877_s22 + $0xb8] sm:$0xff] }
 0x188   : > { %3181 = vmatpush3.bf16.msra.mxu1 %v3498_v63  ;;  %v1469_v63 = vld [vmem:[%s3877_s22 + $0xf8] sm:$0xff] }
 0x189   : > { %3182 = vmatprep.subr.bf16.mxu1 %v3500_v7 }
 0x18b   : > { %2224 = vmatmul.mubr.bf16.gmra.mxu1 %v1552_v27  ;;  %v3512_v27 = vld [vmem:[%s4450_s10 + $0x1c0] sm:$0xff]  }
 0x18c   : > { %2231 = vmatprep.mubr.bf16.mxu1 %v1561_v48  ;;  %v1452_v48 = vld [vmem:[%s3877_s22 + $0x70] sm:$0xff] }
 0x18d   : > { %v1540_v50 = vpack.c.bf16 %v1452_v48, %v1444_v44  ;;  %v1493_v44 = vld [vmem:[%s3877_s22 + $0x1b8] sm:$0xff] }
 0x18e   : > { %v1501_v48 = vld [vmem:[%s3877_s22 + $0x1f8] sm:$0xff] }
 0x193   : > { %2232 = vmatmul.mubr.bf16.gmra.mxu1 %v1560_v54 }
 0x1db   : > { %v3810_v30 = vpop.f32.mrf.mxu1 }
 0x1dd   : > { %v3818_v33 = vpop.f32.mrf.mxu1 }
 0x1df   : > { %v3823_v35 = vpop.f32.mrf.mxu1 }
 0x1e1   : > { %v3828_v37 = vpop.f32.mrf.mxu1 }
 0x1e3   : > { %v3833_v39 = vpop.f32.mrf.mxu1 }
 0x1e5   : > { %v3838_v41 = vpop.f32.mrf.mxu1 }
 0x1e7   : > { %v3843_v43 = vpop.f32.mrf.mxu1 }
 0x1e9   : > { %v3848_v45 = vpop.f32.mrf.mxu1 }
 0x1eb   : > { %v3853_v47 = vpop.f32.mrf.mxu1 }
 0x1ed   : > { %v3858_v49 = vpop.f32.mrf.mxu1 }
 0x1ef   : > { %v3864_v51 = vpop.f32.mrf.mxu1 }
 0x1f1   : > { %v3869_v53 = vpop.f32.mrf.mxu1 }
 0x1f3   : > { %v3879_v55 = vpop.f32.mrf.mxu1 }
 0x1f5   : > { %v3884_v57 = vpop.f32.mrf.mxu1 }
 0x1f7   : > { %v3891_v61 = vpop.f32.mrf.mxu1 }
 0x1f9   : > { %v3895_v2 = vpop.f32.mrf.mxu1 }
 0x1fb   : > { %v2954_v3 = vpop.f32.mrf.mxu1 }
 0x1fd   : > { %v2955_v4 = vpop.f32.mrf.mxu1 }
 0x1fe   : > { %v2956_v5 = vadd.f32 %v2955_v4, %v2954_v3  ;;  %v1504_v3 = vld [vmem:[%s3877_s22 + $0x210] sm:$0xff] }
 0x1ff   : > { %v2957_v9 = vpop.f32.mrf.mxu1  ;;  %v1568_v8 = vpack.c.bf16 %v1512_v6, %v1504_v3  ;;  %v1549_v3 = vpack.c.bf16 %v1469_v63, %v1461_v60  ;;  %v1565_v60 = vpack.c.bf16 %v1501_v48, %v1493_v44  ;;  %v1500_v63 = vld [vmem:[%s3877_s22 + $0x1f0] sm:$0xff]  ;;  %v1439_v44 = vld [vmem:[%s3877_s22 + $0x8] sm:$0xff] }
 0x200   : > { %v1447_v48 = vld [vmem:[%s3877_s22 + $0x48] sm:$0xff] }
 0x201   : > { %v2958_v13 = vpop.f32.mrf.mxu1 }
 0x202   : > { %v2959_v14 = vadd.f32 %v2958_v13, %v2957_v9  ;;  %v3502_v9 = vld [vmem:[%s4450_s10 + $0x198] sm:$0xff]  }
 0x203   : > { %v2960_v15 = vpop.f32.mrf.mxu1  ;;  %3183 = vmatpush3.bf16.msra.mxu1 %v3502_v9 }
 0x204   : > { %v3901_v16 = vpack.c.bf16 %v2959_v14, %v2956_v5  ;;  %v1569_v5 = vpack.c.bf16 %v1513_v1, %v1505_v0  ;;  %v3506_v14 = vld [vmem:[%s4450_s10 + $0x190] sm:$0xff]   ;;  %3184 = vmatprep.subr.bf16.mxu1 %v3504_v12  ;;  %v1477_v12 = vld [vmem:[%s3877_s22 + $0x138] sm:$0xff] }
 0x205   : > { %v2961_v17 = vpop.f32.mrf.mxu1  ;;  %v1460_v0 = vld [vmem:[%s3877_s22 + $0xb0] sm:$0xff] }
 0x206   : > { %v2962_v18 = vadd.f32 %v2961_v17, %v2960_v15  ;;  %2239 = vmatprep.mubr.bf16.mxu1 %v1569_v5  ;;  %v1521_v15 = vld [vmem:[%s3877_s22 + $0x298] sm:$0xff]  ;;  %v1468_v5 = vld [vmem:[%s3877_s22 + $0xf0] sm:$0xff] }
 0x207   : > { %v2963_v22 = vpop.f32.mrf.mxu1  ;;  %2240 = vmatmul.mubr.bf16.gmra.mxu1 %v1568_v8  ;;  %v1529_v17 = vld [vmem:[%s3877_s22 + $0x2d8] sm:$0xff]  ;;  %v1548_v6 = vpack.c.bf16 %v1468_v5, %v1460_v0 }
 0x208   : > { %3185 = vmatpush3.bf16.msra.mxu1 %v3506_v14  ;;  %v1577_v20 = vpack.c.bf16 %v1529_v17, %v1521_v15  ;;  %v1485_v14 = vld [vmem:[%s3877_s22 + $0x178] sm:$0xff]  ;;  %v1476_v15 = vld [vmem:[%s3877_s22 + $0x130] sm:$0xff] }
 0x209   : > { %v2964_v28 = vpop.f32.mrf.mxu1  ;;  %v1509_v5 = vld [vmem:[%s3877_s22 + $0x238] sm:$0xff] }
 0x20a   : > { %v2965_v29 = vadd.f32 %v2964_v28, %v2963_v22  ;;  %v3508_v22 = vld [vmem:[%s4450_s10 + $0x1c8] sm:$0xff]   ;;  %2247 = vmatprep.mubr.bf16.mxu1 %v1577_v20  ;;  %v1484_v20 = vld [vmem:[%s3877_s22 + $0x170] sm:$0xff] }
 0x20b   : > { %v3913_v31 = vpop.f32.mrf.mxu1  ;;  %3186 = vmatprep.subr.bf16.mxu1 %v3508_v22 }
 0x20c   : > { %v3915_v32 = vpack.c.bf16 %v2965_v29, %v2962_v18  ;;  %v1520_v18 = vld [vmem:[%s3877_s22 + $0x290] sm:$0xff]  ;;  %3187 = vmatpush3.bf16.msra.mxu1 %v3510_v24  ;;  %v3514_v29 = vld [vmem:[%s4450_s10 + $0x180] sm:$0xff]  }
 0x20d   : > { %v3920_v36 = vpop.f32.mrf.mxu1  ;;  %v1576_v23 = vpack.c.bf16 %v1528_v21, %v1520_v18  ;;  %3188 = vmatprep.subr.bf16.mxu1 %v3512_v27  ;;  %v1557_v18 = vpack.c.bf16 %v1485_v14, %v1477_v12  ;;  %v1556_v21 = vpack.c.bf16 %v1484_v20, %v1476_v15  ;;  %v1524_v12 = vld [vmem:[%s3877_s22 + $0x2b0] sm:$0xff]  ;;  %v3467_v20 = vld [vmem:[%s4446_s6 + $0x20] sm:$0xff]  }
 0x20e   : > { %v3455_v15 = vld [vmem:[%s4450_s10 + $0x30] sm:$0xff]  }
 0x20f   : > { %v3928_v46 = vpop.f32.mrf.mxu1  ;;  %2248 = vmatmul.mubr.bf16.gmra.mxu1 %v1576_v23 }
 0x210   : > { %3189 = vmatpush3.bf16.msra.mxu1 %v3514_v29  ;;  %2369 = vmatprep.mubr.bf16.mxu1 %v1541_v42 }
 0x211   : > { %v3937_v58 = vpop.f32.mrf.mxu1 }
 0x213   : > { %v3939_v59 = vpop.f32.mrf.mxu1 }
 0x215   : > { %v3944_v62 = vpop.f32.mrf.mxu1 }
 0x217   : > { %v3952_v4 = vpop.f32.mrf.mxu1  ;;  %2370 = vmatmul.mubr.bf16.vlgmr.msra.gmra.mxu1 %v1540_v50  ;;  %v1492_v50 = vld [vmem:[%s3877_s22 + $0x1b0] sm:$0xff] }
 0x218   : > { %2377 = vmatprep.mubr.bf16.mxu1 %v1549_v3 }
 0x219   : > { %v3961_v10 = vpop.f32.mrf.mxu1 }
 0x21b   : > { %v3963_v11 = vpop.f32.mrf.mxu1 }
 0x21d   : > { %v3968_v13 = vpop.f32.mrf.mxu1 }
 0x21f   : > { %v3976_v19 = vpop.f32.mrf.mxu1  ;;  %2378 = vmatmul.mubr.bf16.gmra.mxu1 %v1548_v6 }
 0x220   : > { %2385 = vmatprep.mubr.bf16.mxu1 %v1557_v18  ;;  %v3461_v18 = vld [vmem:[%s4450_s10 + $0x28] sm:$0xff]  }
 0x221   : > { %v3985_v25 = vpop.f32.mrf.mxu1 }
 0x223   : > { %v2984_v26 = vpop.f32.mrf.mxu1 }
 0x225   : > { %v2985_v28 = vpop.f32.mrf.mxu1 }
 0x226   : > { %v2986_v0 = vadd.f32 %v2985_v28, %v2984_v26  ;;  %v1517_v26 = vld [vmem:[%s3877_s22 + $0x278] sm:$0xff]  ;;  %v1508_v28 = vld [vmem:[%s3877_s22 + $0x230] sm:$0xff] }
 0x227   : > { %v2987_v40 = vpop.f32.mrf.mxu1  ;;  %2386 = vmatmul.mubr.bf16.gmra.mxu1 %v1556_v21  ;;  %v1573_v6 = vpack.c.bf16 %v1517_v26, %v1509_v5  ;;  %v3463_v21 = vld [vmem:[%s4450_s10 + $0x60] sm:$0xff]  }
 0x228   : > { %2393 = vmatprep.mubr.bf16.mxu1 %v1565_v60  ;;  %v3481_v60 = vld [vmem:[%s4450_s10 + $0x8] sm:$0xff]  }
 0x229   : > { %v2988_v52 = vpop.f32.mrf.mxu1 }
 0x22a   : > { %v2989_v38 = vadd.f32 %v2988_v52, %v2987_v40  ;;  %v2980_v52 = vadd.f32 %v3968_v13, %v3963_v11  ;;  %v2968_v13 = vadd.f32 %v3920_v36, %v3913_v31  ;;  %v3449_v31 = vld [vmem:[%s4450_s10 + $0x78] sm:$0xff]   ;;  %v3448_v36 = vld [vmem:[%s4446_s6 + $0x8] sm:$0xff]  }
 0x22b   : > { %v2990_v54 = vpop.f32.mrf.mxu1 }
 0x22c   : > { %v1258_v40 = vpack.c.bf16 %v2989_v38, %v2986_v0  ;;  %v3475_v38 = vld [vmem:[%s4450_s10 + $0x10] sm:$0xff]   ;;  %v3483_v0 = vld [vmem:[%s4450_s10 + $0x40] sm:$0xff]  }
 0x22d   : > { %v2991_v56 = vpop.f32.mrf.mxu1 }
 0x22e   : > { %v2992_v29 = vadd.f32 %v2991_v56, %v2990_v54  ;;  %v2983_v54 = vadd.f32 %v3985_v25, %v3976_v19  ;;  %v2977_v56 = vadd.f32 %v3961_v10, %v3952_v4  ;;  %v1516_v19 = vld [vmem:[%s3877_s22 + $0x270] sm:$0xff]  ;;  %v2974_v25 = vadd.f32 %v3944_v62, %v3939_v59 }
 0x22f   : > { %v2993_v1 = vpop.f32.mrf.mxu1  ;;  %v1572_v11 = vpack.c.bf16 %v1516_v19, %v1508_v28  ;;  %v2971_v4 = vadd.f32 %v3937_v58, %v3928_v46  ;;  %v1532_v62 = vld [vmem:[%s3877_s22 + $0x2f0] sm:$0xff]  ;;  %v3451_v46 = vld [vmem:[%s4450_s10 + $0x38] sm:$0xff]   ;;  %v1454_v19 = vld [vmem:[%s3877_s22 + $0x80] sm:$0xff] }
 0x230   : > { %v1257_v3 = vpack.c.bf16 %v2983_v54, %v2980_v52  ;;  %v1256_v10 = vpack.c.bf16 %v2977_v56, %v2974_v25  ;;  %v1580_v14 = vpack.c.bf16 %v1532_v62, %v1524_v12  ;;  %v3453_v58 = vld [vmem:[%s4450_s10 + $0x70] sm:$0xff]   ;;  %v1438_v54 = vld [vmem:[%s3877_s22] sm:$0xff]  ;;  %v1455_v52 = vld [vmem:[%s3877_s22 + $0x88] sm:$0xff] }
 0x231   : > { %v2994_v7 = vpop.f32.mrf.mxu1  ;;  %v1463_v56 = vld [vmem:[%s3877_s22 + $0xc8] sm:$0xff]  ;;  %v3489_v28 = vld [vmem:[%s4450_s10 + $0x138] sm:$0xff]   ;;  %v1462_v25 = vld [vmem:[%s3877_s22 + $0xc0] sm:$0xff] }
 0x232   : > { %v2995_v23 = vadd.f32 %v2994_v7, %v2993_v1  ;;  %v1564_v1 = vpack.c.bf16 %v1500_v63, %v1492_v50  ;;  %v1255_v7 = vpack.c.bf16 %v2971_v4, %v2968_v13  ;;  %v3478_v50 = vld [vmem:[%s4446_s6 + $0x38] sm:$0xff]   ;;  %v1535_v63 = vpack.c.bf16 %v1447_v48, %v1439_v44  ;;  %v1471_v4 = vld [vmem:[%s3877_s22 + $0x108] sm:$0xff]  ;;  %v3499_v12 = vld [vmem:[%s4450_s10 + $0x160] sm:$0xff]  }
 0x233   : > { %v2996_v8 = vpop.f32.mrf.mxu1  ;;  %v1543_v26 = vpack.c.bf16 %v1463_v56, %v1455_v52  ;;  %v3495_v13 = vld [vmem:[%s4450_s10 + $0x168] sm:$0xff]   ;;  %v1478_v62 = vld [vmem:[%s3877_s22 + $0x140] sm:$0xff] }
 0x234   : > { %v1259_v42 = vpack.c.bf16 %v2995_v23, %v2992_v29  ;;  %2394 = vmatmul.mubr.bf16.gmra.mxu1 %v1564_v1  ;;  %v3469_v23 = vld [vmem:[%s4450_s10 + $0x58] sm:$0xff]   ;;  %v3477_v29 = vld [vmem:[%s4446_s6 + $0x30] sm:$0xff]   ;;  %v3484_v1 = vld [vmem:[%s4450_s10] sm:$0xff]  }
 0x235   : > { %v2997_v9 = vpop.f32.mrf.mxu1  ;;  %2401 = vmatprep.mubr.bf16.mxu1 %v1573_v6  ;;  %v3491_v6 = vld [vmem:[%s4450_s10 + $0x170] sm:$0xff]   ;;  %v3516_v44 = vld [vmem:[%s4450_s10 + $0x100] sm:$0xff]   ;;  %v1519_v48 = vld [vmem:[%s3877_s22 + $0x288] sm:$0xff] }
 0x236   : > { %v2998_v24 = vadd.f32 %v2997_v9, %v2996_v8  ;;  %v1525_v8 = vld [vmem:[%s3877_s22 + $0x2b8] sm:$0xff] }
 0x237   : > { %v2999_v17 = vpop.f32.mrf.mxu1  ;;  %v1533_v9 = vld [vmem:[%s3877_s22 + $0x2f8] sm:$0xff] }
 0x238   : > { %v1581_v59 = vpack.c.bf16 %v1533_v9, %v1525_v8  ;;  %v3497_v9 = vld [vmem:[%s4450_s10 + $0x128] sm:$0xff]  }
 0x239   : > { %v3000_v22 = vpop.f32.mrf.mxu1 }
 0x23a   : > { %v3001_v27 = vadd.f32 %v3000_v22, %v2999_v17  ;;  %v3458_v17 = vld [vmem:[%s4446_s6 + $0x18] sm:$0xff]   ;;  %v3465_v22 = vld [vmem:[%s4450_s10 + $0x20] sm:$0xff]  }
 0x23c   : > { %v1260_v34 = vpack.c.bf16 %v3001_v27, %v2998_v24  ;;  %2402 = vmatmul.mubr.bf16.gmra.mxu1 %v1572_v11  ;;  %v3468_v24 = vld [vmem:[%s4446_s6 + $0x28] sm:$0xff]   ;;  %v3471_v27 = vld [vmem:[%s4450_s10 + $0x18] sm:$0xff]   ;;  %v3493_v11 = vld [vmem:[%s4450_s10 + $0x130] sm:$0xff]  }
 0x23d   : > { %2409 = vmatprep.mubr.bf16.mxu1 %v1581_v59  ;;  %v1470_v59 = vld [vmem:[%s3877_s22 + $0x100] sm:$0xff] }
 0x23e   : > { %3328 = vmatprep.subr.bf16.mxu0 %v1260_v34 }
 0x23f   : > { %3329 = vmatpush3.bf16.msra.mxu0 %v1260_v34  ;;  %v3473_v34 = vld [vmem:[%s4450_s10 + $0x50] sm:$0xff]  }
 0x240   : > { %3330 = vmatprep.subr.bf16.mxu0 %v1259_v42 }
 0x243   : > { %3331 = vmatpush3.bf16.msra.mxu0 %v1259_v42  ;;  %v3479_v42 = vld [vmem:[%s4450_s10 + $0x48] sm:$0xff]  }
 0x244   : > { %3332 = vmatprep.subr.bf16.mxu0 %v1258_v40  ;;  %2410 = vmatmul.mubr.bf16.gmra.mxu1 %v1580_v14  ;;  %v3501_v14 = vld [vmem:[%s4450_s10 + $0x120] sm:$0xff]  }
 0x247   : > { %3333 = vmatpush3.bf16.msra.mxu0 %v1258_v40  ;;  %v1446_v40 = vld [vmem:[%s3877_s22 + $0x40] sm:$0xff] }
 0x248   : > { %3334 = vmatprep.subr.bf16.mxu0 %v1257_v3  ;;  %v1534_v5 = vpack.c.bf16 %v1446_v40, %v1438_v54  ;;  %v1443_v54 = vld [vmem:[%s3877_s22 + $0x28] sm:$0xff] }
 0x249   : > { %v1451_v40 = vld [vmem:[%s3877_s22 + $0x68] sm:$0xff] }
 0x24a   : > { %v1539_v56 = vpack.c.bf16 %v1451_v40, %v1443_v54  ;;  %v1522_v40 = vld [vmem:[%s3877_s22 + $0x2a0] sm:$0xff] }
 0x24b   : > { %3335 = vmatpush3.bf16.msra.mxu0 %v1257_v3  ;;  %v3487_v3 = vld [vmem:[%s4450_s10 + $0x178] sm:$0xff]  }
 0x24c   : > { %3336 = vmatprep.subr.bf16.mxu0 %v1256_v10 }
 0x24f   : > { %3337 = vmatpush3.bf16.msra.mxu0 %v1256_v10  ;;  %v1479_v10 = vld [vmem:[%s3877_s22 + $0x148] sm:$0xff] }
 0x250   : > { %3338 = vmatprep.subr.bf16.mxu0 %v1255_v7  ;;  %v1551_v8 = vpack.c.bf16 %v1479_v10, %v1471_v4  ;;  %v1475_v4 = vld [vmem:[%s3877_s22 + $0x128] sm:$0xff] }
 0x251   : > { %v1483_v10 = vld [vmem:[%s3877_s22 + $0x168] sm:$0xff] }
 0x253   : > { %3339 = vmatpush3.bf16.msra.mxu0 %v1255_v7  ;;  %v1542_v7 = vpack.c.bf16 %v1462_v25, %v1454_v19  ;;  %v1458_v25 = vld [vmem:[%s3877_s22 + $0xa0] sm:$0xff] }
 0x254   : > { %3340 = vmatprep.subr.bf16.mxu0 %v3915_v32 }
 0x257   : > { %3341 = vmatpush3.bf16.msra.mxu0 %v3915_v32  ;;  %v3457_v32 = vld [vmem:[%s4446_s6 + $0x10] sm:$0xff]  }
 0x258   : > { %3342 = vmatprep.subr.bf16.mxu0 %v3901_v16 }
 0x25b   : > { %3343 = vmatpush3.bf16.msra.mxu0 %v3901_v16  ;;  %v3459_v16 = vld [vmem:[%s4450_s10 + $0x68] sm:$0xff]  }
 0x25c   : > { %3018 = vmatprep.subr.bf16.mxu0 %v3449_v31  ;;  %v1487_v31 = vld [vmem:[%s3877_s22 + $0x188] sm:$0xff] }
 0x25e   : > { %3345 = vmatmul.mubr.bf16.vlgmr.msra.gmra.mxu0 %v3448_v36  ;;  %v1495_v36 = vld [vmem:[%s3877_s22 + $0x1c8] sm:$0xff] }
 0x25f   : > { %3019 = vmatpush3.bf16.msra.mxu0 %v3451_v46  ;;  %3348 = vmatprep.mubr.bf16.mxu0 %v3457_v32  ;;  %v3503_v46 = vld [vmem:[%s4450_s10 + $0x158] sm:$0xff]   ;;  %v1550_v32 = vpack.c.bf16 %v1478_v62, %v1470_v59  ;;  %v1499_v59 = vld [vmem:[%s3877_s22 + $0x1e8] sm:$0xff] }
 0x260   : > { %3020 = vmatprep.subr.bf16.mxu0 %v3453_v58  ;;  %v1559_v58 = vpack.c.bf16 %v1495_v36, %v1487_v31 }
 0x263   : > { %3021 = vmatpush3.bf16.msra.mxu0 %v3455_v15  ;;  %v3505_v15 = vld [vmem:[%s4450_s10 + $0x118] sm:$0xff]  }
 0x264   : > { %3022 = vmatprep.subr.bf16.mxu0 %v3459_v16  ;;  %v3507_v16 = vld [vmem:[%s4450_s10 + $0x150] sm:$0xff]  }
 0x266   : > { %3349 = vmatmul.mubr.bf16.gmra.mxu0 %v3458_v17  ;;  %v1486_v17 = vld [vmem:[%s3877_s22 + $0x180] sm:$0xff] }
 0x267   : > { %3023 = vmatpush3.bf16.msra.mxu0 %v3461_v18  ;;  %3352 = vmatprep.mubr.bf16.mxu0 %v3467_v20  ;;  %v1494_v18 = vld [vmem:[%s3877_s22 + $0x1c0] sm:$0xff]  ;;  %v3509_v20 = vld [vmem:[%s4450_s10 + $0x110] sm:$0xff]  }
 0x268   : > { %3024 = vmatprep.subr.bf16.mxu0 %v3463_v21  ;;  %v1503_v21 = vld [vmem:[%s3877_s22 + $0x208] sm:$0xff] }
 0x26b   : > { %3025 = vmatpush3.bf16.msra.mxu0 %v3465_v22  ;;  %v1511_v22 = vld [vmem:[%s3877_s22 + $0x248] sm:$0xff] }
 0x26c   : > { %3026 = vmatprep.subr.bf16.mxu0 %v3469_v23  ;;  %v3511_v23 = vld [vmem:[%s4450_s10 + $0x148] sm:$0xff]  }
 0x26e   : > { %3353 = vmatmul.mubr.bf16.gmra.mxu0 %v3468_v24  ;;  %v1558_v24 = vpack.c.bf16 %v1494_v18, %v1486_v17  ;;  %v1515_v17 = vld [vmem:[%s3877_s22 + $0x268] sm:$0xff] }
 0x26f   : > { %3027 = vmatpush3.bf16.msra.mxu0 %v3471_v27  ;;  %3356 = vmatprep.mubr.bf16.mxu0 %v3477_v29  ;;  %v1567_v27 = vpack.c.bf16 %v1511_v22, %v1503_v21  ;;  %v3513_v29 = vld [vmem:[%s4450_s10 + $0x108] sm:$0xff]  }
 0x270   : > { %3028 = vmatprep.subr.bf16.mxu0 %v3473_v34  ;;  %v3515_v34 = vld [vmem:[%s4450_s10 + $0x140] sm:$0xff]  }
 0x273   : > { %3029 = vmatpush3.bf16.msra.mxu0 %v3475_v38  ;;  %v1502_v38 = vld [vmem:[%s3877_s22 + $0x200] sm:$0xff] }
 0x274   : > { %3030 = vmatprep.subr.bf16.mxu0 %v3479_v42  ;;  %v1510_v42 = vld [vmem:[%s3877_s22 + $0x240] sm:$0xff] }
 0x276   : > { %3357 = vmatmul.mubr.bf16.gmra.mxu0 %v3478_v50  ;;  %v1527_v50 = vld [vmem:[%s3877_s22 + $0x2c8] sm:$0xff] }
 0x277   : > { %3031 = vmatpush3.bf16.msra.mxu0 %v3481_v60  ;;  %2126 = vmatprep.mubr.bf16.mxu0 %v1535_v63  ;;  %v1566_v60 = vpack.c.bf16 %v1510_v42, %v1502_v38  ;;  %v1575_v63 = vpack.c.bf16 %v1527_v50, %v1519_v48  ;;  %v1523_v42 = vld [vmem:[%s3877_s22 + $0x2a8] sm:$0xff] }
 0x278   : > { %3032 = vmatprep.subr.bf16.mxu0 %v3483_v0  ;;  %v1518_v0 = vld [vmem:[%s3877_s22 + $0x280] sm:$0xff] }
 0x27b   : > { %3033 = vmatpush3.bf16.msra.mxu0 %v3484_v1  ;;  %v1526_v1 = vld [vmem:[%s3877_s22 + $0x2c0] sm:$0xff] }
 0x27c   : > { %3122 = vmatprep.subr.bf16.mxu0 %v3487_v3  ;;  %v1574_v52 = vpack.c.bf16 %v1526_v1, %v1518_v0  ;;  %v1442_v3 = vld [vmem:[%s3877_s22 + $0x20] sm:$0xff] }
 0x27e   : > { %2127 = vmatmul.mubr.bf16.vlgmr.msra.gmra.mxu0 %v1534_v5  ;;  %v1450_v5 = vld [vmem:[%s3877_s22 + $0x60] sm:$0xff] }
 0x27f   : > { %2134 = vmatprep.mubr.bf16.mxu0 %v1543_v26  ;;  %3123 = vmatpush3.bf16.msra.mxu0 %v3489_v28  ;;  %v1459_v26 = vld [vmem:[%s3877_s22 + $0xa8] sm:$0xff] }
 0x280   : > { %3124 = vmatprep.subr.bf16.mxu0 %v3491_v6  ;;  %v1467_v28 = vld [vmem:[%s3877_s22 + $0xe8] sm:$0xff]  ;;  %v1538_v6 = vpack.c.bf16 %v1450_v5, %v1442_v3 }
 0x281   : > { %v1547_v19 = vpack.c.bf16 %v1467_v28, %v1459_v26 }
 0x283   : > { %3125 = vmatpush3.bf16.msra.mxu0 %v3493_v11  ;;  %v1466_v11 = vld [vmem:[%s3877_s22 + $0xe0] sm:$0xff] }
 0x284   : > { %3126 = vmatprep.subr.bf16.mxu0 %v3495_v13  ;;  %v1546_v13 = vpack.c.bf16 %v1466_v11, %v1458_v25 }
 0x286   : > { %2135 = vmatmul.mubr.bf16.gmra.mxu0 %v1542_v7  ;;  %v1555_v7 = vpack.c.bf16 %v1483_v10, %v1475_v4  ;;  %v3314_v10 = vpop.f32.mrf.mxu0 }
 0x287   : > { %2142 = vmatprep.mubr.bf16.mxu0 %v1551_v8  ;;  %3127 = vmatpush3.bf16.msra.mxu0 %v3497_v9  ;;  %v1474_v8 = vld [vmem:[%s3877_s22 + $0x120] sm:$0xff] }
 0x288   : > { %3128 = vmatprep.subr.bf16.mxu0 %v3499_v12  ;;  %v1482_v9 = vld [vmem:[%s3877_s22 + $0x160] sm:$0xff]  ;;  %v1491_v12 = vld [vmem:[%s3877_s22 + $0x1a8] sm:$0xff] }
 0x289   : > { %v1554_v62 = vpack.c.bf16 %v1482_v9, %v1474_v8  ;;  %v1563_v31 = vpack.c.bf16 %v1499_v59, %v1491_v12 }
 0x28b   : > { %3129 = vmatpush3.bf16.msra.mxu0 %v3501_v14  ;;  %v3086_v14 = vpop.f32.mrf.mxu1 }
 0x28c   : > { %3130 = vmatprep.subr.bf16.mxu0 %v3503_v46 }
 0x28d   : > { %v3087_v36 = vpop.f32.mrf.mxu1 }
 0x28e   : > { %2143 = vmatmul.mubr.bf16.gmra.mxu0 %v1550_v32  ;;  %v4188_v46 = vadd.f32 %v3087_v36, %v3086_v14 }
 0x28f   : > { %2150 = vmatprep.mubr.bf16.mxu0 %v1559_v58  ;;  %3131 = vmatpush3.bf16.msra.mxu0 %v3505_v15  ;;  %v3089_v32 = vpop.f32.mrf.mxu1  ;;  %v1490_v58 = vld [vmem:[%s3877_s22 + $0x1a0] sm:$0xff] }
 0x290   : > { %3132 = vmatprep.subr.bf16.mxu0 %v3507_v16  ;;  %v1498_v15 = vld [vmem:[%s3877_s22 + $0x1e0] sm:$0xff]  ;;  %v1507_v16 = vld [vmem:[%s3877_s22 + $0x228] sm:$0xff] }
 0x291   : > { %v3090_v18 = vpop.f32.mrf.mxu1  ;;  %v1562_v21 = vpack.c.bf16 %v1498_v15, %v1490_v58 }
 0x293   : > { %3133 = vmatpush3.bf16.msra.mxu0 %v3509_v20  ;;  %v4194_v20 = vadd.f32 %v3090_v18, %v3089_v32  ;;  %v3092_v22 = vpop.f32.mrf.mxu1  ;;  %v926_v18 = vadd.f32 %v3314_v10, %v3810_v30 }
 0x294   : > { %3134 = vmatprep.subr.bf16.mxu0 %v3511_v23  ;;  %v1571_v23 = vpack.c.bf16 %v1515_v17, %v1507_v16 }
 0x296   : > { %2151 = vmatmul.mubr.bf16.gmra.mxu0 %v1558_v24  ;;  %v3093_v24 = vpop.f32.mrf.mxu1 }
 0x297   : > { %2158 = vmatprep.mubr.bf16.mxu0 %v1567_v27  ;;  %3135 = vmatpush3.bf16.msra.mxu0 %v3513_v29  ;;  %v1506_v29 = vld [vmem:[%s3877_s22 + $0x220] sm:$0xff]  ;;  %v4198_v38 = vadd.f32 %v3093_v24, %v3092_v22 }
 0x298   : > { %3136 = vmatprep.subr.bf16.mxu0 %v3515_v34  ;;  %v3095_v27 = vpop.f32.mrf.mxu1  ;;  %v1514_v34 = vld [vmem:[%s3877_s22 + $0x260] sm:$0xff] }
 0x29a   : > { %v3096_v48 = vpop.f32.mrf.mxu1 }
 0x29b   : > { %3137 = vmatpush3.bf16.msra.mxu0 %v3516_v44  ;;  %v1531_v44 = vld [vmem:[%s3877_s22 + $0x2e8] sm:$0xff]  ;;  %v4202_v50 = vadd.f32 %v3096_v48, %v3095_v27 }
 0x29c   : > { %v1579_v0 = vpack.c.bf16 %v1531_v44, %v1523_v42 }
 0x29e   : > { %2159 = vmatmul.mubr.bf16.gmra.mxu0 %v1566_v60  ;;  %v1570_v60 = vpack.c.bf16 %v1514_v34, %v1506_v29 }
 0x29f   : > { %2166 = vmatprep.mubr.bf16.mxu0 %v1575_v63  ;;  %v3098_v63 = vpop.f32.mrf.mxu1 }
 0x2a1   : > { %v3099_v1 = vpop.f32.mrf.mxu1 }
 0x2a3   : > { %v3101_v54 = vpop.f32.mrf.mxu1 }
 0x2a5   : > { %v3102_v3 = vpop.f32.mrf.mxu1 }
 0x2a6   : > { %2167 = vmatmul.mubr.bf16.gmra.mxu0 %v1574_v52  ;;  %v1530_v52 = vld [vmem:[%s3877_s22 + $0x2e0] sm:$0xff]  ;;  %v4208_v5 = vadd.f32 %v3102_v3, %v3101_v54 }
 0x2a7   : > { %2288 = vmatprep.mubr.bf16.mxu0 %v1539_v56  ;;  %v4206_v56 = vadd.f32 %v3099_v1, %v3098_v63  ;;  %v1578_v26 = vpack.c.bf16 %v1530_v52, %v1522_v40  ;;  %v3104_v28 = vpop.f32.mrf.mxu1 }
 0x2ae   : > { %2289 = vmatmul.mubr.bf16.vlgmr.msra.gmra.mxu0 %v1538_v6  ;;  %v3105_v6 = vpop.f32.mrf.mxu1 }
 0x2af   : > { %2296 = vmatprep.mubr.bf16.mxu0 %v1547_v19  ;;  %v4210_v25 = vadd.f32 %v3105_v6, %v3104_v28 }
 0x2b0   : > { %v3107_v19 = vpop.f32.mrf.mxu1 }
 0x2b2   : > { %v3108_v11 = vpop.f32.mrf.mxu1 }
 0x2b3   : > { %v4212_v4 = vadd.f32 %v3108_v11, %v3107_v19 }
 0x2b6   : > { %2297 = vmatmul.mubr.bf16.gmra.mxu0 %v1546_v13  ;;  %v917_v13 = vpop.f32.mrf.mxu0 }
 0x2b7   : > { %2304 = vmatprep.mubr.bf16.mxu0 %v1555_v7  ;;  %v918_v22 = vadd.f32 %v917_v13, %v3818_v33 }
 0x2b8   : > { %v3315_v7 = vpop.f32.mrf.mxu0 }
 0x2b9   : > { %v929_v29 = vadd.f32 %v3315_v7, %v3823_v35 }
 0x2ba   : > { %v920_v8 = vpop.f32.mrf.mxu0 }
 0x2bb   : > { %v921_v44 = vadd.f32 %v920_v8, %v3828_v37 }
 0x2bc   : > { %v3318_v9 = vpop.f32.mrf.mxu0 }
 0x2bd   : > { %v942_v30 = vadd.f32 %v3318_v9, %v3833_v39 }
 0x2be   : > { %2305 = vmatmul.mubr.bf16.gmra.mxu0 %v1554_v62  ;;  %v933_v12 = vpop.f32.mrf.mxu0 }
 0x2bf   : > { %2312 = vmatprep.mubr.bf16.mxu0 %v1563_v31  ;;  %v934_v1 = vadd.f32 %v933_v12, %v3838_v41 }
 0x2c0   : > { %v3319_v59 = vpop.f32.mrf.mxu0 }
 0x2c1   : > { %v945_v52 = vadd.f32 %v3319_v59, %v3843_v43 }
 0x2c2   : > { %v936_v62 = vpop.f32.mrf.mxu0 }
 0x2c4   : > { %v3322_v14 = vpop.f32.mrf.mxu0 }
 0x2c5   : > { %v958_v19 = vadd.f32 %v3322_v14, %v3853_v47 }
 0x2c6   : > { %2313 = vmatmul.mubr.bf16.gmra.mxu0 %v1562_v21  ;;  %v949_v31 = vpop.f32.mrf.mxu0 }
 0x2c7   : > { %2320 = vmatprep.mubr.bf16.mxu0 %v1571_v23  ;;  %v4218_v27 = vpop.f32.mrf.mxu1  ;;  %v950_v10 = vadd.f32 %v949_v31, %v3858_v49 }
 0x2c8   : > { %v3323_v36 = vpop.f32.mrf.mxu0 }
 0x2c9   : > { %v4226_v63 = vpop.f32.mrf.mxu1  ;;  %v961_v8 = vadd.f32 %v3323_v36, %v3864_v51 }
 0x2ca   : > { %v952_v32 = vpop.f32.mrf.mxu0 }
 0x2cb   : > { %v4234_v40 = vpop.f32.mrf.mxu1  ;;  %v953_v12 = vadd.f32 %v952_v32, %v3869_v53 }
 0x2cc   : > { %v3326_v58 = vpop.f32.mrf.mxu0 }
 0x2cd   : > { %v4242_v6 = vpop.f32.mrf.mxu1  ;;  %v974_v14 = vadd.f32 %v3326_v58, %v3879_v55  ;;  %v3518_v55 = vld [vmem:[%s4447_s7 + $0x30] sm:$0xff]  }
 0x2ce   : > { %2321 = vmatmul.mubr.bf16.gmra.mxu0 %v1570_v60  ;;  %v965_v15 = vpop.f32.mrf.mxu0  ;;  %3384 = vmatprep.mubr.msk.bf16.mxu1 %vm2480_vm1, %v3518_v55 }
 0x2cf   : > { %2328 = vmatprep.mubr.bf16.mxu0 %v1579_v0  ;;  %v4250_v7 = vpop.f32.mrf.mxu1 }
 0x2d0   : > { %v3327_v16 = vpop.f32.mrf.mxu0 }
 0x2d2   : > { %v968_v17 = vpop.f32.mrf.mxu0 }
 0x2d6   : > { %2329 = vmatmul.mubr.bf16.gmra.mxu0 %v1578_v26  ;;  %v937_v26 = vadd.f32 %v936_v62, %v3848_v45  ;;  %v4258_v62 = vpop.f32.mrf.mxu1 }
 0x2d8   : > { %v4266_v36 = vpop.f32.mrf.mxu1 }
 0x31e   : > { %v3346_v21 = vpop.f32.mrf.mxu0 }
 0x31f   : > { %v4216_v23 = vadd.f32 %v3346_v21, %v926_v18  ;;  %v966_v18 = vadd.f32 %v965_v15, %v3884_v57  ;;  %v969_v57 = vadd.f32 %v968_v17, %v3895_v2 }
 0x320   : > { %v1359_v24 = vpop.f32.mrf.mxu0 }
 0x321   : > { %v4221_v34 = vadd.f32 %v1359_v24, %v918_v22  ;;  %v977_v22 = vadd.f32 %v3327_v16, %v3891_v61  ;;  %v3517_v24 = vld [vmem:[%s4447_s7] sm:$0xff]  }
 0x322   : > { %v3347_v42 = vpop.f32.mrf.mxu0  ;;  %3372 = vmatprep.mubr.msk.bf16.mxu0 %vm2480_vm1, %v3517_v24 }
 0x323   : > { %v4224_v48 = vadd.f32 %v3347_v42, %v929_v29  ;;  %v4280_v29 = vpop.f32.mrf.mxu1 }
 0x324   : > { %v1362_v60 = vpop.f32.mrf.mxu0 }
 0x325   : > { %v4229_v33 = vadd.f32 %v1362_v60, %v921_v44  ;;  %v3190_v44 = vpop.f32.mrf.mxu1 }
 0x326   : > { %v3350_v0 = vpop.f32.mrf.mxu0 }
 0x327   : > { %4452 = vst [vmem:[#allocation2_spill] sm:$0xff] %v4229_v33  ;;  %v4232_v54 = vadd.f32 %v3350_v0, %v942_v30  ;;  %v3191_v2 = vpop.f32.mrf.mxu1 }
 0x328   : > { %v1375_v35 = vpop.f32.mrf.mxu0 }
 0x329   : > { %4453 = vst [vmem:[#allocation3_spill] sm:$0xff] %v4232_v54  ;;  %v4237_v37 = vadd.f32 %v1375_v35, %v934_v1 }
 0x32a   : > { %v3351_v3 = vpop.f32.mrf.mxu0 }
 0x32b   : > { %4454 = vst [vmem:[#allocation4_spill] sm:$0xff] %v4237_v37  ;;  %v4240_v28 = vadd.f32 %v3351_v3, %v945_v52 }
 0x32c   : > { %v1378_v39 = vpop.f32.mrf.mxu0 }
 0x32d   : > { %4455 = vst [vmem:[#allocation5_spill] sm:$0xff] %v4240_v28  ;;  %v4245_v41 = vadd.f32 %v1378_v39, %v937_v26  ;;  %v3193_v26 = vpop.f32.mrf.mxu1 }
 0x32e   : > { %v3354_v11 = vpop.f32.mrf.mxu0 }
 0x32f   : > { %4456 = vst [vmem:[#allocation6_spill] sm:$0xff] %v4245_v41  ;;  %v4248_v13 = vadd.f32 %v3354_v11, %v958_v19 }
 0x330   : > { %v1391_v43 = vpop.f32.mrf.mxu0 }
 0x331   : > { %4457 = vst [vmem:[#allocation7_spill] sm:$0xff] %v4248_v13  ;;  %v4253_v45 = vadd.f32 %v1391_v43, %v950_v10  ;;  %v3194_v43 = vpop.f32.mrf.mxu1 }
 0x332   : > { %v3355_v9 = vpop.f32.mrf.mxu0 }
 0x333   : > { %4458 = vst [vmem:[#allocation8_spill] sm:$0xff] %v4253_v45  ;;  %v4256_v59 = vadd.f32 %v3355_v9, %v961_v8 }
 0x334   : > { %v1394_v47 = vpop.f32.mrf.mxu0 }
 0x335   : > { %4459 = vst [vmem:[#allocation9_spill] sm:$0xff] %v4256_v59  ;;  %v4261_v49 = vadd.f32 %v1394_v47, %v953_v12 }
 0x336   : > { %v3358_v31 = vpop.f32.mrf.mxu0 }
 0x337   : > { %4460 = vst [vmem:[#allocation10_spill] sm:$0xff] %v4261_v49  ;;  %v4264_v21 = vadd.f32 %v3358_v31, %v974_v14  ;;  %v3195_v49 = vadd.f32 %v3194_v43, %v3193_v26 }
 0x338   : > { %v1407_v51 = vpop.f32.mrf.mxu0 }
 0x339   : > { %v4269_v53 = vadd.f32 %v1407_v51, %v966_v18 }
 0x33a   : > { %v3359_v32 = vpop.f32.mrf.mxu0 }
 0x33b   : > { %v4278_v58 = vadd.f32 %v3359_v32, %v977_v22 }
 0x33c   : > { %v1410_v15 = vpop.f32.mrf.mxu0 }
 0x33d   : > { %v4284_v61 = vadd.f32 %v1410_v15, %v969_v57 }
 0x33e   : > { %v3034_v16 = vpop.f32.mrf.mxu0 }
 0x33f   : > { %4461 = vst [vmem:[#allocation11_spill] sm:$0xff] %v4284_v61 }
 0x340   : > { %v3035_v42 = vpop.f32.mrf.mxu0 }
 0x341   : > { %v3036_v60 = vadd.f32 %v3035_v42, %v3034_v16 }
 0x342   : > { %v3037_v30 = vpop.f32.mrf.mxu0 }
 0x343   : > { %v2210_v0 = vadd.f32 %v4188_v46, %v3036_v60  ;;  %v3196_v46 = vpop.f32.mrf.mxu1 }
 0x344   : > { %v3038_v1 = vpop.f32.mrf.mxu0 }
 0x345   : > { %v3039_v17 = vadd.f32 %v3038_v1, %v3037_v30  ;;  %v3197_v51 = vpop.f32.mrf.mxu1 }
 0x346   : > { %v3040_v35 = vpop.f32.mrf.mxu0 }
 0x347   : > { %v2213_v52 = vadd.f32 %v4194_v20, %v3039_v17  ;;  %v3199_v55 = vpop.f32.mrf.mxu1 }
 0x348   : > { %v3041_v3 = vpop.f32.mrf.mxu0 }
 0x349   : > { %v3042_v39 = vadd.f32 %v3041_v3, %v3040_v35  ;;  %v3200_v42 = vpop.f32.mrf.mxu1 }
 0x34a   : > { %v3043_v19 = vpop.f32.mrf.mxu0 }
 0x34b   : > { %v2218_v11 = vadd.f32 %v4198_v38, %v3042_v39  ;;  %v3202_v17 = vpop.f32.mrf.mxu1 }
 0x34c   : > { %v3044_v10 = vpop.f32.mrf.mxu0 }
 0x34d   : > { %v3045_v8 = vadd.f32 %v3044_v10, %v3043_v19  ;;  %v3203_v3 = vpop.f32.mrf.mxu1 }
 0x34e   : > { %v3046_v9 = vpop.f32.mrf.mxu0 }
 0x34f   : > { %v2221_v12 = vadd.f32 %v4202_v50, %v3045_v8  ;;  %v3205_v19 = vpop.f32.mrf.mxu1 }
 0x350   : > { %v3047_v47 = vpop.f32.mrf.mxu0 }
 0x351   : > { %v3048_v14 = vadd.f32 %v3047_v47, %v3046_v9  ;;  %v3206_v9 = vpop.f32.mrf.mxu1 }
 0x352   : > { %v3049_v31 = vpop.f32.mrf.mxu0 }
 0x353   : > { %v4291_v18 = vadd.f32 %v4206_v56, %v3048_v14  ;;  %v3208_v14 = vpop.f32.mrf.mxu1 }
 0x354   : > { %v3050_v20 = vpop.f32.mrf.mxu0 }
 0x355   : > { %v3051_v22 = vadd.f32 %v3050_v20, %v3049_v31 }
 0x356   : > { %v3052_v32 = vpop.f32.mrf.mxu0 }
 0x357   : > { %v4294_v24 = vadd.f32 %v4208_v5, %v3051_v22  ;;  %v3192_v22 = vadd.f32 %v3191_v2, %v3190_v44  ;;  %v3201_v2 = vadd.f32 %v3200_v42, %v3199_v55 }
 0x358   : > { %v3053_v38 = vpop.f32.mrf.mxu0 }
 0x359   : > { %v3054_v57 = vadd.f32 %v3053_v38, %v3052_v32 }
 0x35a   : > { %v3055_v15 = vpop.f32.mrf.mxu0 }
 0x35b   : > { %v4297_v50 = vadd.f32 %v4210_v25, %v3054_v57  ;;  %v3209_v57 = vpop.f32.mrf.mxu1 }
 0x35c   : > { %v3056_v16 = vpop.f32.mrf.mxu0 }
 0x35d   : > { %v3057_v60 = vadd.f32 %v3056_v16, %v3055_v15  ;;  %v3211_v13 = vpop.f32.mrf.mxu1 }
 0x35e   : > { %v4299_v30 = vpop.f32.mrf.mxu0 }
 0x35f   : > { %v4302_v56 = vadd.f32 %v4212_v4, %v3057_v60  ;;  %v3212_v33 = vpop.f32.mrf.mxu1 }
 0x360   : > { %v4304_v1 = vpop.f32.mrf.mxu0 }
 0x362   : > { %v4306_v5 = vpop.f32.mrf.mxu0 }
 0x364   : > { %v4308_v35 = vpop.f32.mrf.mxu0 }
 0x366   : > { %v4310_v39 = vpop.f32.mrf.mxu0 }
 0x368   : > { %v4312_v25 = vpop.f32.mrf.mxu0 }
 0x36a   : > { %v4314_v10 = vpop.f32.mrf.mxu0 }
 0x36c   : > { %v4316_v8 = vpop.f32.mrf.mxu0 }
 0x36e   : > { %v3138_v4 = vpop.f32.mrf.mxu0 }
 0x370   : > { %v3139_v47 = vpop.f32.mrf.mxu0 }
 0x371   : > { %v3140_v31 = vadd.f32 %v3139_v47, %v3138_v4 }
 0x372   : > { %v3141_v20 = vpop.f32.mrf.mxu0 }
 0x373   : > { %v2291_v32 = vadd.f32 %v3140_v31, %v2210_v0  ;;  %v3198_v0 = vadd.f32 %v3197_v51, %v3196_v46 }
 0x374   : > { %v3142_v38 = vpop.f32.mrf.mxu0 }
 0x375   : > { %v2372_v15 = vadd.f32 %v3192_v22, %v2291_v32  ;;  %v3143_v16 = vadd.f32 %v3142_v38, %v3141_v20  ;;  %v4320_v20 = vpop.f32.mrf.mxu1 }
 0x376   : > { %v3144_v60 = vpop.f32.mrf.mxu0 }
 0x377   : > { %v2294_v59 = vadd.f32 %v3143_v16, %v2213_v52 }
 0x378   : > { %v3145_v45 = vpop.f32.mrf.mxu0 }
 0x379   : > { %v2375_v41 = vadd.f32 %v3195_v49, %v2294_v59  ;;  %v3146_v28 = vadd.f32 %v3145_v45, %v3144_v60 }
 0x37a   : > { %v3147_v37 = vpop.f32.mrf.mxu0 }
 0x37b   : > { %v4318_v54 = vpack.c.bf16 %v2375_v41, %v2372_v15  ;;  %v2299_v4 = vadd.f32 %v3146_v28, %v2218_v11  ;;  %v3215_v41 = vpop.f32.mrf.mxu1 }
 0x37c   : > { %v3148_v61 = vpop.f32.mrf.mxu0 }
 0x37d   : > { %v3149_v47 = vadd.f32 %v3148_v61, %v3147_v37  ;;  %v2380_v26 = vadd.f32 %v3198_v0, %v2299_v4  ;;  %v3204_v37 = vadd.f32 %v3203_v3, %v3202_v17  ;;  %v3207_v61 = vadd.f32 %v3206_v9, %v3205_v19  ;;  %v3217_v46 = vpop.f32.mrf.mxu1 }
 0x37e   : > { %v3150_v44 = vpop.f32.mrf.mxu0  ;;  %v3210_v0 = vadd.f32 %v3209_v57, %v3208_v14 }
 0x37f   : > { %v2302_v31 = vadd.f32 %v3149_v47, %v2221_v12  ;;  %v3218_v4 = vpop.f32.mrf.mxu1 }
 0x380   : > { %v3151_v22 = vpop.f32.mrf.mxu0 }
 0x381   : > { %v2383_v52 = vadd.f32 %v3201_v2, %v2302_v31  ;;  %v3152_v43 = vadd.f32 %v3151_v22, %v3150_v44  ;;  %v3213_v2 = vadd.f32 %v3212_v33, %v3211_v13  ;;  %v3066_v33 = vadd.f32 %v4312_v25, %v4310_v39 }
 0x382   : > { %v3153_v32 = vpop.f32.mrf.mxu0  ;;  %v3112_v13 = vadd.f32 %v4226_v63, %v4218_v27  ;;  %v3121_v39 = vadd.f32 %v4280_v29, %v4266_v36 }
 0x383   : > { %v4322_v59 = vpack.c.bf16 %v2383_v52, %v2380_v26  ;;  %v2307_v49 = vadd.f32 %v3152_v43, %v4291_v18 }
 0x384   : > { %v3154_v45 = vpop.f32.mrf.mxu0 }
 0x385   : > { %v3155_v38 = vadd.f32 %v3154_v45, %v3153_v32  ;;  %v2388_v51 = vadd.f32 %v3204_v37, %v2307_v49  ;;  %v3063_v32 = vadd.f32 %v4308_v35, %v4306_v5  ;;  %v3115_v45 = vadd.f32 %v4242_v6, %v4234_v40 }
 0x386   : > { %v3156_v28 = vpop.f32.mrf.mxu0  ;;  %v3069_v5 = vadd.f32 %v4316_v8, %v4314_v10  ;;  %v3219_v40 = vadd.f32 %v3218_v4, %v3217_v46  ;;  %v3522_v46 = vld [vmem:[%s4447_s7 + $0x18] sm:$0xff]  }
 0x387   : > { %v2310_v11 = vadd.f32 %v3155_v38, %v4294_v24  ;;  %v3220_v24 = vpop.f32.mrf.mxu1 }
 0x388   : > { %v3157_v12 = vpop.f32.mrf.mxu0 }
 0x389   : > { %v2391_v55 = vadd.f32 %v3207_v61, %v2310_v11  ;;  %v3158_v42 = vadd.f32 %v3157_v12, %v3156_v28  ;;  %v3221_v52 = vpop.f32.mrf.mxu1  ;;  %v3216_v12 = vadd.f32 %v3215_v41, %v4320_v20  ;;  %v3519_v20 = vld [vmem:[%s4447_s7 + $0x8] sm:$0xff]   ;;  %v3520_v41 = vld [vmem:[%s4447_s7 + $0x38] sm:$0xff]  }
 0x38a   : > { %v3159_v15 = vpop.f32.mrf.mxu0  ;;  %v3222_v11 = vadd.f32 %v3221_v52, %v3220_v24 }
 0x38b   : > { %v4326_v16 = vpack.c.bf16 %v2391_v55, %v2388_v51  ;;  %v2315_v47 = vadd.f32 %v3158_v42, %v4297_v50  ;;  %v3118_v50 = vadd.f32 %v4258_v62, %v4250_v7  ;;  %v3223_v14 = vpop.f32.mrf.mxu1  ;;  %v2245_v62 = vadd.f32 %v3115_v45, %v3063_v32 }
 0x38c   : > { %v3160_v60 = vpop.f32.mrf.mxu0 }
 0x38d   : > { %v3161_v44 = vadd.f32 %v3160_v60, %v3159_v15  ;;  %v2396_v19 = vadd.f32 %v3210_v0, %v2315_v47  ;;  %v2250_v38 = vadd.f32 %v3118_v50, %v3066_v33  ;;  %v3224_v25 = vpop.f32.mrf.mxu1  ;;  %v4463_v50 = vld [vmem:[#allocation11_spill] sm:$0xff] }
 0x38e   : > { %v3162_v18 = vpop.f32.mrf.mxu0  ;;  %v3225_v10 = vadd.f32 %v3224_v25, %v3223_v14 }
 0x38f   : > { %v2318_v17 = vadd.f32 %v3161_v44, %v4302_v56  ;;  %v3060_v56 = vadd.f32 %v4304_v1, %v4299_v30  ;;  %v2253_v1 = vadd.f32 %v3121_v39, %v3069_v5  ;;  %v4465_v5 = vld [vmem:[#allocation4_spill] sm:$0xff] }
 0x390   : > { %v3163_v3 = vpop.f32.mrf.mxu0 }
 0x391   : > { %v2399_v9 = vadd.f32 %v3213_v2, %v2318_v17  ;;  %v3164_v27 = vadd.f32 %v3163_v3, %v3162_v18  ;;  %v2242_v63 = vadd.f32 %v3112_v13, %v3060_v56  ;;  %v4464_v56 = vld [vmem:[#allocation3_spill] sm:$0xff] }
 0x392   : > { %v3165_v31 = vpop.f32.mrf.mxu0 }
 0x393   : > { %v2421_v22 = vpack.c.bf16 %v2399_v9, %v2396_v19  ;;  %v2323_v6 = vadd.f32 %v3164_v27, %v2242_v63  ;;  %v4467_v63 = vld [vmem:[#allocation6_spill] sm:$0xff] }
 0x394   : > { %v3166_v26 = vpop.f32.mrf.mxu0 }
 0x395   : > { %v3167_v35 = vadd.f32 %v3166_v26, %v3165_v31  ;;  %v2404_v15 = vadd.f32 %v3216_v12, %v2323_v6  ;;  %v4469_v6 = vld [vmem:[#allocation8_spill] sm:$0xff]  ;;  %v4470_v12 = vld [vmem:[#allocation9_spill] sm:$0xff] }
 0x396   : > { %v3168_v43 = vpop.f32.mrf.mxu0 }
 0x397   : > { %v2326_v28 = vadd.f32 %v3167_v35, %v2245_v62  ;;  %v4466_v62 = vld [vmem:[#allocation5_spill] sm:$0xff] }
 0x398   : > { %v3169_v57 = vpop.f32.mrf.mxu0 }
 0x399   : > { %v3170_v49 = vadd.f32 %v3169_v57, %v3168_v43  ;;  %v2407_v51 = vadd.f32 %v3219_v40, %v2326_v28  ;;  %v4462_v43 = vld [vmem:[#allocation2_spill] sm:$0xff]  ;;  %v4468_v28 = vld [vmem:[#allocation7_spill] sm:$0xff] }
 0x39a   : > { %v3171_v7 = vpop.f32.mrf.mxu0 }
 0x39b   : > { %v2331_v37 = vadd.f32 %v3170_v49, %v2250_v38  ;;  %v2422_v29 = vpack.c.bf16 %v2407_v51, %v2404_v15  ;;  %v4471_v15 = vld [vmem:[#allocation10_spill] sm:$0xff] }
 0x39c   : > { %v3172_v30 = vpop.f32.mrf.mxu0 }
 0x39d   : > { %v3173_v61 = vadd.f32 %v3172_v30, %v3171_v7  ;;  %v2412_v55 = vadd.f32 %v3222_v11, %v2331_v37 }
 0x39f   : > { %v2334_v8 = vadd.f32 %v3173_v61, %v2253_v1 }
 0x3a1   : > { %v2415_v42 = vadd.f32 %v3225_v10, %v2334_v8 }
 0x3a3   : > { %v2423_v36 = vpack.c.bf16 %v2415_v42, %v2412_v55 }
 0x3a5   : > { %3360 = vmatprep.subr.bf16.mxu0 %v2423_v36  ;;  %3388 = vmatprep.subr.bf16.mxu1 %v2423_v36 }
 0x3a6   : > { %3361 = vmatpush3.bf16.msra.mxu0 %v2423_v36  ;;  %3394 = vmatpush3.bf16.msra.mxu1 %v2423_v36 }
 0x3a7   : > { %3362 = vmatprep.subr.bf16.mxu0 %v2422_v29  ;;  %3389 = vmatprep.subr.bf16.mxu1 %v2422_v29 }
 0x3aa   : > { %3363 = vmatpush3.bf16.msra.mxu0 %v2422_v29  ;;  %3395 = vmatpush3.bf16.msra.mxu1 %v2422_v29 }
 0x3ab   : > { %3364 = vmatprep.subr.bf16.mxu0 %v2421_v22  ;;  %3390 = vmatprep.subr.bf16.mxu1 %v2421_v22 }
 0x3ae   : > { %3365 = vmatpush3.bf16.msra.mxu0 %v2421_v22  ;;  %3396 = vmatpush3.bf16.msra.mxu1 %v2421_v22 }
 0x3af   : > { %3366 = vmatprep.subr.bf16.mxu0 %v4326_v16  ;;  %3391 = vmatprep.subr.bf16.mxu1 %v4326_v16 }
 0x3b2   : > { %3367 = vmatpush3.bf16.msra.mxu0 %v4326_v16  ;;  %3397 = vmatpush3.bf16.msra.mxu1 %v4326_v16  ;;  %v3523_v16 = vld [vmem:[%s4447_s7 + $0x20] sm:$0xff]  }
 0x3b3   : > { %3368 = vmatprep.subr.bf16.mxu0 %v4322_v59  ;;  %3392 = vmatprep.subr.bf16.mxu1 %v4322_v59 }
 0x3b6   : > { %3369 = vmatpush3.bf16.msra.mxu0 %v4322_v59  ;;  %3398 = vmatpush3.bf16.msra.mxu1 %v4322_v59  ;;  %v3521_v59 = vld [vmem:[%s4447_s7 + $0x10] sm:$0xff]  }
 0x3b7   : > { %3370 = vmatprep.subr.bf16.mxu0 %v4318_v54  ;;  %3393 = vmatprep.subr.bf16.mxu1 %v4318_v54 }
 0x3ba   : > { %3371 = vmatpush3.bf16.msra.mxu0 %v4318_v54  ;;  %3399 = vmatpush3.bf16.msra.mxu1 %v4318_v54  ;;  %v3524_v54 = vld [vmem:[%s4447_s7 + $0x28] sm:$0xff]  }
 0x3bd   : > { %3373 = vmatmul.mubr.msk.bf16.vlgmr.msra.gmra.mxu0 %vm2480_vm1, %v3519_v20  ;;  %3385 = vmatmul.mubr.msk.bf16.vlgmr.msra.gmra.mxu1 %vm2480_vm1, %v3520_v41 }
 0x3be   : > { %3376 = vmatprep.mubr.msk.bf16.mxu0 %vm2480_vm1, %v3521_v59 }
 0x3c5   : > { %3377 = vmatmul.mubr.msk.bf16.gmra.mxu0 %vm2480_vm1, %v3522_v46 }
 0x3c6   : > { %3380 = vmatprep.mubr.msk.bf16.mxu0 %vm2480_vm1, %v3523_v16 }
 0x3cd   : > { %3381 = vmatmul.mubr.msk.bf16.gmra.mxu0 %vm2480_vm1, %v3524_v54 }
 0x47d   : > { %v3374_v60 = vpop.f32.mrf.mxu0  ;;  %v3386_v4 = vpop.f32.mrf.mxu1 }
 0x47e   : > { %v2604_v47 = vadd.f32 %v3374_v60, %v4216_v23  ;;  %v2616_v44 = vadd.f32 %v3386_v4, %v4264_v21 }
 0x47f   : > { %v2539_v18 = vpop.f32.mrf.mxu0  ;;  %v2587_v0 = vpop.f32.mrf.mxu1 }
 0x480   : > { %v2620_v2 = vmul.f32 0.25, %v2604_v47  ;;  %v2632_v17 = vmul.f32 0.25, %v2616_v44  ;;  %v2602_v3 = vadd.f32 %v2539_v18, %v4221_v34  ;;  %v2614_v23 = vadd.f32 %v2587_v0, %v4269_v53 }
 0x481   : > { %v3375_v24 = vpop.f32.mrf.mxu0  ;;  %v3387_v21 = vpop.f32.mrf.mxu1 }
 0x482   : > { %2637 = vst.msk [vmem:[%s4389_s26 + $0x10] sm:$0xff] %vm2634_vm2, %v2620_v2  ;;  %2649 = vst.msk [vmem:[%s4389_s26 + $0x70] sm:$0xff] %vm2634_vm2, %v2632_v17  ;;  %v2618_v19 = vmul.f32 0.25, %v2602_v3  ;;  %v2630_v9 = vmul.f32 0.25, %v2614_v23  ;;  %v2605_v31 = vadd.f32 %v3375_v24, %v4224_v48  ;;  %v2617_v22 = vadd.f32 %v3387_v21, %v4278_v58 }
 0x483   : > { %v2542_v26 = vpop.f32.mrf.mxu0  ;;  %v2590_v34 = vpop.f32.mrf.mxu1 }
 0x484   : > { %2635 = vst.msk [vmem:[%s4389_s26] sm:$0xff] %vm2634_vm2, %v2618_v19  ;;  %2647 = vst.msk [vmem:[%s4389_s26 + $0x60] sm:$0xff] %vm2634_vm2, %v2630_v9  ;;  %v2621_v53 = vmul.f32 0.25, %v2605_v31  ;;  %v2633_v52 = vmul.f32 0.25, %v2617_v22  ;;  %v2603_v32 = vadd.f32 %v2542_v26, %v4462_v43  ;;  %v2615_v33 = vadd.f32 %v2590_v34, %v4463_v50 }
 0x485   : > { %v3378_v13 = vpop.f32.mrf.mxu0 }
 0x486   : > { %2638 = vst.msk [vmem:[%s4389_s26 + $0x18] sm:$0xff] %vm2634_vm2, %v2621_v53  ;;  %2650 = vst.msk [vmem:[%s4389_s26 + $0x78] sm:$0xff] %vm2634_vm2, %v2633_v52  ;;  %v2619_v48 = vmul.f32 0.25, %v2603_v32  ;;  %v2631_v58 = vmul.f32 0.25, %v2615_v33  ;;  %v2608_v14 = vadd.f32 %v3378_v13, %v4464_v56 }
 0x487   : > { %v2555_v57 = vpop.f32.mrf.mxu0 }
 0x488   : > { %2636 = vst.msk [vmem:[%s4389_s26 + $0x8] sm:$0xff] %vm2634_vm2, %v2619_v48  ;;  %2648 = vst.msk [vmem:[%s4389_s26 + $0x68] sm:$0xff] %vm2634_vm2, %v2631_v58  ;;  %v2624_v45 = vmul.f32 0.25, %v2608_v14  ;;  %v2606_v35 = vadd.f32 %v2555_v57, %v4465_v5 }
 0x489   : > { %v3379_v49 = vpop.f32.mrf.mxu0 }
 0x48a   : > { %2641 = vst.msk [vmem:[%s4389_s26 + $0x30] sm:$0xff] %vm2634_vm2, %v2624_v45  ;;  %v2622_v7 = vmul.f32 0.25, %v2606_v35  ;;  %v2609_v38 = vadd.f32 %v3379_v49, %v4466_v62 }
 0x48b   : > { %v2558_v39 = vpop.f32.mrf.mxu0 }
 0x48c   : > { %2639 = vst.msk [vmem:[%s4389_s26 + $0x20] sm:$0xff] %vm2634_vm2, %v2622_v7  ;;  %v2625_v27 = vmul.f32 0.25, %v2609_v38  ;;  %v2607_v25 = vadd.f32 %v2558_v39, %v4467_v63 }
 0x48d   : > { %v3382_v30 = vpop.f32.mrf.mxu0 }
 0x48e   : > { %2642 = vst.msk [vmem:[%s4389_s26 + $0x38] sm:$0xff] %vm2634_vm2, %v2625_v27  ;;  %v2623_v1 = vmul.f32 0.25, %v2607_v25  ;;  %v2612_v37 = vadd.f32 %v3382_v30, %v4468_v28 }
 0x48f   : > { %v2571_v61 = vpop.f32.mrf.mxu0 }
 0x490   : > { %2640 = vst.msk [vmem:[%s4389_s26 + $0x28] sm:$0xff] %vm2634_vm2, %v2623_v1  ;;  %v2628_v40 = vmul.f32 0.25, %v2612_v37  ;;  %v2610_v11 = vadd.f32 %v2571_v61, %v4469_v6 }
 0x491   : > { %v3383_v10 = vpop.f32.mrf.mxu0 }
 0x492   : > { %2645 = vst.msk [vmem:[%s4389_s26 + $0x50] sm:$0xff] %vm2634_vm2, %v2628_v40  ;;  %v2626_v8 = vmul.f32 0.25, %v2610_v11  ;;  %v2613_v51 = vadd.f32 %v3383_v10, %v4470_v12 }
 0x493   : > { %v2574_v55 = vpop.f32.mrf.mxu0 }
 0x494   : > { %2643 = vst.msk [vmem:[%s4389_s26 + $0x40] sm:$0xff] %vm2634_vm2, %v2626_v8  ;;  %v2629_v42 = vmul.f32 0.25, %v2613_v51  ;;  %v2611_v36 = vadd.f32 %v2574_v55, %v4471_v15 }
 0x496   : > { %2646 = vst.msk [vmem:[%s4389_s26 + $0x58] sm:$0xff] %vm2634_vm2, %v2629_v42  ;;  %v2627_v29 = vmul.f32 0.25, %v2611_v36 }
 0x498   : > { %2644 = vst.msk [vmem:[%s4389_s26 + $0x48] sm:$0xff] %vm2634_vm2, %v2627_v29 }
 0x499 PF: > { %s21_s17 = sadd.s32 1, %s3531_s17  }
 0x49a   : > { %p18_p4 = scmp.ge.s32.totalorder %s21_s17, 4  }
 0x49c   :  { %20 = sbr.rel (!%p18_p4) target bundleno = 1 (0x1), region = 103 }

</bundles_post_ra>
